<compile_context>
chip_gen: v7x
topology: tpu7x:2x2x1
jax: 0.10.0
libtpu: 0.0.40
codegen_flags: <defaults>
</compile_context>

<pallas_src>
import functools

import jax
import jax.numpy as jnp
from jax.experimental import pallas as pl
from jax.experimental.pallas import tpu as pltpu

# ----- "args" of the PyTorch module (synthetic, small) -----
FEATURE_DIM = 32
LABEL_DIM = 16
LATENT_DIM = 8
SCALE_COEFF = 1.0
DROPOUT_P = 0.5     # nn.Dropout(p=args.keep_prob)
BATCH = 8

# hidden sizes (fixed by the module definition)
H_FE1, H_FE2 = 512, 256          # label encoder
H_FX1, H_FX2, H_FX3 = 256, 512, 256   # feature encoder

# ---- packed dropout-mask buffer layout (all offsets are multiples of 128) ----
_M_LE1 = 0
_M_LE2 = _M_LE1 + H_FE1          # 512
_M_FE1 = _M_LE2 + H_FE2          # 768
_M_FE2 = _M_FE1 + H_FX1          # 1024
_M_FE3 = _M_FE2 + H_FX2          # 1536
MASK_WIDTH = _M_FE3 + H_FX3      # 1792

# ---- packed bias buffer layout: one row per layer, zero-padded to 512 lanes ----
_BIAS_ROWS = {
    "fe1": (0, 512), "fe2": (1, 256), "fe_head": (2, 16),
    "fd1": (3, 256), "fd2": (4, 512), "lmp": (5, 16),
    "fx1": (6, 256), "fx2": (7, 512), "fx3": (8, 256),
    "fx_head": (9, 16), "fdx1": (10, 256), "fdx2": (11, 512), "fmp": (12, 16),
}
BIAS_ROWS_N = 13
BIAS_PAD = 512

# ---- packed lane-dense output slab layout ----
_O_LOUT = 0
_O_LMU = _O_LOUT + LABEL_DIM
_O_LLV = _O_LMU + LATENT_DIM
_O_LZ = _O_LLV + LATENT_DIM
_O_FOUT = _O_LZ + LATENT_DIM
_O_FMU = _O_FOUT + LABEL_DIM
_O_FLV = _O_FMU + LATENT_DIM
_O_FZ = _O_FLV + LATENT_DIM
_O_END = _O_FZ + LATENT_DIM      # 80
OUT_WIDTH = 128                  # lane-dense (padded to a full vreg width)

# nn.Linear layers: name -> (fan_in, fan_out)
_LAYER_DEFS = {
    "fx1": (FEATURE_DIM, 256), "fx2": (256, 512), "fx3": (512, 256),
    "fx_mu": (256, LATENT_DIM), "fx_logvar": (256, LATENT_DIM),
    "fd_x1": (FEATURE_DIM + LATENT_DIM, 256), "fd_x2": (256, 512),
    "feat_mp_mu": (512, LABEL_DIM),
    "fe1": (FEATURE_DIM + LABEL_DIM, 512), "fe2": (512, 256),
    "fe_mu": (256, LATENT_DIM), "fe_logvar": (256, LATENT_DIM),
    "fd1": (FEATURE_DIM + LATENT_DIM, 256), "fd2": (256, 512),
    "label_mp_mu": (512, LABEL_DIM),
}
# TODO(synk): r_sqrt_sigma parameter is unused in VAE.forward(); not materialized.
# TODO(synk): eps / dropout masks could be generated in-kernel with pltpu.prng_*;
#             kept host-side so the pure-JAX reference stays bit-comparable.


# --------------------------------------------------------------------------
# Pallas kernel: whole VAE forward for one batch tile, everything in VMEM.
# --------------------------------------------------------------------------
def _vae_kernel(scale_coeff, feat_dim, label_dim, latent_dim,
                # data inputs
                xin_ref, eps_ref, masks_ref,
                # packed parameters
                w_fe1_ref, w_fx1_ref, w_512_256_ref, w_256_512_ref,
                w_head_ref, w_dec1_ref, w_mp_ref, b_ref,
                # output slab
                out_ref):
    f32 = jnp.float32
    tb = out_ref.shape[0]

    def dot(a, b):
        return jnp.dot(a, b, preferred_element_type=f32)

    def relu(v):
        return jnp.maximum(v, 0.0)

    def bias(name):
        r, n = _BIAS_ROWS[name]
        return b_ref[r:r + 1, 0:n]          # (1, n) broadcasts over the tile

    xin = xin_ref[...]                      # (TB, 48) = [ feature | label ]
    feat = xin[:, 0:feat_dim]               # (TB, 32)
    eps = eps_ref[...]                      # (TB, 16) = [ eps_label | eps_feat ]
    eps_l = eps[:, 0:latent_dim]
    eps_f = eps[:, latent_dim:2 * latent_dim]

    # ---------------- label branch: label_forward(label, feature) ----------
    h1 = relu(dot(xin, w_fe1_ref[...]) + bias("fe1")) \
        * masks_ref[:, _M_LE1:_M_LE1 + H_FE1]
    h2 = relu(dot(h1, w_512_256_ref[0]) + bias("fe2")) \
        * masks_ref[:, _M_LE2:_M_LE2 + H_FE2]
    head_l = (dot(h2, w_head_ref[0]) + bias("fe_head")) * scale_coeff   # (TB,16)
    l_mu = head_l[:, 0:latent_dim]
    l_lv = head_l[:, latent_dim:2 * latent_dim]
    l_z = l_mu + eps_l * jnp.exp(0.5 * l_lv)                 # reparameterize
    w_fd1 = w_dec1_ref[0]                                    # (40, 256)
    d3 = relu(dot(feat, w_fd1[0:feat_dim, :])
              + dot(l_z, w_fd1[feat_dim:feat_dim + latent_dim, :])
              + bias("fd1"))
    d4 = relu(dot(d3, w_256_512_ref[0]) + bias("fd2"))
    label_out = dot(d4, w_mp_ref[0]) + bias("lmp")

    # ---------------- feature branch: feat_forward(feature) ----------------
    g1 = relu(dot(feat, w_fx1_ref[...]) + bias("fx1")) \
        * masks_ref[:, _M_FE1:_M_FE1 + H_FX1]
    g2 = relu(dot(g1, w_256_512_ref[2]) + bias("fx2")) \
        * masks_ref[:, _M_FE2:_M_FE2 + H_FX2]
    g3 = relu(dot(g2, w_512_256_ref[1]) + bias("fx3")) \
        * masks_ref[:, _M_FE3:_M_FE3 + H_FX3]
    head_f = (dot(g3, w_head_ref[1]) + bias("fx_head")) * scale_coeff
    f_mu = head_f[:, 0:latent_dim]
    f_lv = head_f[:, latent_dim:2 * latent_dim]
    f_z = f_mu + eps_f * jnp.exp(0.5 * f_lv)
    w_fdx1 = w_dec1_ref[1]                                   # (40, 256)
    e4 = relu(dot(feat, w_fdx1[0:feat_dim, :])
              + dot(f_z, w_fdx1[feat_dim:feat_dim + latent_dim, :])
              + bias("fdx1"))
    e5 = relu(dot(e4, w_256_512_ref[1]) + bias("fdx2"))
    feat_out = dot(e5, w_mp_ref[1]) + bias("fmp")

    # ---------------- single lane-dense output slab write ------------------
    pad = jnp.zeros((tb, OUT_WIDTH - _O_END), f32)
    out_ref[...] = jnp.concatenate(
        [label_out, l_mu, l_lv, l_z, feat_out, f_mu, f_lv, f_z, pad], axis=-1)


# --------------------------------------------------------------------------
# Parameter init (deterministic, torch.nn.Linear-style uniform bounds).
# Weights stored as (in, out); biases as (out,).
# --------------------------------------------------------------------------
def init_params(key):
    params = {}
    names = sorted(_LAYER_DEFS)
    keys = jax.random.split(key, len(names))
    for k, name in zip(keys, names):
        fi, fo = _LAYER_DEFS[name]
        kw, kb = jax.random.split(k)
        bound = 1.0 / (fi ** 0.5)
        w = jax.random.uniform(kw, (fi, fo), jnp.float32, -bound, bound)
        b = jax.random.uniform(kb, (fo,), jnp.float32, -bound, bound)
        params[name] = (w, b)
    return params


def pack_params(p):
    """Pack 15 (w,b) pairs into 7 stacked weight buffers + 1 bias buffer."""
    def W(n): return p[n][0]
    def Bv(n): return p[n][1]

    w_fe1 = W("fe1")                                              # (48, 512)
    w_fx1 = W("fx1")                                              # (32, 256)
    w_512_256 = jnp.stack([W("fe2"), W("fx3")])                   # (2, 512, 256)
    w_256_512 = jnp.stack([W("fd2"), W("fd_x2"), W("fx2")])       # (3, 256, 512)
    w_head = jnp.stack([
        jnp.concatenate([W("fe_mu"), W("fe_logvar")], axis=1),
        jnp.concatenate([W("fx_mu"), W("fx_logvar")], axis=1),
    ])                                                            # (2, 256, 16)
    w_dec1 = jnp.stack([W("fd1"), W("fd_x1")])                    # (2, 40, 256)
    w_mp = jnp.stack([W("label_mp_mu"), W("feat_mp_mu")])         # (2, 512, 16)

    b_all = jnp.zeros((BIAS_ROWS_N, BIAS_PAD), jnp.float32)

    def setb(b_all, name, vec):
        r, n = _BIAS_ROWS[name]
        return b_all.at[r, :n].set(vec)

    b_all = setb(b_all, "fe1", Bv("fe1"))
    b_all = setb(b_all, "fe2", Bv("fe2"))
    b_all = setb(b_all, "fe_head",
                 jnp.concatenate([Bv("fe_mu"), Bv("fe_logvar")]))
    b_all = setb(b_all, "fd1", Bv("fd1"))
    b_all = setb(b_all, "fd2", Bv("fd2"))
    b_all = setb(b_all, "lmp", Bv("label_mp_mu"))
    b_all = setb(b_all, "fx1", Bv("fx1"))
    b_all = setb(b_all, "fx2", Bv("fx2"))
    b_all = setb(b_all, "fx3", Bv("fx3"))
    b_all = setb(b_all, "fx_head",
                 jnp.concatenate([Bv("fx_mu"), Bv("fx_logvar")]))
    b_all = setb(b_all, "fdx1", Bv("fd_x1"))
    b_all = setb(b_all, "fdx2", Bv("fd_x2"))
    b_all = setb(b_all, "fmp", Bv("feat_mp_mu"))

    return (w_fe1, w_fx1, w_512_256, w_256_512, w_head, w_dec1, w_mp, b_all)


# --------------------------------------------------------------------------
# Wrapper: pack inputs/randomness, call the kernel, unpack the output slab.
# --------------------------------------------------------------------------
def vae_forward(params, label, feature, rng):
    B = label.shape[0]
    TB = min(128, ((B + 7) // 8) * 8)        # batch tile (sublane-aligned)
    n_tiles = (B + TB - 1) // TB
    Bp = n_tiles * TB

    # ---- randomness (host-side; matches the reference bit-exactly) ----
    k_eps, k_mask = jax.random.split(rng)
    keep = 1.0 - DROPOUT_P
    eps = jax.random.normal(k_eps, (Bp, 2 * LATENT_DIM), jnp.float32)
    masks = (jax.random.bernoulli(k_mask, keep, (Bp, MASK_WIDTH))
             .astype(jnp.float32) / keep)

    # ---- pack / pad inputs ----
    xin = jnp.concatenate([feature, label], axis=1)        # (B, 48)
    if Bp != B:
        xin = jnp.pad(xin, ((0, Bp - B), (0, 0)))
    packed = pack_params(params)

    def resident(shape):                     # weights: DMA once, stay in VMEM
        nd = len(shape)
        return pl.BlockSpec(shape, lambda i, _nd=nd: (0,) * _nd)

    in_specs = [
        pl.BlockSpec((TB, FEATURE_DIM + LABEL_DIM), lambda i: (i, 0)),
        pl.BlockSpec((TB, 2 * LATENT_DIM), lambda i: (i, 0)),
        pl.BlockSpec((TB, MASK_WIDTH), lambda i: (i, 0)),
    ] + [resident(w.shape) for w in packed]

    kernel = functools.partial(_vae_kernel, SCALE_COEFF,
                               FEATURE_DIM, LABEL_DIM, LATENT_DIM)

    slab = pl.pallas_call(
        kernel,
        grid=(n_tiles,),
        in_specs=in_specs,
        out_specs=pl.BlockSpec((TB, OUT_WIDTH), lambda i: (i, 0)),
        out_shape=jax.ShapeDtypeStruct((Bp, OUT_WIDTH), jnp.float32),
        compiler_params=pltpu.CompilerParams(
            dimension_semantics=("parallel",)),
    )(xin, eps, masks, *packed)

    o = slab[:B]
    outs = (
        o[:, _O_LOUT:_O_LOUT + LABEL_DIM],    # label_out
        o[:, _O_LMU:_O_LMU + LATENT_DIM],     # label_mu
        o[:, _O_LLV:_O_LLV + LATENT_DIM],     # label_logvar
        o[:, _O_LZ:_O_LZ + LATENT_DIM],       # label_z
        o[:, _O_FOUT:_O_FOUT + LABEL_DIM],    # feat_out
        o[:, _O_FMU:_O_FMU + LATENT_DIM],     # feat_mu
        o[:, _O_FLV:_O_FLV + LATENT_DIM],     # feat_logvar
        o[:, _O_FZ:_O_FZ + LATENT_DIM],       # feat_z
    )
    randoms = (
        eps[:B, 0:LATENT_DIM], eps[:B, LATENT_DIM:2 * LATENT_DIM],
        masks[:B, _M_LE1:_M_LE1 + H_FE1], masks[:B, _M_LE2:_M_LE2 + H_FE2],
        masks[:B, _M_FE1:_M_FE1 + H_FX1], masks[:B, _M_FE2:_M_FE2 + H_FX2],
        masks[:B, _M_FE3:_M_FE3 + H_FX3],
    )
    return outs, randoms


# --------------------------------------------------------------------------
# Pure-JAX reference (same math, same random draws) for correctness check.
# --------------------------------------------------------------------------
def vae_reference(params, label, feature, randoms):
    eps_l, eps_f, dm_le1, dm_le2, dm_fe1, dm_fe2, dm_fe3 = randoms

    def lin(x, name):
        w, b = params[name]
        return x @ w + b

    relu = jax.nn.relu

    # label branch
    x = jnp.concatenate([feature, label], axis=1)
    h1 = relu(lin(x, "fe1")) * dm_le1
    h2 = relu(lin(h1, "fe2")) * dm_le2
    l_mu = lin(h2, "fe_mu") * SCALE_COEFF
    l_lv = lin(h2, "fe_logvar") * SCALE_COEFF
    l_z = l_mu + eps_l * jnp.exp(0.5 * l_lv)
    zc = jnp.concatenate([feature, l_z], axis=1)
    d3 = relu(lin(zc, "fd1"))
    d4 = relu(lin(d3, "fd2"))
    label_out = lin(d4, "label_mp_mu")

    # feature branch
    g1 = relu(lin(feature, "fx1")) * dm_fe1
    g2 = relu(lin(g1, "fx2")) * dm_fe2
    g3 = relu(lin(g2, "fx3")) * dm_fe3
    f_mu = lin(g3, "fx_mu") * SCALE_COEFF
    f_lv = lin(g3, "fx_logvar") * SCALE_COEFF
    f_z = f_mu + eps_f * jnp.exp(0.5 * f_lv)
    fc = jnp.concatenate([feature, f_z], axis=1)
    e4 = relu(lin(fc, "fd_x1"))
    e5 = relu(lin(e4, "fd_x2"))
    feat_out = lin(e5, "feat_mp_mu")

    return (label_out, l_mu, l_lv, l_z, feat_out, f_mu, f_lv, f_z)


if __name__ == "__main__":
    root = jax.random.PRNGKey(0)
    k_param, k_label, k_feat, k_rng = jax.random.split(root, 4)

    params = init_params(k_param)
    # label is typically multi-hot; its values don't affect kernel validity.
    label = (jax.random.uniform(k_label, (BATCH, LABEL_DIM)) > 0.5).astype(jnp.float32)
    feature = jax.random.normal(k_feat, (BATCH, FEATURE_DIM), jnp.float32)

    outs, randoms = vae_forward(params, label, feature, k_rng)
    outs = jax.block_until_ready(outs)

    refs = vae_reference(params, label, feature, randoms)
    for o, r in zip(outs, refs):
        assert o.shape == r.shape and o.dtype == r.dtype
        assert jnp.allclose(o, r, rtol=1e-4, atol=1e-4), "mismatch vs reference"

    print("KERNEL_OK")
</pallas_src>

<mosaic_0001>
module attributes {stable_mosaic.version = 11 : i64} {
  func.func @_vae_kernel(%arg0: i32, %arg1: memref<8x48xf32, #tpu.memory_space<vmem>>, %arg2: memref<8x16xf32, #tpu.memory_space<vmem>>, %arg3: memref<8x1792xf32, #tpu.memory_space<vmem>>, %arg4: memref<48x512xf32, #tpu.memory_space<vmem>>, %arg5: memref<32x256xf32, #tpu.memory_space<vmem>>, %arg6: memref<2x512x256xf32, #tpu.memory_space<vmem>>, %arg7: memref<3x256x512xf32, #tpu.memory_space<vmem>>, %arg8: memref<2x256x16xf32, #tpu.memory_space<vmem>>, %arg9: memref<2x40x256xf32, #tpu.memory_space<vmem>>, %arg10: memref<2x512x16xf32, #tpu.memory_space<vmem>>, %arg11: memref<13x512xf32, #tpu.memory_space<vmem>>, %arg12: memref<8x128xf32, #tpu.memory_space<vmem>>) attributes {dimension_semantics = [#tpu.dimension_semantics<parallel>], iteration_bounds = array<i64: 1>, scalar_prefetch = 0 : i64, scratch_operands = 0 : i64, tpu.core_type = #tpu.core_type<tc>, window_params = [{transform_indices = @transform_0, window_bounds = array<i64: 8, 48>}, {transform_indices = @transform_1, window_bounds = array<i64: 8, 16>}, {transform_indices = @transform_2, window_bounds = array<i64: 8, 1792>}, {pipeline_mode = #tpu.pipeline_mode<synchronous>, transform_indices = @transform_3, window_bounds = array<i64: 48, 512>}, {pipeline_mode = #tpu.pipeline_mode<synchronous>, transform_indices = @transform_4, window_bounds = array<i64: 32, 256>}, {pipeline_mode = #tpu.pipeline_mode<synchronous>, transform_indices = @transform_5, window_bounds = array<i64: 2, 512, 256>}, {pipeline_mode = #tpu.pipeline_mode<synchronous>, transform_indices = @transform_6, window_bounds = array<i64: 3, 256, 512>}, {pipeline_mode = #tpu.pipeline_mode<synchronous>, transform_indices = @transform_7, window_bounds = array<i64: 2, 256, 16>}, {pipeline_mode = #tpu.pipeline_mode<synchronous>, transform_indices = @transform_8, window_bounds = array<i64: 2, 40, 256>}, {pipeline_mode = #tpu.pipeline_mode<synchronous>, transform_indices = @transform_9, window_bounds = array<i64: 2, 512, 16>}, {pipeline_mode = #tpu.pipeline_mode<synchronous>, transform_indices = @transform_10, window_bounds = array<i64: 13, 512>}, {transform_indices = @transform_11, window_bounds = array<i64: 8, 128>}]} {
    %c0 = arith.constant 0 : index
    %c0_0 = arith.constant 0 : index
    %0 = vector.load %arg1[%c0, %c0_0] : memref<8x48xf32, #tpu.memory_space<vmem>>, vector<8x48xf32>
    %1 = vector.extract_strided_slice %0 {offsets = [0, 0], sizes = [8, 32], strides = [1, 1]} : vector<8x48xf32> to vector<8x32xf32>
    %c0_1 = arith.constant 0 : index
    %c0_2 = arith.constant 0 : index
    %2 = vector.load %arg2[%c0_1, %c0_2] : memref<8x16xf32, #tpu.memory_space<vmem>>, vector<8x16xf32>
    %3 = vector.extract_strided_slice %2 {offsets = [0, 0], sizes = [8, 8], strides = [1, 1]} : vector<8x16xf32> to vector<8x8xf32>
    %4 = vector.extract_strided_slice %2 {offsets = [0, 8], sizes = [8, 8], strides = [1, 1]} : vector<8x16xf32> to vector<8x8xf32>
    %c0_3 = arith.constant 0 : index
    %c0_4 = arith.constant 0 : index
    %5 = vector.load %arg4[%c0_3, %c0_4] : memref<48x512xf32, #tpu.memory_space<vmem>>, vector<48x512xf32>
    %cst = arith.constant dense<0.000000e+00> : vector<8x512xf32>
    %6 = tpu.matmul %0, %5, %cst {dimension_numbers = #tpu.dot_dimension_numbers<[1], [0], [0], [1], [0, 0, 1, 1], [], []>} : vector<8x48xf32>, vector<48x512xf32>, vector<8x512xf32> -> vector<8x512xf32>
    %c0_5 = arith.constant 0 : index
    %c0_6 = arith.constant 0 : index
    %7 = vector.load %arg11[%c0_5, %c0_6] : memref<13x512xf32, #tpu.memory_space<vmem>>, vector<1x512xf32>
    %8 = vector.broadcast %7 : vector<1x512xf32> to vector<8x512xf32>
    %9 = arith.addf %6, %8 : vector<8x512xf32>
    %cst_7 = arith.constant 0.000000e+00 : f32
    %10 = vector.broadcast %cst_7 : f32 to vector<8x512xf32>
    %11 = arith.maximumf %9, %10 : vector<8x512xf32>
    %c0_8 = arith.constant 0 : index
    %c0_9 = arith.constant 0 : index
    %12 = vector.load %arg3[%c0_8, %c0_9] : memref<8x1792xf32, #tpu.memory_space<vmem>>, vector<8x512xf32>
    %13 = arith.mulf %11, %12 : vector<8x512xf32>
    %c0_10 = arith.constant 0 : index
    %c0_11 = arith.constant 0 : index
    %c0_12 = arith.constant 0 : index
    %14 = vector.load %arg6[%c0_10, %c0_11, %c0_12] : memref<2x512x256xf32, #tpu.memory_space<vmem>>, vector<1x512x256xf32>
    %15 = vector.shape_cast %14 : vector<1x512x256xf32> to vector<512x256xf32>
    %cst_13 = arith.constant dense<0.000000e+00> : vector<8x256xf32>
    %16 = tpu.matmul %13, %15, %cst_13 {dimension_numbers = #tpu.dot_dimension_numbers<[1], [0], [0], [1], [0, 0, 1, 1], [], []>} : vector<8x512xf32>, vector<512x256xf32>, vector<8x256xf32> -> vector<8x256xf32>
    %c1 = arith.constant 1 : index
    %c0_14 = arith.constant 0 : index
    %17 = vector.load %arg11[%c1, %c0_14] : memref<13x512xf32, #tpu.memory_space<vmem>>, vector<1x256xf32>
    %18 = vector.broadcast %17 : vector<1x256xf32> to vector<8x256xf32>
    %19 = arith.addf %16, %18 : vector<8x256xf32>
    %cst_15 = arith.constant 0.000000e+00 : f32
    %20 = vector.broadcast %cst_15 : f32 to vector<8x256xf32>
    %21 = arith.maximumf %19, %20 : vector<8x256xf32>
    %c0_16 = arith.constant 0 : index
    %c512 = arith.constant 512 : index
    %22 = vector.load %arg3[%c0_16, %c512] : memref<8x1792xf32, #tpu.memory_space<vmem>>, vector<8x256xf32>
    %23 = arith.mulf %21, %22 : vector<8x256xf32>
    %c0_17 = arith.constant 0 : index
    %c0_18 = arith.constant 0 : index
    %c0_19 = arith.constant 0 : index
    %24 = vector.load %arg8[%c0_17, %c0_18, %c0_19] : memref<2x256x16xf32, #tpu.memory_space<vmem>>, vector<1x256x16xf32>
    %25 = vector.shape_cast %24 : vector<1x256x16xf32> to vector<256x16xf32>
    %cst_20 = arith.constant dense<0.000000e+00> : vector<8x16xf32>
    %26 = tpu.matmul %23, %25, %cst_20 {dimension_numbers = #tpu.dot_dimension_numbers<[1], [0], [0], [1], [0, 0, 1, 1], [], []>} : vector<8x256xf32>, vector<256x16xf32>, vector<8x16xf32> -> vector<8x16xf32>
    %c2 = arith.constant 2 : index
    %c0_21 = arith.constant 0 : index
    %27 = vector.load %arg11[%c2, %c0_21] : memref<13x512xf32, #tpu.memory_space<vmem>>, vector<1x16xf32>
    %28 = vector.broadcast %27 : vector<1x16xf32> to vector<8x16xf32>
    %29 = arith.addf %26, %28 : vector<8x16xf32>
    %cst_22 = arith.constant 1.000000e+00 : f32
    %30 = vector.broadcast %cst_22 : f32 to vector<8x16xf32>
    %31 = arith.mulf %29, %30 : vector<8x16xf32>
    %32 = vector.extract_strided_slice %31 {offsets = [0, 0], sizes = [8, 8], strides = [1, 1]} : vector<8x16xf32> to vector<8x8xf32>
    %33 = vector.extract_strided_slice %31 {offsets = [0, 8], sizes = [8, 8], strides = [1, 1]} : vector<8x16xf32> to vector<8x8xf32>
    %cst_23 = arith.constant 5.000000e-01 : f32
    %34 = vector.broadcast %cst_23 : f32 to vector<8x8xf32>
    %35 = arith.mulf %34, %33 : vector<8x8xf32>
    %36 = math.exp %35 : vector<8x8xf32>
    %37 = arith.mulf %3, %36 : vector<8x8xf32>
    %38 = arith.addf %32, %37 : vector<8x8xf32>
    %c0_24 = arith.constant 0 : index
    %c0_25 = arith.constant 0 : index
    %c0_26 = arith.constant 0 : index
    %39 = vector.load %arg9[%c0_24, %c0_25, %c0_26] : memref<2x40x256xf32, #tpu.memory_space<vmem>>, vector<1x40x256xf32>
    %40 = vector.shape_cast %39 : vector<1x40x256xf32> to vector<40x256xf32>
    %41 = vector.extract_strided_slice %40 {offsets = [0, 0], sizes = [32, 256], strides = [1, 1]} : vector<40x256xf32> to vector<32x256xf32>
    %cst_27 = arith.constant dense<0.000000e+00> : vector<8x256xf32>
    %42 = tpu.matmul %1, %41, %cst_27 {dimension_numbers = #tpu.dot_dimension_numbers<[1], [0], [0], [1], [0, 0, 1, 1], [], []>} : vector<8x32xf32>, vector<32x256xf32>, vector<8x256xf32> -> vector<8x256xf32>
    %43 = vector.extract_strided_slice %40 {offsets = [32, 0], sizes = [8, 256], strides = [1, 1]} : vector<40x256xf32> to vector<8x256xf32>
    %cst_28 = arith.constant dense<0.000000e+00> : vector<8x256xf32>
    %44 = tpu.matmul %38, %43, %cst_28 {dimension_numbers = #tpu.dot_dimension_numbers<[1], [0], [0], [1], [0, 0, 1, 1], [], []>} : vector<8x8xf32>, vector<8x256xf32>, vector<8x256xf32> -> vector<8x256xf32>
    %45 = arith.addf %42, %44 : vector<8x256xf32>
    %c3 = arith.constant 3 : index
    %c0_29 = arith.constant 0 : index
    %46 = vector.load %arg11[%c3, %c0_29] : memref<13x512xf32, #tpu.memory_space<vmem>>, vector<1x256xf32>
    %47 = vector.broadcast %46 : vector<1x256xf32> to vector<8x256xf32>
    %48 = arith.addf %45, %47 : vector<8x256xf32>
    %cst_30 = arith.constant 0.000000e+00 : f32
    %49 = vector.broadcast %cst_30 : f32 to vector<8x256xf32>
    %50 = arith.maximumf %48, %49 : vector<8x256xf32>
    %c0_31 = arith.constant 0 : index
    %c0_32 = arith.constant 0 : index
    %c0_33 = arith.constant 0 : index
    %51 = vector.load %arg7[%c0_31, %c0_32, %c0_33] : memref<3x256x512xf32, #tpu.memory_space<vmem>>, vector<1x256x512xf32>
    %52 = vector.shape_cast %51 : vector<1x256x512xf32> to vector<256x512xf32>
    %cst_34 = arith.constant dense<0.000000e+00> : vector<8x512xf32>
    %53 = tpu.matmul %50, %52, %cst_34 {dimension_numbers = #tpu.dot_dimension_numbers<[1], [0], [0], [1], [0, 0, 1, 1], [], []>} : vector<8x256xf32>, vector<256x512xf32>, vector<8x512xf32> -> vector<8x512xf32>
    %c4 = arith.constant 4 : index
    %c0_35 = arith.constant 0 : index
    %54 = vector.load %arg11[%c4, %c0_35] : memref<13x512xf32, #tpu.memory_space<vmem>>, vector<1x512xf32>
    %55 = vector.broadcast %54 : vector<1x512xf32> to vector<8x512xf32>
    %56 = arith.addf %53, %55 : vector<8x512xf32>
    %cst_36 = arith.constant 0.000000e+00 : f32
    %57 = vector.broadcast %cst_36 : f32 to vector<8x512xf32>
    %58 = arith.maximumf %56, %57 : vector<8x512xf32>
    %c0_37 = arith.constant 0 : index
    %c0_38 = arith.constant 0 : index
    %c0_39 = arith.constant 0 : index
    %59 = vector.load %arg10[%c0_37, %c0_38, %c0_39] : memref<2x512x16xf32, #tpu.memory_space<vmem>>, vector<1x512x16xf32>
    %60 = vector.shape_cast %59 : vector<1x512x16xf32> to vector<512x16xf32>
    %cst_40 = arith.constant dense<0.000000e+00> : vector<8x16xf32>
    %61 = tpu.matmul %58, %60, %cst_40 {dimension_numbers = #tpu.dot_dimension_numbers<[1], [0], [0], [1], [0, 0, 1, 1], [], []>} : vector<8x512xf32>, vector<512x16xf32>, vector<8x16xf32> -> vector<8x16xf32>
    %c5 = arith.constant 5 : index
    %c0_41 = arith.constant 0 : index
    %62 = vector.load %arg11[%c5, %c0_41] : memref<13x512xf32, #tpu.memory_space<vmem>>, vector<1x16xf32>
    %63 = vector.broadcast %62 : vector<1x16xf32> to vector<8x16xf32>
    %64 = arith.addf %61, %63 : vector<8x16xf32>
    %c0_42 = arith.constant 0 : index
    %c0_43 = arith.constant 0 : index
    %65 = vector.load %arg5[%c0_42, %c0_43] : memref<32x256xf32, #tpu.memory_space<vmem>>, vector<32x256xf32>
    %cst_44 = arith.constant dense<0.000000e+00> : vector<8x256xf32>
    %66 = tpu.matmul %1, %65, %cst_44 {dimension_numbers = #tpu.dot_dimension_numbers<[1], [0], [0], [1], [0, 0, 1, 1], [], []>} : vector<8x32xf32>, vector<32x256xf32>, vector<8x256xf32> -> vector<8x256xf32>
    %c6 = arith.constant 6 : index
    %c0_45 = arith.constant 0 : index
    %67 = vector.load %arg11[%c6, %c0_45] : memref<13x512xf32, #tpu.memory_space<vmem>>, vector<1x256xf32>
    %68 = vector.broadcast %67 : vector<1x256xf32> to vector<8x256xf32>
    %69 = arith.addf %66, %68 : vector<8x256xf32>
    %cst_46 = arith.constant 0.000000e+00 : f32
    %70 = vector.broadcast %cst_46 : f32 to vector<8x256xf32>
    %71 = arith.maximumf %69, %70 : vector<8x256xf32>
    %c0_47 = arith.constant 0 : index
    %c768 = arith.constant 768 : index
    %72 = vector.load %arg3[%c0_47, %c768] : memref<8x1792xf32, #tpu.memory_space<vmem>>, vector<8x256xf32>
    %73 = arith.mulf %71, %72 : vector<8x256xf32>
    %c2_48 = arith.constant 2 : index
    %c0_49 = arith.constant 0 : index
    %c0_50 = arith.constant 0 : index
    %74 = vector.load %arg7[%c2_48, %c0_49, %c0_50] : memref<3x256x512xf32, #tpu.memory_space<vmem>>, vector<1x256x512xf32>
    %75 = vector.shape_cast %74 : vector<1x256x512xf32> to vector<256x512xf32>
    %cst_51 = arith.constant dense<0.000000e+00> : vector<8x512xf32>
    %76 = tpu.matmul %73, %75, %cst_51 {dimension_numbers = #tpu.dot_dimension_numbers<[1], [0], [0], [1], [0, 0, 1, 1], [], []>} : vector<8x256xf32>, vector<256x512xf32>, vector<8x512xf32> -> vector<8x512xf32>
    %c7 = arith.constant 7 : index
    %c0_52 = arith.constant 0 : index
    %77 = vector.load %arg11[%c7, %c0_52] : memref<13x512xf32, #tpu.memory_space<vmem>>, vector<1x512xf32>
    %78 = vector.broadcast %77 : vector<1x512xf32> to vector<8x512xf32>
    %79 = arith.addf %76, %78 : vector<8x512xf32>
    %cst_53 = arith.constant 0.000000e+00 : f32
    %80 = vector.broadcast %cst_53 : f32 to vector<8x512xf32>
    %81 = arith.maximumf %79, %80 : vector<8x512xf32>
    %c0_54 = arith.constant 0 : index
    %c1024 = arith.constant 1024 : index
    %82 = vector.load %arg3[%c0_54, %c1024] : memref<8x1792xf32, #tpu.memory_space<vmem>>, vector<8x512xf32>
    %83 = arith.mulf %81, %82 : vector<8x512xf32>
    %c1_55 = arith.constant 1 : index
    %c0_56 = arith.constant 0 : index
    %c0_57 = arith.constant 0 : index
    %84 = vector.load %arg6[%c1_55, %c0_56, %c0_57] : memref<2x512x256xf32, #tpu.memory_space<vmem>>, vector<1x512x256xf32>
    %85 = vector.shape_cast %84 : vector<1x512x256xf32> to vector<512x256xf32>
    %cst_58 = arith.constant dense<0.000000e+00> : vector<8x256xf32>
    %86 = tpu.matmul %83, %85, %cst_58 {dimension_numbers = #tpu.dot_dimension_numbers<[1], [0], [0], [1], [0, 0, 1, 1], [], []>} : vector<8x512xf32>, vector<512x256xf32>, vector<8x256xf32> -> vector<8x256xf32>
    %c8 = arith.constant 8 : index
    %c0_59 = arith.constant 0 : index
    %87 = vector.load %arg11[%c8, %c0_59] : memref<13x512xf32, #tpu.memory_space<vmem>>, vector<1x256xf32>
    %88 = vector.broadcast %87 : vector<1x256xf32> to vector<8x256xf32>
    %89 = arith.addf %86, %88 : vector<8x256xf32>
    %cst_60 = arith.constant 0.000000e+00 : f32
    %90 = vector.broadcast %cst_60 : f32 to vector<8x256xf32>
    %91 = arith.maximumf %89, %90 : vector<8x256xf32>
    %c0_61 = arith.constant 0 : index
    %c1536 = arith.constant 1536 : index
    %92 = vector.load %arg3[%c0_61, %c1536] : memref<8x1792xf32, #tpu.memory_space<vmem>>, vector<8x256xf32>
    %93 = arith.mulf %91, %92 : vector<8x256xf32>
    %c1_62 = arith.constant 1 : index
    %c0_63 = arith.constant 0 : index
    %c0_64 = arith.constant 0 : index
    %94 = vector.load %arg8[%c1_62, %c0_63, %c0_64] : memref<2x256x16xf32, #tpu.memory_space<vmem>>, vector<1x256x16xf32>
    %95 = vector.shape_cast %94 : vector<1x256x16xf32> to vector<256x16xf32>
    %cst_65 = arith.constant dense<0.000000e+00> : vector<8x16xf32>
    %96 = tpu.matmul %93, %95, %cst_65 {dimension_numbers = #tpu.dot_dimension_numbers<[1], [0], [0], [1], [0, 0, 1, 1], [], []>} : vector<8x256xf32>, vector<256x16xf32>, vector<8x16xf32> -> vector<8x16xf32>
    %c9 = arith.constant 9 : index
    %c0_66 = arith.constant 0 : index
    %97 = vector.load %arg11[%c9, %c0_66] : memref<13x512xf32, #tpu.memory_space<vmem>>, vector<1x16xf32>
    %98 = vector.broadcast %97 : vector<1x16xf32> to vector<8x16xf32>
    %99 = arith.addf %96, %98 : vector<8x16xf32>
    %cst_67 = arith.constant 1.000000e+00 : f32
    %100 = vector.broadcast %cst_67 : f32 to vector<8x16xf32>
    %101 = arith.mulf %99, %100 : vector<8x16xf32>
    %102 = vector.extract_strided_slice %101 {offsets = [0, 0], sizes = [8, 8], strides = [1, 1]} : vector<8x16xf32> to vector<8x8xf32>
    %103 = vector.extract_strided_slice %101 {offsets = [0, 8], sizes = [8, 8], strides = [1, 1]} : vector<8x16xf32> to vector<8x8xf32>
    %cst_68 = arith.constant 5.000000e-01 : f32
    %104 = vector.broadcast %cst_68 : f32 to vector<8x8xf32>
    %105 = arith.mulf %104, %103 : vector<8x8xf32>
    %106 = math.exp %105 : vector<8x8xf32>
    %107 = arith.mulf %4, %106 : vector<8x8xf32>
    %108 = arith.addf %102, %107 : vector<8x8xf32>
    %c1_69 = arith.constant 1 : index
    %c0_70 = arith.constant 0 : index
    %c0_71 = arith.constant 0 : index
    %109 = vector.load %arg9[%c1_69, %c0_70, %c0_71] : memref<2x40x256xf32, #tpu.memory_space<vmem>>, vector<1x40x256xf32>
    %110 = vector.shape_cast %109 : vector<1x40x256xf32> to vector<40x256xf32>
    %111 = vector.extract_strided_slice %110 {offsets = [0, 0], sizes = [32, 256], strides = [1, 1]} : vector<40x256xf32> to vector<32x256xf32>
    %cst_72 = arith.constant dense<0.000000e+00> : vector<8x256xf32>
    %112 = tpu.matmul %1, %111, %cst_72 {dimension_numbers = #tpu.dot_dimension_numbers<[1], [0], [0], [1], [0, 0, 1, 1], [], []>} : vector<8x32xf32>, vector<32x256xf32>, vector<8x256xf32> -> vector<8x256xf32>
    %113 = vector.extract_strided_slice %110 {offsets = [32, 0], sizes = [8, 256], strides = [1, 1]} : vector<40x256xf32> to vector<8x256xf32>
    %cst_73 = arith.constant dense<0.000000e+00> : vector<8x256xf32>
    %114 = tpu.matmul %108, %113, %cst_73 {dimension_numbers = #tpu.dot_dimension_numbers<[1], [0], [0], [1], [0, 0, 1, 1], [], []>} : vector<8x8xf32>, vector<8x256xf32>, vector<8x256xf32> -> vector<8x256xf32>
    %115 = arith.addf %112, %114 : vector<8x256xf32>
    %c10 = arith.constant 10 : index
    %c0_74 = arith.constant 0 : index
    %116 = vector.load %arg11[%c10, %c0_74] : memref<13x512xf32, #tpu.memory_space<vmem>>, vector<1x256xf32>
    %117 = vector.broadcast %116 : vector<1x256xf32> to vector<8x256xf32>
    %118 = arith.addf %115, %117 : vector<8x256xf32>
    %cst_75 = arith.constant 0.000000e+00 : f32
    %119 = vector.broadcast %cst_75 : f32 to vector<8x256xf32>
    %120 = arith.maximumf %118, %119 : vector<8x256xf32>
    %c1_76 = arith.constant 1 : index
    %c0_77 = arith.constant 0 : index
    %c0_78 = arith.constant 0 : index
    %121 = vector.load %arg7[%c1_76, %c0_77, %c0_78] : memref<3x256x512xf32, #tpu.memory_space<vmem>>, vector<1x256x512xf32>
    %122 = vector.shape_cast %121 : vector<1x256x512xf32> to vector<256x512xf32>
    %cst_79 = arith.constant dense<0.000000e+00> : vector<8x512xf32>
    %123 = tpu.matmul %120, %122, %cst_79 {dimension_numbers = #tpu.dot_dimension_numbers<[1], [0], [0], [1], [0, 0, 1, 1], [], []>} : vector<8x256xf32>, vector<256x512xf32>, vector<8x512xf32> -> vector<8x512xf32>
    %c11 = arith.constant 11 : index
    %c0_80 = arith.constant 0 : index
    %124 = vector.load %arg11[%c11, %c0_80] : memref<13x512xf32, #tpu.memory_space<vmem>>, vector<1x512xf32>
    %125 = vector.broadcast %124 : vector<1x512xf32> to vector<8x512xf32>
    %126 = arith.addf %123, %125 : vector<8x512xf32>
    %cst_81 = arith.constant 0.000000e+00 : f32
    %127 = vector.broadcast %cst_81 : f32 to vector<8x512xf32>
    %128 = arith.maximumf %126, %127 : vector<8x512xf32>
    %c1_82 = arith.constant 1 : index
    %c0_83 = arith.constant 0 : index
    %c0_84 = arith.constant 0 : index
    %129 = vector.load %arg10[%c1_82, %c0_83, %c0_84] : memref<2x512x16xf32, #tpu.memory_space<vmem>>, vector<1x512x16xf32>
    %130 = vector.shape_cast %129 : vector<1x512x16xf32> to vector<512x16xf32>
    %cst_85 = arith.constant dense<0.000000e+00> : vector<8x16xf32>
    %131 = tpu.matmul %128, %130, %cst_85 {dimension_numbers = #tpu.dot_dimension_numbers<[1], [0], [0], [1], [0, 0, 1, 1], [], []>} : vector<8x512xf32>, vector<512x16xf32>, vector<8x16xf32> -> vector<8x16xf32>
    %c12 = arith.constant 12 : index
    %c0_86 = arith.constant 0 : index
    %132 = vector.load %arg11[%c12, %c0_86] : memref<13x512xf32, #tpu.memory_space<vmem>>, vector<1x16xf32>
    %133 = vector.broadcast %132 : vector<1x16xf32> to vector<8x16xf32>
    %134 = arith.addf %131, %133 : vector<8x16xf32>
    %cst_87 = arith.constant 0.000000e+00 : f32
    %135 = vector.broadcast %cst_87 : f32 to vector<8x48xf32>
    %136 = tpu.concatenate %64, %32, %33, %38, %134, %102, %103, %108, %135 in 1 : vector<8x16xf32>, vector<8x8xf32>, vector<8x8xf32>, vector<8x8xf32>, vector<8x16xf32>, vector<8x8xf32>, vector<8x8xf32>, vector<8x8xf32>, vector<8x48xf32> -> vector<8x128xf32>
    %c0_88 = arith.constant 0 : index
    %c0_89 = arith.constant 0 : index
    %137 = vector.load %arg12[%c0_88, %c0_89] : memref<8x128xf32, #tpu.memory_space<vmem>>, vector<8x128xf32>
    tpu.vector_store %arg12[%c0_88, %c0_89], %136 {strides = array<i32>} : memref<8x128xf32, #tpu.memory_space<vmem>>, vector<8x128xf32>,
    return
  }
  func.func @transform_0(%arg0: i32) -> (i32, i32) {
    %c0_i32 = arith.constant 0 : i32
    %c0_i32_0 = arith.constant 0 : i32
    return %arg0, %c0_i32 : i32, i32
  }
  func.func @transform_1(%arg0: i32) -> (i32, i32) {
    %c0_i32 = arith.constant 0 : i32
    %c0_i32_0 = arith.constant 0 : i32
    return %arg0, %c0_i32 : i32, i32
  }
  func.func @transform_2(%arg0: i32) -> (i32, i32) {
    %c0_i32 = arith.constant 0 : i32
    %c0_i32_0 = arith.constant 0 : i32
    return %arg0, %c0_i32 : i32, i32
  }
  func.func @transform_3(%arg0: i32) -> (i32, i32) {
    %c0_i32 = arith.constant 0 : i32
    %c0_i32_0 = arith.constant 0 : i32
    %c0_i32_1 = arith.constant 0 : i32
    return %c0_i32, %c0_i32_0 : i32, i32
  }
  func.func @transform_4(%arg0: i32) -> (i32, i32) {
    %c0_i32 = arith.constant 0 : i32
    %c0_i32_0 = arith.constant 0 : i32
    %c0_i32_1 = arith.constant 0 : i32
    return %c0_i32, %c0_i32_0 : i32, i32
  }
  func.func @transform_5(%arg0: i32) -> (i32, i32, i32) {
    %c0_i32 = arith.constant 0 : i32
    %c0_i32_0 = arith.constant 0 : i32
    %c0_i32_1 = arith.constant 0 : i32
    %c0_i32_2 = arith.constant 0 : i32
    return %c0_i32, %c0_i32_0, %c0_i32_1 : i32, i32, i32
  }
  func.func @transform_6(%arg0: i32) -> (i32, i32, i32) {
    %c0_i32 = arith.constant 0 : i32
    %c0_i32_0 = arith.constant 0 : i32
    %c0_i32_1 = arith.constant 0 : i32
    %c0_i32_2 = arith.constant 0 : i32
    return %c0_i32, %c0_i32_0, %c0_i32_1 : i32, i32, i32
  }
  func.func @transform_7(%arg0: i32) -> (i32, i32, i32) {
    %c0_i32 = arith.constant 0 : i32
    %c0_i32_0 = arith.constant 0 : i32
    %c0_i32_1 = arith.constant 0 : i32
    %c0_i32_2 = arith.constant 0 : i32
    return %c0_i32, %c0_i32_0, %c0_i32_1 : i32, i32, i32
  }
  func.func @transform_8(%arg0: i32) -> (i32, i32, i32) {
    %c0_i32 = arith.constant 0 : i32
    %c0_i32_0 = arith.constant 0 : i32
    %c0_i32_1 = arith.constant 0 : i32
    %c0_i32_2 = arith.constant 0 : i32
    return %c0_i32, %c0_i32_0, %c0_i32_1 : i32, i32, i32
  }
  func.func @transform_9(%arg0: i32) -> (i32, i32, i32) {
    %c0_i32 = arith.constant 0 : i32
    %c0_i32_0 = arith.constant 0 : i32
    %c0_i32_1 = arith.constant 0 : i32
    %c0_i32_2 = arith.constant 0 : i32
    return %c0_i32, %c0_i32_0, %c0_i32_1 : i32, i32, i32
  }
  func.func @transform_10(%arg0: i32) -> (i32, i32) {
    %c0_i32 = arith.constant 0 : i32
    %c0_i32_0 = arith.constant 0 : i32
    %c0_i32_1 = arith.constant 0 : i32
    return %c0_i32, %c0_i32_0 : i32, i32
  }
  func.func @transform_11(%arg0: i32) -> (i32, i32) {
    %c0_i32 = arith.constant 0 : i32
    %c0_i32_0 = arith.constant 0 : i32
    return %arg0, %c0_i32 : i32, i32
  }
}

</mosaic_0001>

<bundles_post_ra>
// kernel: tpu_custom_call.1
= control target key start
LH: loop header
LB: loop body
LE: loop exit
PB: predicated region body
PF: predicated region fallthrough
CT: control target
= control target key end

     0   :  { %16 = vsyncpa [#allocation3], 0  ;;  %s5376_s0 = inlined_call_operand.hbm [shape: f32[8,48], index: 0, kind: input, shape index: {}]   ;;  %s5377_s1 = inlined_call_operand.hbm [shape: f32[8,16], index: 1, kind: input, shape index: {}]   ;;  %s5378_s2 = inlined_call_operand.hbm [shape: f32[8,1792], index: 2, kind: input, shape index: {}]   ;;  %s5379_s3 = inlined_call_operand.hbm [shape: f32[48,512], index: 3, kind: input, shape index: {}]   ;;  %s5380_s4 = inlined_call_operand.hbm [shape: f32[32,256], index: 4, kind: input, shape index: {}]   ;;  %s5381_s5 = inlined_call_operand.hbm [shape: f32[2,512,256], index: 5, kind: input, shape index: {}]   ;;  %s5382_s6 = inlined_call_operand.hbm [shape: f32[3,256,512], index: 6, kind: input, shape index: {}]   ;;  %s5383_s7 = inlined_call_operand.vmem [shape: f32[2,256,16], index: 7, kind: input, shape index: {}]   ;;  %s5384_s8 = inlined_call_operand.hbm [shape: f32[2,40,256], index: 8, kind: input, shape index: {}]   ;;  %s5385_s9 = inlined_call_operand.vmem [shape: f32[2,512,16], index: 9, kind: input, shape index: {}]   ;;  %s5386_s10 = inlined_call_operand.hbm [shape: f32[13,512], index: 10, kind: input, shape index: {}]   ;;  %s5387_s11 = inlined_call_operand.hbm [shape: f32[8,128], index: 11, kind: output, shape index: {}]  }
   0x1   :  { %17 = vsyncpa [#allocation6], 0 }
   0x2   :  { %18 = vsyncpa [#allocation9], 0 }
   0x3   :  { %19 = vsyncpa [#allocation12], 0 }
   0x4   :  { %20 = vsyncpa [#allocation15], 0 }
   0x5   :  { %21 = vsyncpa [#allocation4], 0  ;;  %s4440_s17 = smov [#allocation5]   ;;  %s4441_s19 = smov [#allocation8]  }
   0x6   :  { %s38_s18 = sshll.u32 %s4440_s17, 4  ;;  %s57_s20 = sshll.u32 %s4441_s19, 4  ;;  %s39_s18 = int_to_ptr.vmem [resolvable:$true] %s38_s18  ;;  %s4519_s20 = int_to_ptr.vmem [resolvable:$true] %s57_s20 }
   0x7   :  { %s4208_s23 = scalar_lea.hbm %s5377_s1, 128 }
   0x8   :  { %p4209_p0 = scmp.ne.s32.totalorder %s5377_s1, %s4208_s23  ;;  %p4212_p1 = scmp.lt.u32.totalorder %s4208_s23, %s5377_s1 }
   0xa   :  { %p4214_p2 = pnand %p4212_p1, %p4209_p0 }
   0xc   :  { %4217 = shalt.err (!%p4214_p2)
}
   0xd   :  { %s4218_s28 = scalar_lea.vmem %s39_s18, 128  ;;  %p4223_p4 = scmp.lt.s32.totalorder %s39_s18, %s39_s18 }
   0xe   :  { %p4219_p3 = scmp.ne.s32.totalorder %s39_s18, %s4218_s28  ;;  %p4224_p5 = scmp.lt.s32.totalorder %s4218_s28, %s4218_s28 }
  0x10   :  { %p4225_p6 = por %p4224_p5, %p4223_p4 }
  0x12   :  { %p4226_p7 = pnand %p4225_p6, %p4219_p3 }
  0x14   :  { %4229 = shalt.err (!%p4226_p7)
}
  0x15   :  { %41 = dma.hbm_to_vmem [thread:$0]  %s5377_s1, 128, %s39_s18, [#allocation6]  }
  0x16   :  { %s4230_s14 = scalar_lea.hbm %s5379_s3, 3072 }
  0x17   :  { %p4231_p8 = scmp.ne.s32.totalorder %s5379_s3, %s4230_s14  ;;  %p4234_p9 = scmp.lt.u32.totalorder %s4230_s14, %s5379_s3 }
  0x19   :  { %p4236_p10 = pnand %p4234_p9, %p4231_p8 }
  0x1b   :  { %4239 = shalt.err (!%p4236_p10)
}
  0x1c   :  { %s4240_s21 = scalar_lea.vmem %s4519_s20, 3072  ;;  %p4245_p12 = scmp.lt.s32.totalorder %s4519_s20, %s4519_s20 }
  0x1d   :  { %p4241_p11 = scmp.ne.s32.totalorder %s4519_s20, %s4240_s21  ;;  %p4246_p13 = scmp.lt.s32.totalorder %s4240_s21, %s4240_s21 }
  0x1f   :  { %p4247_p0 = por %p4246_p13, %p4245_p12 }
  0x21   :  { %p4248_p1 = pnand %p4247_p0, %p4241_p11 }
  0x23   :  { %4251 = shalt.err (!%p4248_p1)
}
  0x24   :  { %s4442_s1 = smov 512   ;;  %s4443_s18 = smov 32  }
  0x25   :  { %63 = dma.hbm_to_vmem [thread:$0]  %s5379_s3, 3072, %s4519_s20, [#allocation9], %s4442_s1, %s4442_s1, %s4443_s18  }
  0x26   :  { %s4444_s24 = smov [#allocation11]   ;;  %s4445_s26 = smov [#allocation14]  }
  0x27   :  { %s81_s25 = sshll.u32 %s4444_s24, 4  ;;  %s107_s27 = sshll.u32 %s4445_s26, 4  ;;  %s82_s25 = int_to_ptr.vmem [resolvable:$true] %s81_s25  ;;  %s4553_s27 = int_to_ptr.vmem [resolvable:$true] %s107_s27 }
  0x28   :  { %s4252_s30 = scalar_lea.hbm %s5381_s5, 32768 }
  0x29   :  { %p4253_p2 = scmp.ne.s32.totalorder %s5381_s5, %s4252_s30  ;;  %p4256_p3 = scmp.lt.u32.totalorder %s4252_s30, %s5381_s5 }
  0x2b   :  { %p4258_p4 = pnand %p4256_p3, %p4253_p2 }
  0x2d   :  { %4261 = shalt.err (!%p4258_p4)
}
  0x2e   :  { %s4262_s3 = scalar_lea.vmem %s82_s25, 32768  ;;  %p4267_p6 = scmp.lt.s32.totalorder %s82_s25, %s82_s25 }
  0x2f   :  { %p4263_p5 = scmp.ne.s32.totalorder %s82_s25, %s4262_s3  ;;  %p4268_p7 = scmp.lt.s32.totalorder %s4262_s3, %s4262_s3 }
  0x31   :  { %p4269_p8 = por %p4268_p7, %p4267_p6 }
  0x33   :  { %p4270_p9 = pnand %p4269_p8, %p4263_p5 }
  0x35   :  { %4273 = shalt.err (!%p4270_p9)
}
  0x36   :  { %s4446_s20 = smov 256   ;;  %s4447_s16 = smov 16  }
  0x37   :  { %87 = dma.hbm_to_vmem [thread:$0]  %s5381_s5, 32768, %s82_s25, [#allocation12], %s4446_s20, %s4446_s20, %s4447_s16  }
  0x38   :  { %s4274_s23 = scalar_lea.hbm %s5384_s8, 2560 }
  0x39   :  { %p4275_p10 = scmp.ne.s32.totalorder %s5384_s8, %s4274_s23  ;;  %p4278_p11 = scmp.lt.u32.totalorder %s4274_s23, %s5384_s8 }
  0x3b   :  { %p4280_p12 = pnand %p4278_p11, %p4275_p10 }
  0x3d   :  { %4283 = shalt.err (!%p4280_p12)
}
  0x3e   :  { %s4284_s30 = scalar_lea.vmem %s4553_s27, 2560  ;;  %p4289_p0 = scmp.lt.s32.totalorder %s4553_s27, %s4553_s27 }
  0x3f   :  { %p4285_p13 = scmp.ne.s32.totalorder %s4553_s27, %s4284_s30  ;;  %p4290_p1 = scmp.lt.s32.totalorder %s4284_s30, %s4284_s30 }
  0x41   :  { %p4291_p2 = por %p4290_p1, %p4289_p0 }
  0x43   :  { %p4292_p3 = pnand %p4291_p2, %p4285_p13 }
  0x45   :  { %4295 = shalt.err (!%p4292_p3)
}
  0x46   :  { %113 = dma.hbm_to_vmem [thread:$0]  %s5384_s8, 2560, %s4553_s27, [#allocation15], %s4446_s20, %s4446_s20, %s4447_s16  }
  0x47   :  { %s4448_s12 = smov [#allocation2]   ;;  %s4449_s14 = smov [#allocation7]  }
  0x48   :  { %s28_s13 = sshll.u32 %s4448_s12, 4  ;;  %s48_s15 = sshll.u32 %s4449_s14, 4  ;;  %s29_s13 = int_to_ptr.vmem [resolvable:$true] %s28_s13  ;;  %s49_s15 = int_to_ptr.vmem [resolvable:$true] %s48_s15 }
  0x49   :  { %s4296_s19 = scalar_lea.hbm %s5376_s0, 128 }
  0x4a   :  { %p4297_p4 = scmp.ne.s32.totalorder %s5376_s0, %s4296_s19  ;;  %p4300_p5 = scmp.lt.u32.totalorder %s4296_s19, %s5376_s0 }
  0x4c   :  { %p4302_p6 = pnand %p4300_p5, %p4297_p4 }
  0x4e   :  { %4305 = shalt.err (!%p4302_p6)
}
  0x4f   :  { %s4306_s8 = scalar_lea.vmem %s29_s13, 128  ;;  %p4311_p8 = scmp.lt.s32.totalorder %s29_s13, %s29_s13 }
  0x50   :  { %p4307_p7 = scmp.ne.s32.totalorder %s29_s13, %s4306_s8  ;;  %p4312_p9 = scmp.lt.s32.totalorder %s4306_s8, %s4306_s8 }
  0x52   :  { %p4313_p10 = por %p4312_p9, %p4311_p8 }
  0x54   :  { %p4314_p11 = pnand %p4313_p10, %p4307_p7 }
  0x56   :  { %4317 = shalt.err (!%p4314_p11)
}
  0x57   :  { %31 = dma.hbm_to_vmem [thread:$0]  %s5376_s0, 128, %s29_s13, [#allocation3]  }
  0x58   :  { %s4318_s30 = scalar_lea.hbm %s5378_s2, 1792 }
  0x59   :  { %p4319_p12 = scmp.ne.s32.totalorder %s5378_s2, %s4318_s30  ;;  %p4322_p13 = scmp.lt.u32.totalorder %s4318_s30, %s5378_s2 }
  0x5b   :  { %p4324_p0 = pnand %p4322_p13, %p4319_p12 }
  0x5d   :  { %4327 = shalt.err (!%p4324_p0)
}
  0x5e   :  { %s4328_s3 = scalar_lea.vmem %s49_s15, 1792  ;;  %p4333_p2 = scmp.lt.s32.totalorder %s49_s15, %s49_s15 }
  0x5f   :  { %p4329_p1 = scmp.ne.s32.totalorder %s49_s15, %s4328_s3  ;;  %p4334_p3 = scmp.lt.s32.totalorder %s4328_s3, %s4328_s3 }
  0x61   :  { %p4335_p4 = por %p4334_p3, %p4333_p2 }
  0x63   :  { %p4336_p5 = pnand %p4335_p4, %p4329_p1 }
  0x65   :  { %4339 = shalt.err (!%p4336_p5)
}
  0x66   :  { %51 = dma.hbm_to_vmem [thread:$0]  %s5378_s2, 1792, %s49_s15, [#allocation6]  }
  0x67   :  { %s4450_s17 = smov [#allocation10]   ;;  %s4451_s21 = smov [#allocation13]  }
  0x68   :  { %s69_s19 = sshll.u32 %s4450_s17, 4  ;;  %s93_s22 = sshll.u32 %s4451_s21, 4  ;;  %s70_s19 = int_to_ptr.vmem [resolvable:$true] %s69_s19  ;;  %s4614_s22 = int_to_ptr.vmem [resolvable:$true] %s93_s22 }
  0x69   :  { %s4340_s8 = scalar_lea.hbm %s5380_s4, 1024 }
  0x6a   :  { %p4341_p6 = scmp.ne.s32.totalorder %s5380_s4, %s4340_s8  ;;  %p4344_p7 = scmp.lt.u32.totalorder %s4340_s8, %s5380_s4 }
  0x6c   :  { %p4346_p8 = pnand %p4344_p7, %p4341_p6 }
  0x6e   :  { %4349 = shalt.err (!%p4346_p8)
}
  0x6f   :  { %s4350_s2 = scalar_lea.vmem %s70_s19, 1024  ;;  %p4355_p10 = scmp.lt.s32.totalorder %s70_s19, %s70_s19 }
  0x70   :  { %p4351_p9 = scmp.ne.s32.totalorder %s70_s19, %s4350_s2  ;;  %p4356_p11 = scmp.lt.s32.totalorder %s4350_s2, %s4350_s2 }
  0x72   :  { %p4357_p12 = por %p4356_p11, %p4355_p10 }
  0x74   :  { %p4358_p13 = pnand %p4357_p12, %p4351_p9 }
  0x76   :  { %4361 = shalt.err (!%p4358_p13)
}
  0x77   :  { %75 = dma.hbm_to_vmem [thread:$0]  %s5380_s4, 1024, %s70_s19, [#allocation9], %s4446_s20, %s4446_s20, %s4447_s16  }
  0x78   :  { %s4362_s12 = scalar_lea.hbm %s5382_s6, 49152 }
  0x79   :  { %p4363_p0 = scmp.ne.s32.totalorder %s5382_s6, %s4362_s12  ;;  %p4366_p1 = scmp.lt.u32.totalorder %s4362_s12, %s5382_s6 }
  0x7b   :  { %p4368_p2 = pnand %p4366_p1, %p4363_p0 }
  0x7d   :  { %4371 = shalt.err (!%p4368_p2)
}
  0x7e   :  { %s4372_s17 = scalar_lea.vmem %s4614_s22, 49152  ;;  %p4377_p4 = scmp.lt.s32.totalorder %s4614_s22, %s4614_s22 }
  0x7f   :  { %p4373_p3 = scmp.ne.s32.totalorder %s4614_s22, %s4372_s17  ;;  %p4378_p5 = scmp.lt.s32.totalorder %s4372_s17, %s4372_s17 }
  0x81   :  { %p4379_p6 = por %p4378_p5, %p4377_p4 }
  0x83   :  { %p4380_p7 = pnand %p4379_p6, %p4373_p3 }
  0x85   :  { %4383 = shalt.err (!%p4380_p7)
}
  0x86   :  { %99 = dma.hbm_to_vmem [thread:$0]  %s5382_s6, 49152, %s4614_s22, [#allocation12], %s4442_s1, %s4442_s1, %s4443_s18  }
  0x87   :  { %s4452_s19 = smov [#allocation16]   ;;  %s4384_s8 = scalar_lea.hbm %s5386_s10, 1024 }
  0x88   :  { %s121_s21 = sshll.u32 %s4452_s19, 4  ;;  %p4385_p8 = scmp.ne.s32.totalorder %s5386_s10, %s4384_s8  ;;  %s122_s21 = int_to_ptr.vmem [resolvable:$true] %s121_s21 }
  0x89   :  { %p4388_p9 = scmp.lt.u32.totalorder %s4384_s8, %s5386_s10 }
  0x8b   :  { %p4390_p10 = pnand %p4388_p9, %p4385_p8 }
  0x8d   :  { %4393 = shalt.err (!%p4390_p10)
}
  0x8e   :  { %s4394_s2 = scalar_lea.vmem %s122_s21, 1024  ;;  %p4399_p12 = scmp.lt.s32.totalorder %s122_s21, %s122_s21 }
  0x8f   :  { %p4395_p11 = scmp.ne.s32.totalorder %s122_s21, %s4394_s2  ;;  %p4400_p13 = scmp.lt.s32.totalorder %s4394_s2, %s4394_s2 }
  0x91   :  { %p4401_p0 = por %p4400_p13, %p4399_p12 }
  0x93   :  { %p4402_p1 = pnand %p4401_p0, %p4395_p11 }
  0x95   :  { %4405 = shalt.err (!%p4402_p1)
}
  0x96   :  { %127 = dma.hbm_to_vmem [thread:$0]  %s5386_s10, 1024, %s122_s21, [#allocation15], %s4442_s1, %s4442_s1, %s4443_s18  }
  0x97   :  { %4428 = dma.done.wait [#allocation3], 128  }
  0x98   :  { %4429 = vsyncadd [#allocation3], 4294967168 }
  0x99   :  { %4430 = dma.done.wait [#allocation6], 1920  }
  0x9a   :  { %4431 = vsyncadd [#allocation6], 4294965376 }
  0x9b   :  { %4432 = dma.done.wait [#allocation9], 4096  }
  0x9c   :  { %4433 = vsyncadd [#allocation9], 4294963200 }
  0x9d   :  { %4434 = dma.done.wait [#allocation12], 81920  }
  0x9e   :  { %4435 = vsyncadd [#allocation12], 4294885376 }
  0x9f   :  { %4436 = dma.done.wait [#allocation15], 3584  }
  0xa0   :  { %4437 = vsyncadd [#allocation15], 4294963712  ;;  %v4453_v0 = vmov 0.0   ;;  %v158_v1 = vld [vmem:[#allocation8 + $0x8] sm:$0xff]  ;;  %v157_v3 = vld [vmem:[#allocation8] sm:$0xff]  ;;  %vm203_vm0 = vcmask 392192  }
  0xa1   :  { %271 = vmatprep.mubr.f32.mxu0 %v4453_v0  ;;  %342 = vmatprep.mubr.f32.mxu1 %v4453_v0  ;;  %v162_v2 = vld [vmem:[#allocation8 + $0x28] sm:$0xff]  ;;  %v161_v5 = vld [vmem:[#allocation8 + $0x20] sm:$0xff]  ;;  %v160_v17 = vld [vmem:[#allocation8 + $0x18] sm:$0xff]  ;;  %vm847_vm1 = vcmask 261120   ;;  %s4454_s4 = smov 120   ;;  %vm772_vm2 = vcmask 64512  }
  0xa2   :  { %v3290_v4 = vpack.c.bf16 %v162_v2, %v158_v1  ;;  %v166_v6 = vld [vmem:[#allocation8 + $0x48] sm:$0xff]  ;;  %v3292_v8 = vpack.c.bf16 %v161_v5, %v157_v3  ;;  %v165_v10 = vld [vmem:[#allocation8 + $0x40] sm:$0xff]  ;;  %v164_v18 = vld [vmem:[#allocation8 + $0x38] sm:$0xff]  ;;  %s4457_s22 = smov 72   ;;  %vm2942_vm3 = vcmask 130048   ;;  %vm2944_vm4 = vcmask 195584  }
  0xa3   :  { %v170_v7 = vld [vmem:[#allocation8 + $0x68] sm:$0xff]  ;;  %v169_v11 = vld [vmem:[#allocation8 + $0x60] sm:$0xff]  ;;  %v3302_v20 = vpack.c.bf16 %v164_v18, %v160_v17  ;;  %v159_v21 = vld [vmem:[#allocation8 + $0x10] sm:$0xff]  ;;  %vm2947_vm5 = vcmask 326656   ;;  %vm2949_vm6 = vcmask 457728   ;;  %vm2951_vm7 = vcmask 523264  }
  0xa4   :  { %v3294_v9 = vpack.c.bf16 %v170_v7, %v166_v6  ;;  %v174_v12 = vld [vmem:[#allocation8 + $0x88] sm:$0xff]  ;;  %3291 = vmatprep.subr.bf16.mxu0 %v3290_v4  ;;  %v173_v14 = vld [vmem:[#allocation8 + $0x80] sm:$0xff]  ;;  %v3296_v15 = vpack.c.bf16 %v169_v11, %v165_v10  ;;  %v163_v22 = vld [vmem:[#allocation8 + $0x30] sm:$0xff]  ;;  %vm2953_vm8 = vcmask 588800   ;;  %s4458_s10 = smov [#allocation17]   ;;  %vm2955_vm9 = vcmask 654336  }
  0xa5   :  { %v178_v13 = vld [vmem:[#allocation8 + $0xa8] sm:$0xff]  ;;  %3293 = vmatpush1.bf16.msra.mxu0 %v3292_v8  ;;  %v177_v16 = vld [vmem:[#allocation8 + $0xa0] sm:$0xff]  ;;  %v168_v23 = vld [vmem:[#allocation8 + $0x58] sm:$0xff]  ;;  %v3304_v24 = vpack.c.bf16 %v163_v22, %v159_v21  ;;  %3303 = vmatprep.subr.bf16.mxu1 %v3302_v20  ;;  %s2964_s1 = sshll.u32 %s4458_s10, 4  ;;  %s2965_s1 = int_to_ptr.vmem [resolvable:$true] %s2964_s1 }
  0xa6   :  { %3295 = vmatprep.subr.bf16.mxu0 %v3294_v9  ;;  %v3298_v19 = vpack.c.bf16 %v178_v13, %v174_v12  ;;  %v172_v25 = vld [vmem:[#allocation8 + $0x78] sm:$0xff]  ;;  %v167_v26 = vld [vmem:[#allocation8 + $0x50] sm:$0xff]  ;;  %v3300_v31 = vpack.c.bf16 %v177_v16, %v173_v14  ;;  %v362_v34 = vld [vmem:[#allocation11 + $0x8] sm:$0xff]  ;;  %s4406_s15 = scalar_lea.vmem %s2965_s1, 128  ;;  %p4411_p3 = scmp.lt.s32.totalorder %s2965_s1, %s2965_s1 }
  0xa7   :  { %v171_v27 = vld [vmem:[#allocation8 + $0x70] sm:$0xff]  ;;  %v3306_v28 = vpack.c.bf16 %v172_v25, %v168_v23  ;;  %v176_v29 = vld [vmem:[#allocation8 + $0x98] sm:$0xff]  ;;  %3305 = vmatpush1.bf16.msra.mxu1 %v3304_v24  ;;  %v361_v39 = vld [vmem:[#allocation11] sm:$0xff]  ;;  %p4407_p2 = scmp.ne.s32.totalorder %s2965_s1, %s4406_s15  ;;  %p4412_p4 = scmp.lt.s32.totalorder %s4406_s15, %s4406_s15 }
  0xa8   :  { %v180_v30 = vld [vmem:[#allocation8 + $0xb8] sm:$0xff]  ;;  %v3308_v32 = vpack.c.bf16 %v171_v27, %v167_v26  ;;  %v175_v33 = vld [vmem:[#allocation8 + $0x90] sm:$0xff]  ;;  %v366_v41 = vld [vmem:[#allocation11 + $0x28] sm:$0xff] }
  0xa9   :  { %3297 = vmatpush1.bf16.msra.mxu0 %v3296_v15  ;;  %v364_v35 = vld [vmem:[#allocation11 + $0x18] sm:$0xff]  ;;  %3307 = vmatprep.subr.bf16.mxu1 %v3306_v28  ;;  %v3310_v36 = vpack.c.bf16 %v180_v30, %v176_v29  ;;  %v179_v37 = vld [vmem:[#allocation8 + $0xb0] sm:$0xff]  ;;  %v4668_v43 = vld [vmem:[#allocation2] sm:$0xff]  ;;  %p4413_p5 = por %p4412_p4, %p4411_p3 }
  0xaa   :  { %3299 = vmatprep.subr.bf16.mxu0 %v3298_v19  ;;  %v3314_v38 = vpack.c.bf16 %v364_v35, %v362_v34  ;;  %v363_v40 = vld [vmem:[#allocation11 + $0x10] sm:$0xff]  ;;  %v368_v42 = vld [vmem:[#allocation11 + $0x38] sm:$0xff]  ;;  %v3312_v44 = vpack.c.bf16 %v179_v37, %v175_v33  ;;  %v365_v47 = vld [vmem:[#allocation11 + $0x20] sm:$0xff] }
  0xab   :  { %3309 = vmatpush1.bf16.msra.mxu1 %v3308_v32  ;;  %v3316_v45 = vpack.c.bf16 %v363_v40, %v361_v39  ;;  %v3318_v46 = vpack.c.bf16 %v368_v42, %v366_v41  ;;  %v367_v48 = vld [vmem:[#allocation11 + $0x30] sm:$0xff]  ;;  %v370_v49 = vld [vmem:[#allocation11 + $0x48] sm:$0xff]  ;;  %v372_v50 = vld [vmem:[#allocation11 + $0x58] sm:$0xff]  ;;  %p4414_p6 = pnand %p4413_p5, %p4407_p2 }
  0xac   :  { %3311 = vmatprep.subr.bf16.mxu1 %v3310_v36  ;;  %v3320_v51 = vpack.c.bf16 %v367_v48, %v365_v47  ;;  %v3322_v52 = vpack.c.bf16 %v372_v50, %v370_v49  ;;  %v369_v53 = vld [vmem:[#allocation11 + $0x40] sm:$0xff]  ;;  %v371_v54 = vld [vmem:[#allocation11 + $0x50] sm:$0xff]  ;;  %v374_v55 = vld [vmem:[#allocation11 + $0x68] sm:$0xff] }
  0xad   :  { %3301 = vmatpush1.bf16.msra.mxu0 %v3300_v31  ;;  %v376_v56 = vld [vmem:[#allocation11 + $0x78] sm:$0xff]  ;;  %v3324_v57 = vpack.c.bf16 %v371_v54, %v369_v53  ;;  %v373_v59 = vld [vmem:[#allocation11 + $0x60] sm:$0xff]  ;;  %v375_v60 = vld [vmem:[#allocation11 + $0x70] sm:$0xff] }
  0xae   :  { %3315 = vmatprep.subr.bf16.mxu0 %v3314_v38  ;;  %v3326_v58 = vpack.c.bf16 %v376_v56, %v374_v55  ;;  %v378_v61 = vld [vmem:[#allocation11 + $0x88] sm:$0xff]  ;;  %v380_v62 = vld [vmem:[#allocation11 + $0x98] sm:$0xff]  ;;  %v3328_v63 = vpack.c.bf16 %v375_v60, %v373_v59  ;;  %v377_v2 = vld [vmem:[#allocation11 + $0x80] sm:$0xff] }
  0xaf   :  { %3313 = vmatpush1.bf16.msra.mxu1 %v3312_v44  ;;  %v3330_v1 = vpack.c.bf16 %v380_v62, %v378_v61  ;;  %v379_v3 = vld [vmem:[#allocation11 + $0x90] sm:$0xff]  ;;  %v382_v4 = vld [vmem:[#allocation11 + $0xa8] sm:$0xff]  ;;  %v384_v5 = vld [vmem:[#allocation11 + $0xb8] sm:$0xff] }
  0xb0   :  { %2977 = vmatmul.mubr.msk.f32.vlgmr.msra.gmra.mrb[0].mxu0 %vm203_vm0, %v4668_v43  ;;  %v3332_v6 = vpack.c.bf16 %v379_v3, %v377_v2  ;;  %v3334_v7 = vpack.c.bf16 %v384_v5, %v382_v4  ;;  %v381_v8 = vld [vmem:[#allocation11 + $0xa0] sm:$0xff]  ;;  %v383_v9 = vld [vmem:[#allocation11 + $0xb0] sm:$0xff]  ;;  %v386_v10 = vld [vmem:[#allocation11 + $0xc8] sm:$0xff] }
  0xb1   :  { %3317 = vmatpush1.bf16.msra.mxu0 %v3316_v45  ;;  %v388_v11 = vld [vmem:[#allocation11 + $0xd8] sm:$0xff]  ;;  %v3336_v12 = vpack.c.bf16 %v383_v9, %v381_v8  ;;  %v385_v14 = vld [vmem:[#allocation11 + $0xc0] sm:$0xff]  ;;  %v387_v15 = vld [vmem:[#allocation11 + $0xd0] sm:$0xff] }
  0xb2   :  { %3319 = vmatprep.subr.bf16.mxu0 %v3318_v46  ;;  %2978 = vmatmul.mubr.msk.f32.vlgmr.msra.gmra.mrb[0].mxu1 %vm203_vm0, %v4668_v43  ;;  %v3338_v13 = vpack.c.bf16 %v388_v11, %v386_v10  ;;  %v390_v16 = vld [vmem:[#allocation11 + $0xe8] sm:$0xff]  ;;  %v392_v17 = vld [vmem:[#allocation11 + $0xf8] sm:$0xff]  ;;  %v3340_v18 = vpack.c.bf16 %v387_v15, %v385_v14  ;;  %v389_v20 = vld [vmem:[#allocation11 + $0xe0] sm:$0xff] }
  0xb3   :  { %v3342_v19 = vpack.c.bf16 %v392_v17, %v390_v16  ;;  %v391_v21 = vld [vmem:[#allocation11 + $0xf0] sm:$0xff]  ;;  %v394_v22 = vld [vmem:[#allocation11 + $0x108] sm:$0xff]  ;;  %v396_v23 = vld [vmem:[#allocation11 + $0x118] sm:$0xff] }
  0xb4   :  { %v3344_v24 = vpack.c.bf16 %v391_v21, %v389_v20  ;;  %v3346_v25 = vpack.c.bf16 %v396_v23, %v394_v22  ;;  %v393_v26 = vld [vmem:[#allocation11 + $0x100] sm:$0xff]  ;;  %v395_v27 = vld [vmem:[#allocation11 + $0x110] sm:$0xff]  ;;  %v398_v28 = vld [vmem:[#allocation11 + $0x128] sm:$0xff] }
  0xb5   :  { %3321 = vmatpush1.bf16.msra.mxu0 %v3320_v51  ;;  %v400_v29 = vld [vmem:[#allocation11 + $0x138] sm:$0xff]  ;;  %v3348_v30 = vpack.c.bf16 %v395_v27, %v393_v26  ;;  %v397_v32 = vld [vmem:[#allocation11 + $0x120] sm:$0xff]  ;;  %v399_v33 = vld [vmem:[#allocation11 + $0x130] sm:$0xff] }
  0xb6   :  { %3323 = vmatprep.subr.bf16.mxu0 %v3322_v52  ;;  %v3350_v31 = vpack.c.bf16 %v400_v29, %v398_v28  ;;  %v402_v34 = vld [vmem:[#allocation11 + $0x148] sm:$0xff]  ;;  %v404_v35 = vld [vmem:[#allocation11 + $0x158] sm:$0xff]  ;;  %v3352_v36 = vpack.c.bf16 %v399_v33, %v397_v32  ;;  %v401_v38 = vld [vmem:[#allocation11 + $0x140] sm:$0xff] }
  0xb7   :  { %v3354_v37 = vpack.c.bf16 %v404_v35, %v402_v34  ;;  %v403_v39 = vld [vmem:[#allocation11 + $0x150] sm:$0xff]  ;;  %v406_v40 = vld [vmem:[#allocation11 + $0x168] sm:$0xff]  ;;  %v408_v41 = vld [vmem:[#allocation11 + $0x178] sm:$0xff] }
  0xb8   :  { %v3356_v42 = vpack.c.bf16 %v403_v39, %v401_v38  ;;  %v3358_v44 = vpack.c.bf16 %v408_v41, %v406_v40  ;;  %v405_v45 = vld [vmem:[#allocation11 + $0x160] sm:$0xff]  ;;  %v407_v46 = vld [vmem:[#allocation11 + $0x170] sm:$0xff]  ;;  %v410_v47 = vld [vmem:[#allocation11 + $0x188] sm:$0xff] }
  0xb9   :  { %3325 = vmatpush1.bf16.msra.mxu0 %v3324_v57  ;;  %v412_v48 = vld [vmem:[#allocation11 + $0x198] sm:$0xff]  ;;  %v3360_v49 = vpack.c.bf16 %v407_v46, %v405_v45  ;;  %v409_v51 = vld [vmem:[#allocation11 + $0x180] sm:$0xff]  ;;  %v411_v52 = vld [vmem:[#allocation11 + $0x190] sm:$0xff] }
  0xba   :  { %3327 = vmatprep.subr.bf16.mxu0 %v3326_v58  ;;  %v3362_v50 = vpack.c.bf16 %v412_v48, %v410_v47  ;;  %v414_v53 = vld [vmem:[#allocation11 + $0x1a8] sm:$0xff]  ;;  %v416_v54 = vld [vmem:[#allocation11 + $0x1b8] sm:$0xff]  ;;  %v3364_v55 = vpack.c.bf16 %v411_v52, %v409_v51  ;;  %v413_v57 = vld [vmem:[#allocation11 + $0x1a0] sm:$0xff] }
  0xbb   :  { %v3366_v56 = vpack.c.bf16 %v416_v54, %v414_v53  ;;  %v415_v58 = vld [vmem:[#allocation11 + $0x1b0] sm:$0xff]  ;;  %v418_v60 = vld [vmem:[#allocation11 + $0x1c8] sm:$0xff]  ;;  %v420_v61 = vld [vmem:[#allocation11 + $0x1d8] sm:$0xff] }
  0xbc   :  { %v3368_v59 = vpack.c.bf16 %v415_v58, %v413_v57  ;;  %v3370_v62 = vpack.c.bf16 %v420_v61, %v418_v60  ;;  %v422_v3 = vld [vmem:[#allocation11 + $0x1e8] sm:$0xff]  ;;  %v424_v4 = vld [vmem:[#allocation11 + $0x1f8] sm:$0xff]  ;;  %v650_v14 = vld [vmem:[%s5383_s7] sm:$0xff] }
  0xbd   :  { %3329 = vmatpush1.bf16.msra.mxu0 %v3328_v63  ;;  %v417_v63 = vld [vmem:[#allocation11 + $0x1c0] sm:$0xff]  ;;  %v3374_v5 = vpack.c.bf16 %v424_v4, %v422_v3  ;;  %v426_v9 = vld [vmem:[#allocation11 + $0x208] sm:$0xff]  ;;  %v428_v10 = vld [vmem:[#allocation11 + $0x218] sm:$0xff] }
  0xbe   :  { %3331 = vmatprep.subr.bf16.mxu0 %v3330_v1  ;;  %v419_v1 = vld [vmem:[#allocation11 + $0x1d0] sm:$0xff]  ;;  %v3378_v11 = vpack.c.bf16 %v428_v10, %v426_v9  ;;  %v651_v16 = vld [vmem:[%s5383_s7 + $0x8] sm:$0xff]  ;;  %v653_v22 = vld [vmem:[%s5383_s7 + $0x18] sm:$0xff] }
  0xbf   :  { %v3372_v2 = vpack.c.bf16 %v419_v1, %v417_v63  ;;  %v668_v17 = vld [vmem:[%s5383_s7 + $0x90] sm:$0xff]  ;;  %v670_v23 = vld [vmem:[%s5383_s7 + $0xa0] sm:$0xff]  ;;  %v655_v28 = vld [vmem:[%s5383_s7 + $0x28] sm:$0xff] }
  0xc0   :  { %v652_v21 = vld [vmem:[%s5383_s7 + $0x10] sm:$0xff]  ;;  %v654_v27 = vld [vmem:[%s5383_s7 + $0x20] sm:$0xff]  ;;  %v657_v34 = vld [vmem:[%s5383_s7 + $0x38] sm:$0xff] }
  0xc1   :  { %3333 = vmatpush1.bf16.msra.mxu0 %v3332_v6  ;;  %v421_v6 = vld [vmem:[#allocation11 + $0x1e0] sm:$0xff]  ;;  %v672_v29 = vld [vmem:[%s5383_s7 + $0xb0] sm:$0xff]  ;;  %v659_v40 = vld [vmem:[%s5383_s7 + $0x48] sm:$0xff] }
  0xc2   :  { %3335 = vmatprep.subr.bf16.mxu0 %v3334_v7  ;;  %v423_v7 = vld [vmem:[#allocation11 + $0x1f0] sm:$0xff]  ;;  %v674_v35 = vld [vmem:[%s5383_s7 + $0xc0] sm:$0xff]  ;;  %v661_v47 = vld [vmem:[%s5383_s7 + $0x58] sm:$0xff] }
  0xc3   :  { %v3376_v8 = vpack.c.bf16 %v423_v7, %v421_v6  ;;  %v656_v33 = vld [vmem:[%s5383_s7 + $0x30] sm:$0xff]  ;;  %v658_v39 = vld [vmem:[%s5383_s7 + $0x40] sm:$0xff]  ;;  %v354_v63 = vld [vmem:[#allocation7 + $0x8] sm:$0xff] }
  0xc4   :  { %v676_v41 = vld [vmem:[%s5383_s7 + $0xd0] sm:$0xff]  ;;  %v425_v1 = vld [vmem:[#allocation11 + $0x200] sm:$0xff]  ;;  %v432_v6 = vld [vmem:[#allocation11 + $0x238] sm:$0xff] }
  0xc5   :  { %3337 = vmatpush1.bf16.msra.mxu0 %v3336_v12  ;;  %v666_v12 = vld [vmem:[%s5383_s7 + $0x80] sm:$0xff]  ;;  %v660_v46 = vld [vmem:[%s5383_s7 + $0x50] sm:$0xff] }
  0xc6   :  { %3339 = vmatprep.subr.bf16.mxu0 %v3338_v13  ;;  %v667_v13 = vld [vmem:[%s5383_s7 + $0x88] sm:$0xff]  ;;  %v3464_v48 = vpack.c.bf16 %v661_v47, %v660_v46  ;;  %v353_v3 = vld [vmem:[#allocation7] sm:$0xff] }
  0xc7   :  { %v3442_v15 = vpack.c.bf16 %v667_v13, %v666_v12  ;;  %v4751_v52 = vld [vmem:[#allocation16] ss:$8 sm:$0xf] }
  0xc9   :  { %3341 = vmatpush1.bf16.msra.mxu0 %v3340_v18  ;;  %v669_v18 = vld [vmem:[%s5383_s7 + $0x98] sm:$0xff]  ;;  %3443 = vmatprep.subr.bf16.mxu1 %v3442_v15  ;;  %v431_v15 = vld [vmem:[#allocation11 + $0x230] sm:$0xff] }
  0xca   :  { %3343 = vmatprep.subr.bf16.mxu0 %v3342_v19  ;;  %v3444_v19 = vpack.c.bf16 %v651_v16, %v650_v14  ;;  %v3446_v20 = vpack.c.bf16 %v669_v18, %v668_v17  ;;  %v429_v14 = vld [vmem:[#allocation11 + $0x220] sm:$0xff]  ;;  %v356_v16 = vld [vmem:[#allocation7 + $0x18] sm:$0xff]  ;;  %v436_v18 = vld [vmem:[#allocation11 + $0x258] sm:$0xff] }
  0xcb   :  { %v434_v17 = vld [vmem:[#allocation11 + $0x248] sm:$0xff] }
  0xcc   :  { %3445 = vmatpush3.bf16.msra.mxu1 %v3444_v19 }
  0xcd   :  { %3345 = vmatpush1.bf16.msra.mxu0 %v3344_v24  ;;  %v671_v24 = vld [vmem:[%s5383_s7 + $0xa8] sm:$0xff]  ;;  %3447 = vmatprep.subr.bf16.mxu1 %v3446_v20  ;;  %v3384_v20 = vpack.c.bf16 %v431_v15, %v429_v14  ;;  %v465_v15 = vld [vmem:[#allocation11 + $0x340] sm:$0xff] }
  0xce   :  { %3347 = vmatprep.subr.bf16.mxu0 %v3346_v25  ;;  %v3448_v25 = vpack.c.bf16 %v653_v22, %v652_v21  ;;  %v3450_v26 = vpack.c.bf16 %v671_v24, %v670_v23  ;;  %v3386_v22 = vpack.c.bf16 %v436_v18, %v434_v17  ;;  %v433_v23 = vld [vmem:[#allocation11 + $0x240] sm:$0xff]  ;;  %v435_v24 = vld [vmem:[#allocation11 + $0x250] sm:$0xff]  ;;  %v470_v17 = vld [vmem:[#allocation11 + $0x368] sm:$0xff] }
  0xcf   :  { %v472_v18 = vld [vmem:[#allocation11 + $0x378] sm:$0xff] }
  0xd0   :  { %3449 = vmatpush3.bf16.msra.mxu1 %v3448_v25  ;;  %v438_v25 = vld [vmem:[#allocation11 + $0x268] sm:$0xff] }
  0xd1   :  { %3349 = vmatpush1.bf16.msra.mxu0 %v3348_v30  ;;  %v673_v30 = vld [vmem:[%s5383_s7 + $0xb8] sm:$0xff]  ;;  %3451 = vmatprep.subr.bf16.mxu1 %v3450_v26 }
  0xd2   :  { %3351 = vmatprep.subr.bf16.mxu0 %v3350_v31  ;;  %v3452_v31 = vpack.c.bf16 %v655_v28, %v654_v27  ;;  %v3454_v32 = vpack.c.bf16 %v673_v30, %v672_v29  ;;  %v440_v26 = vld [vmem:[#allocation11 + $0x278] sm:$0xff]  ;;  %v3388_v27 = vpack.c.bf16 %v435_v24, %v433_v23  ;;  %v437_v29 = vld [vmem:[#allocation11 + $0x260] sm:$0xff]  ;;  %v439_v30 = vld [vmem:[#allocation11 + $0x270] sm:$0xff] }
  0xd3   :  { %v3390_v28 = vpack.c.bf16 %v440_v26, %v438_v25  ;;  %v474_v23 = vld [vmem:[#allocation11 + $0x388] sm:$0xff]  ;;  %v476_v24 = vld [vmem:[#allocation11 + $0x398] sm:$0xff] }
  0xd4   :  { %3453 = vmatpush3.bf16.msra.mxu1 %v3452_v31  ;;  %v442_v31 = vld [vmem:[#allocation11 + $0x288] sm:$0xff]  ;;  %v3426_v26 = vpack.c.bf16 %v476_v24, %v474_v23  ;;  %v764_v24 = vld [vmem:[#allocation14 + $0x10] sm:$0xff] }
  0xd5   :  { %3353 = vmatpush1.bf16.msra.mxu0 %v3352_v36  ;;  %v675_v36 = vld [vmem:[%s5383_s7 + $0xc8] sm:$0xff]  ;;  %3455 = vmatprep.subr.bf16.mxu1 %v3454_v32  ;;  %v444_v32 = vld [vmem:[#allocation11 + $0x298] sm:$0xff] }
  0xd6   :  { %3355 = vmatprep.subr.bf16.mxu0 %v3354_v37  ;;  %v3456_v37 = vpack.c.bf16 %v657_v34, %v656_v33  ;;  %v3458_v38 = vpack.c.bf16 %v675_v36, %v674_v35  ;;  %v3392_v33 = vpack.c.bf16 %v439_v30, %v437_v29  ;;  %v3394_v34 = vpack.c.bf16 %v444_v32, %v442_v31  ;;  %v441_v35 = vld [vmem:[#allocation11 + $0x280] sm:$0xff]  ;;  %v443_v36 = vld [vmem:[#allocation11 + $0x290] sm:$0xff]  ;;  %v478_v29 = vld [vmem:[#allocation11 + $0x3a8] sm:$0xff] }
  0xd7   :  { %v480_v30 = vld [vmem:[#allocation11 + $0x3b8] sm:$0xff] }
  0xd8   :  { %3457 = vmatpush3.bf16.msra.mxu1 %v3456_v37  ;;  %v446_v37 = vld [vmem:[#allocation11 + $0x2a8] sm:$0xff]  ;;  %v3430_v32 = vpack.c.bf16 %v480_v30, %v478_v29 }
  0xd9   :  { %3357 = vmatpush1.bf16.msra.mxu0 %v3356_v42  ;;  %v677_v42 = vld [vmem:[%s5383_s7 + $0xd8] sm:$0xff]  ;;  %3459 = vmatprep.subr.bf16.mxu1 %v3458_v38 }
  0xda   :  { %3359 = vmatprep.subr.bf16.mxu0 %v3358_v44  ;;  %v3460_v44 = vpack.c.bf16 %v659_v40, %v658_v39  ;;  %v3462_v45 = vpack.c.bf16 %v677_v42, %v676_v41  ;;  %v448_v38 = vld [vmem:[#allocation11 + $0x2b8] sm:$0xff]  ;;  %v3396_v39 = vpack.c.bf16 %v443_v36, %v441_v35  ;;  %v445_v41 = vld [vmem:[#allocation11 + $0x2a0] sm:$0xff]  ;;  %v447_v42 = vld [vmem:[#allocation11 + $0x2b0] sm:$0xff] }
  0xdb   :  { %v3398_v40 = vpack.c.bf16 %v448_v38, %v446_v37  ;;  %v3400_v46 = vpack.c.bf16 %v447_v42, %v445_v41  ;;  %v482_v36 = vld [vmem:[#allocation11 + $0x3c8] sm:$0xff]  ;;  %v484_v37 = vld [vmem:[#allocation11 + $0x3d8] sm:$0xff]  ;;  %v481_v41 = vld [vmem:[#allocation11 + $0x3c0] sm:$0xff] }
  0xdc   :  { %3461 = vmatpush3.bf16.msra.mxu1 %v3460_v44  ;;  %v450_v44 = vld [vmem:[#allocation11 + $0x2c8] sm:$0xff]  ;;  %v483_v42 = vld [vmem:[#allocation11 + $0x3d0] sm:$0xff] }
  0xdd   :  { %3361 = vmatpush1.bf16.msra.mxu0 %v3360_v49  ;;  %3463 = vmatprep.subr.bf16.mxu1 %v3462_v45  ;;  %v183_v49 = vlaneseq  ;;  %v452_v45 = vld [vmem:[#allocation11 + $0x2d8] sm:$0xff] }
  0xde   :  { %3363 = vmatprep.subr.bf16.mxu0 %v3362_v50  ;;  %v3402_v47 = vpack.c.bf16 %v452_v45, %v450_v44  ;;  %v486_v44 = vld [vmem:[#allocation11 + $0x3e8] sm:$0xff]  ;;  %v488_v45 = vld [vmem:[#allocation11 + $0x3f8] sm:$0xff] }
  0xdf   :  { %v4746_v50 = vshrl.u32 %v183_v49, 7  ;;  %v451_v49 = vld [vmem:[#allocation11 + $0x2d0] sm:$0xff] }
  0xe0   :  { %3465 = vmatpush3.bf16.msra.mxu1 %v3464_v48  ;;  %v449_v48 = vld [vmem:[#allocation11 + $0x2c0] sm:$0xff] }
  0xe1   :  { %3365 = vmatpush1.bf16.msra.mxu0 %v3364_v55  ;;  %v4749_v51 = vsub.s32 0, %v4746_v50  ;;  %v4754_v53 = vsub.s32 1, %v4746_v50  ;;  %v4768_v35 = vsub.s32 2, %v4746_v50 }
  0xe2   :  { %3367 = vmatprep.subr.bf16.mxu0 %v3366_v56  ;;  %v4761_v56 = vsub.s32 3, %v4746_v50  ;;  %v3438_v50 = vpack.c.bf16 %v488_v45, %v486_v44  ;;  %v939_v44 = vld [vmem:[#allocation13 + $0x8] sm:$0xff] }
  0xe3   :  { %v186_v54 = vrot.slane %v4751_v52, %v4749_v51  ;;  %v190_v55 = vrot.slane %v4751_v52, %v4754_v53  ;;  %v943_v45 = vld [vmem:[#allocation13 + $0x28] sm:$0xff] }
  0xe4   :  { %v198_v61 = vrot.slane %v4751_v52, %v4761_v56 }
  0xe5   :  { %3369 = vmatpush1.bf16.msra.mxu0 %v3368_v59 }
  0xe6   :  { %3371 = vmatprep.subr.bf16.mxu0 %v3370_v62 }
  0xe9   :  { %3373 = vmatpush1.bf16.msra.mxu0 %v3372_v2  ;;  %v427_v2 = vld [vmem:[#allocation11 + $0x210] sm:$0xff] }
  0xea   :  { %3375 = vmatprep.subr.bf16.mxu0 %v3374_v5  ;;  %v430_v5 = vld [vmem:[#allocation11 + $0x228] sm:$0xff]  ;;  %v3380_v10 = vpack.c.bf16 %v427_v2, %v425_v1  ;;  %v457_v2 = vld [vmem:[#allocation11 + $0x300] sm:$0xff] }
  0xeb   :  { %v3382_v13 = vpack.c.bf16 %v432_v6, %v430_v5  ;;  %v464_v5 = vld [vmem:[#allocation11 + $0x338] sm:$0xff] }
  0xed   :  { %3377 = vmatpush1.bf16.msra.mxu0 %v3376_v8 }
  0xee   :  { %3379 = vmatprep.subr.bf16.mxu0 %v3378_v11 }
 0x183   :  { %v273_v57 = vpop.f32.mrb[0].mxu0 }
 0x184   :  { %v274_v58 = vadd.f32 %v273_v57, %v186_v54  ;;  %v275_v59 = vpop.f32.mrb[1].mxu0  ;;  %v454_v54 = vld [vmem:[#allocation11 + $0x2e8] sm:$0xff]  ;;  %v3404_v57 = vpack.c.bf16 %v451_v49, %v449_v48  ;;  %v485_v48 = vld [vmem:[#allocation11 + $0x3e0] sm:$0xff]  ;;  %v487_v49 = vld [vmem:[#allocation11 + $0x3f0] sm:$0xff] }
 0x185   :  { %v276_v60 = vadd.f32 %v275_v59, %v190_v55  ;;  %v4765_v7 = vpop.f32.mrb[0].mxu1  ;;  %v456_v55 = vld [vmem:[#allocation11 + $0x2f8] sm:$0xff]  ;;  %v453_v59 = vld [vmem:[#allocation11 + $0x2e0] sm:$0xff] }
 0x186   :  { %v349_v62 = vmax.f32 %v274_v58, 0.0  ;;  %v346_v8 = vpop.f32.mrb[1].mxu1  ;;  %v3406_v58 = vpack.c.bf16 %v456_v55, %v454_v54  ;;  %v3440_v54 = vpack.c.bf16 %v487_v49, %v485_v48  ;;  %v947_v48 = vld [vmem:[#allocation13 + $0x48] sm:$0xff] }
 0x187   :  { %v350_v4 = vmax.f32 %v276_v60, 0.0  ;;  %v347_v11 = vadd.f32 %v346_v8, %v198_v61  ;;  %v455_v60 = vld [vmem:[#allocation11 + $0x2f0] sm:$0xff]  ;;  %v458_v61 = vld [vmem:[#allocation11 + $0x308] sm:$0xff] }
 0x188   :  { %v357_v12 = vmul.f32 %v353_v3, %v349_v62  ;;  %v460_v62 = vld [vmem:[#allocation11 + $0x318] sm:$0xff]  ;;  %v459_v3 = vld [vmem:[#allocation11 + $0x310] sm:$0xff]  ;;  %v951_v49 = vld [vmem:[#allocation13 + $0x68] sm:$0xff] }
 0x189   :  { %v358_v9 = vmul.f32 %v354_v63, %v350_v4  ;;  %v352_v19 = vmax.f32 %v347_v11, 0.0  ;;  %v3408_v63 = vpack.c.bf16 %v455_v60, %v453_v59  ;;  %v3410_v1 = vpack.c.bf16 %v460_v62, %v458_v61  ;;  %v462_v4 = vld [vmem:[#allocation11 + $0x328] sm:$0xff]  ;;  %v662_v60 = vld [vmem:[%s5383_s7 + $0x60] sm:$0xff] }
 0x18a   :  { %v3412_v6 = vpack.c.bf16 %v459_v3, %v457_v2  ;;  %v3414_v8 = vpack.c.bf16 %v464_v5, %v462_v4  ;;  %v466_v11 = vld [vmem:[#allocation11 + $0x348] sm:$0xff]  ;;  %v664_v3 = vld [vmem:[%s5383_s7 + $0x70] sm:$0xff]  ;;  %v665_v4 = vld [vmem:[%s5383_s7 + $0x78] sm:$0xff] }
 0x18b   :  { %566 = vmatprep.mubr.f32.mxu0 %v358_v9  ;;  %v360_v21 = vmul.f32 %v356_v16, %v352_v19  ;;  %v461_v9 = vld [vmem:[#allocation11 + $0x320] sm:$0xff]  ;;  %v467_v16 = vld [vmem:[#allocation11 + $0x350] sm:$0xff]  ;;  %v663_v61 = vld [vmem:[%s5383_s7 + $0x68] sm:$0xff]  ;;  %v3472_v5 = vpack.c.bf16 %v665_v4, %v664_v3 }
 0x18c   :  { %567 = vmatmul.mubr.f32.vlgmr.msra.gmra.mrb[2].mxu0 %v357_v12  ;;  %v468_v12 = vld [vmem:[#allocation11 + $0x358] sm:$0xff]  ;;  %v3420_v19 = vpack.c.bf16 %v467_v16, %v465_v15  ;;  %v3468_v62 = vpack.c.bf16 %v663_v61, %v662_v60  ;;  %v646_v16 = vld [vmem:[#allocation7 + $0x20] sm:$0xff]  ;;  %v954_v60 = vld [vmem:[#allocation13 + $0x80] sm:$0xff] }
 0x18d   :  { %3381 = vmatpush1.bf16.msra.mxu0 %v3380_v10  ;;  %637 = vmatprep.mubr.f32.mxu0 %v360_v21  ;;  %v463_v10 = vld [vmem:[#allocation11 + $0x330] sm:$0xff]  ;;  %v3418_v14 = vpack.c.bf16 %v468_v12, %v466_v11  ;;  %v469_v21 = vld [vmem:[#allocation11 + $0x360] sm:$0xff]  ;;  %v647_v15 = vld [vmem:[#allocation7 + $0x28] sm:$0xff] }
 0x18e   :  { %3383 = vmatprep.subr.bf16.mxu0 %v3382_v13  ;;  %v3416_v13 = vpack.c.bf16 %v463_v10, %v461_v9  ;;  %v958_v61 = vld [vmem:[#allocation13 + $0xa0] sm:$0xff] }
 0x191   :  { %3385 = vmatpush1.bf16.msra.mxu0 %v3384_v20  ;;  %v3422_v20 = vpack.c.bf16 %v472_v18, %v470_v17 }
 0x192   :  { %3387 = vmatprep.subr.bf16.mxu0 %v3386_v22  ;;  %v471_v22 = vld [vmem:[#allocation11 + $0x370] sm:$0xff] }
 0x193   :  { %v3424_v25 = vpack.c.bf16 %v471_v22, %v469_v21  ;;  %v765_v21 = vld [vmem:[#allocation14 + $0x18] sm:$0xff]  ;;  %v762_v22 = vld [vmem:[#allocation14] sm:$0xff] }
 0x195   :  { %3389 = vmatpush1.bf16.msra.mxu0 %v3388_v27  ;;  %v473_v27 = vld [vmem:[#allocation11 + $0x380] sm:$0xff] }
 0x196   :  { %3391 = vmatprep.subr.bf16.mxu0 %v3390_v28  ;;  %v475_v28 = vld [vmem:[#allocation11 + $0x390] sm:$0xff] }
 0x197   :  { %v3428_v31 = vpack.c.bf16 %v475_v28, %v473_v27  ;;  %v3476_v27 = vpack.c.bf16 %v764_v24, %v762_v22  ;;  %v769_v28 = vld [vmem:[#allocation14 + $0x38] sm:$0xff]  ;;  %v987_v22 = vld [vmem:[#allocation13 + $0x188] sm:$0xff] }
 0x199   :  { %3393 = vmatpush1.bf16.msra.mxu0 %v3392_v33  ;;  %v477_v33 = vld [vmem:[#allocation11 + $0x3a0] sm:$0xff] }
 0x19a   :  { %3395 = vmatprep.subr.bf16.mxu0 %v3394_v34  ;;  %v479_v34 = vld [vmem:[#allocation11 + $0x3b0] sm:$0xff] }
 0x19b   :  { %v3432_v38 = vpack.c.bf16 %v479_v34, %v477_v33 }
 0x19d   :  { %3397 = vmatpush1.bf16.msra.mxu0 %v3396_v39  ;;  %v194_v39 = vrot.slane %v4751_v52, %v4768_v35 }
 0x19e   :  { %3399 = vmatprep.subr.bf16.mxu0 %v3398_v40  ;;  %v3434_v40 = vpack.c.bf16 %v484_v37, %v482_v36  ;;  %v766_v36 = vld [vmem:[#allocation14 + $0x20] sm:$0xff]  ;;  %v768_v37 = vld [vmem:[#allocation14 + $0x30] sm:$0xff] }
 0x1a1   :  { %3401 = vmatpush1.bf16.msra.mxu0 %v3400_v46  ;;  %v3436_v46 = vpack.c.bf16 %v483_v42, %v481_v41  ;;  %v770_v41 = vld [vmem:[#allocation14 + $0x40] sm:$0xff] }
 0x1a2   :  { %3403 = vmatprep.subr.bf16.mxu0 %v3402_v47  ;;  %v345_v47 = vadd.f32 %v4765_v7, %v194_v39  ;;  %v679_v7 = vld [vmem:[%s5383_s7 + $0xe8] sm:$0xff]  ;;  %v3480_v39 = vpack.c.bf16 %v768_v37, %v766_v36 }
 0x1a3   :  { %v1007_v36 = vld [vmem:[#allocation13 + $0x228] sm:$0xff] }
 0x1a4   :  { %v351_v55 = vmax.f32 %v345_v47, 0.0  ;;  %v3482_v47 = vpack.c.bf16 %v943_v45, %v939_v44 }
 0x1a5   :  { %3405 = vmatpush1.bf16.msra.mxu0 %v3404_v57  ;;  %v355_v57 = vld [vmem:[#allocation7 + $0x10] sm:$0xff] }
 0x1a6   :  { %3407 = vmatprep.subr.bf16.mxu0 %v3406_v58  ;;  %v359_v52 = vmul.f32 %v355_v57, %v351_v55  ;;  %v678_v58 = vld [vmem:[%s5383_s7 + $0xe0] sm:$0xff]  ;;  %v3486_v55 = vpack.c.bf16 %v951_v49, %v947_v48  ;;  %v1023_v48 = vld [vmem:[#allocation13 + $0x2a8] sm:$0xff] }
 0x1a7   :  { %v3466_v59 = vpack.c.bf16 %v679_v7, %v678_v58  ;;  %v946_v57 = vld [vmem:[#allocation13 + $0x40] sm:$0xff]  ;;  %v955_v58 = vld [vmem:[#allocation13 + $0x88] sm:$0xff] }
 0x1a8   :  { %v959_v7 = vld [vmem:[#allocation13 + $0xa8] sm:$0xff] }
 0x1a9   :  { %3409 = vmatpush1.bf16.msra.mxu0 %v3408_v63  ;;  %3467 = vmatprep.subr.bf16.mxu1 %v3466_v59  ;;  %v680_v63 = vld [vmem:[%s5383_s7 + $0xf0] sm:$0xff]  ;;  %v3490_v59 = vpack.c.bf16 %v959_v7, %v955_v58  ;;  %v1031_v58 = vld [vmem:[#allocation13 + $0x2e8] sm:$0xff] }
 0x1aa   :  { %3411 = vmatprep.subr.bf16.mxu0 %v3410_v1  ;;  %3469 = vmatpush3.bf16.msra.mxu1 %v3468_v62  ;;  %v681_v1 = vld [vmem:[%s5383_s7 + $0xf8] sm:$0xff]  ;;  %v963_v62 = vld [vmem:[#allocation13 + $0xc8] sm:$0xff] }
 0x1ab   :  { %v3470_v2 = vpack.c.bf16 %v681_v1, %v680_v63  ;;  %v967_v63 = vld [vmem:[#allocation13 + $0xe8] sm:$0xff] }
 0x1ac   :  { %v156_v1 = vld [vmem:[#allocation5] sm:$0xff]  ;;  %v3494_v4 = vpack.c.bf16 %v967_v63, %v963_v62 }
 0x1ad   :  { %3413 = vmatpush1.bf16.msra.mxu0 %v3412_v6  ;;  %3471 = vmatprep.subr.bf16.mxu1 %v3470_v2  ;;  %v490_v6 = vld [vmem:[#allocation16 + $0x1] ss:$8 sm:$0x3]  ;;  %v3492_v2 = vpack.c.bf16 %v958_v61, %v954_v60 }
 0x1ae   :  { %3415 = vmatprep.subr.bf16.mxu0 %v3414_v8  ;;  %3473 = vmatpush3.bf16.msra.mxu1 %v3472_v5  ;;  %v495_v8 = vrot.slane %v490_v6, %v4749_v51  ;;  %v499_v9 = vrot.slane %v490_v6, %v4754_v53  ;;  %v962_v5 = vld [vmem:[#allocation13 + $0xc0] sm:$0xff]  ;;  %v1035_v61 = vld [vmem:[#allocation13 + $0x308] sm:$0xff] }
 0x1af   :  { %v966_v6 = vld [vmem:[#allocation13 + $0xe0] sm:$0xff]  ;;  %v1039_v62 = vld [vmem:[#allocation13 + $0x328] sm:$0xff] }
 0x1b0   :  { %v1030_v60 = vld [vmem:[#allocation13 + $0x2e0] sm:$0xff] }
 0x1b1   :  { %3417 = vmatpush1.bf16.msra.mxu0 %v3416_v13 }
 0x1b2   :  { %3419 = vmatprep.subr.bf16.mxu0 %v3418_v14 }
 0x1b5   :  { %3421 = vmatpush1.bf16.msra.mxu0 %v3420_v19 }
 0x1b6   :  { %3423 = vmatprep.subr.bf16.mxu0 %v3422_v20  ;;  %v763_v20 = vld [vmem:[#allocation14 + $0x8] sm:$0xff] }
 0x1b7   :  { %v3474_v23 = vpack.c.bf16 %v765_v21, %v763_v20  ;;  %v978_v20 = vld [vmem:[#allocation13 + $0x140] sm:$0xff] }
 0x1b8   :  { %v982_v21 = vld [vmem:[#allocation13 + $0x160] sm:$0xff] }
 0x1b9   :  { %3425 = vmatpush1.bf16.msra.mxu0 %v3424_v25  ;;  %v771_v25 = vld [vmem:[#allocation14 + $0x48] sm:$0xff]  ;;  %3475 = vmatprep.subr.bf16.mxu1 %v3474_v23  ;;  %v3504_v24 = vpack.c.bf16 %v982_v21, %v978_v20 }
 0x1ba   :  { %3427 = vmatprep.subr.bf16.mxu0 %v3426_v26  ;;  %v767_v26 = vld [vmem:[#allocation14 + $0x28] sm:$0xff] }
 0x1bb   :  { %v3478_v29 = vpack.c.bf16 %v769_v28, %v767_v26  ;;  %v991_v23 = vld [vmem:[#allocation13 + $0x1a8] sm:$0xff]  ;;  %v986_v26 = vld [vmem:[#allocation13 + $0x180] sm:$0xff] }
 0x1bc   :  { %v995_v28 = vld [vmem:[#allocation13 + $0x1c8] sm:$0xff] }
 0x1bd   :  { %3429 = vmatpush1.bf16.msra.mxu0 %v3428_v31  ;;  %v682_v31 = vld [vmem:[#allocation16 + $0x2] ss:$0 sm:$0xff]  ;;  %v1059_v20 = vld [vmem:[#allocation13 + $0x3c8] sm:$0xff] }
 0x1be   :  { %3431 = vmatprep.subr.bf16.mxu0 %v3430_v32  ;;  %v1063_v21 = vld [vmem:[#allocation13 + $0x3e8] sm:$0xff] }
 0x1c1   :  { %3433 = vmatpush1.bf16.msra.mxu0 %v3432_v38 }
 0x1c2   :  { %3435 = vmatprep.subr.bf16.mxu0 %v3434_v40 }
 0x1c5   :  { %3437 = vmatpush1.bf16.msra.mxu0 %v3436_v46  ;;  %v938_v46 = vld [vmem:[#allocation13] sm:$0xff] }
 0x1c6   :  { %3439 = vmatprep.subr.bf16.mxu0 %v3438_v50  ;;  %v942_v50 = vld [vmem:[#allocation13 + $0x20] sm:$0xff] }
 0x1c9   :  { %3441 = vmatpush1.bf16.msra.mxu0 %v3440_v54  ;;  %v3484_v54 = vpack.c.bf16 %v942_v50, %v938_v46  ;;  %v1010_v46 = vld [vmem:[#allocation13 + $0x240] sm:$0xff]  ;;  %v1019_v50 = vld [vmem:[#allocation13 + $0x288] sm:$0xff] }
 0x1ca   :  { %776 = vmatprep.subr.mxu0 %v771_v25  ;;  %v3506_v25 = vpack.c.bf16 %v991_v23, %v987_v22  ;;  %v3542_v22 = vpack.c.bf16 %v1063_v21, %v1059_v20  ;;  %v1058_v23 = vld [vmem:[#allocation13 + $0x3c0] sm:$0xff]  ;;  %v944_v20 = vld [vmem:[#allocation13 + $0x30] sm:$0xff] }
 0x1cc   :  { %638 = vmatmul.mubr.f32.vlgmr.msra.gmra.mrb[2].mxu0 %v359_v52  ;;  %v950_v52 = vld [vmem:[#allocation13 + $0x60] sm:$0xff] }
 0x1cd   :  { %840 = vmatprep.mubr.f32.mxu0 %v4453_v0  ;;  %777 = vmatpush1.msra.mxu0 %v770_v41  ;;  %v1011_v41 = vld [vmem:[#allocation13 + $0x248] sm:$0xff] }
 0x29f   :  { %v639_v10 = vpop.f32.mrb[2].mxu0 }
 0x2a0   :  { %v4170_v11 = vadd.f32 %v639_v10, %v495_v8  ;;  %v641_v12 = vpop.f32.mrb[3].mxu0  ;;  %v975_v10 = vld [vmem:[#allocation13 + $0x128] sm:$0xff] }
 0x2a1   :  { %v4171_v13 = vadd.f32 %v641_v12, %v499_v9  ;;  %v971_v9 = vld [vmem:[#allocation13 + $0x108] sm:$0xff]  ;;  %v3496_v12 = vpack.c.bf16 %v966_v6, %v962_v5 }
 0x2a2   :  { %v644_v14 = vmax.f32 %v4170_v11, 0.0  ;;  %v1047_v5 = vld [vmem:[#allocation13 + $0x368] sm:$0xff] }
 0x2a3   :  { %v645_v17 = vmax.f32 %v4171_v13, 0.0  ;;  %v3498_v13 = vpack.c.bf16 %v975_v10, %v971_v9  ;;  %v1042_v9 = vld [vmem:[#allocation13 + $0x340] sm:$0xff] }
 0x2a4   :  { %v648_v19 = vmul.f32 %v646_v16, %v644_v14  ;;  %v970_v14 = vld [vmem:[#allocation13 + $0x100] sm:$0xff]  ;;  %v979_v16 = vld [vmem:[#allocation13 + $0x148] sm:$0xff] }
 0x2a5   :  { %v649_v18 = vmul.f32 %v647_v15, %v645_v17  ;;  %v974_v15 = vld [vmem:[#allocation13 + $0x120] sm:$0xff]  ;;  %v983_v17 = vld [vmem:[#allocation13 + $0x168] sm:$0xff] }
 0x2a6   :  { %v1046_v10 = vld [vmem:[#allocation13 + $0x360] sm:$0xff] }
 0x2a7   :  { %747 = vmatprep.mubr.f32.mxu1 %v649_v18  ;;  %v3500_v18 = vpack.c.bf16 %v974_v15, %v970_v14  ;;  %v1050_v15 = vld [vmem:[#allocation13 + $0x380] sm:$0xff] }
 0x2a8   :  { %748 = vmatmul.mubr.f32.vlgmr.msra.gmra.mrb[2].mxu1 %v648_v19  ;;  %v3502_v19 = vpack.c.bf16 %v983_v17, %v979_v16  ;;  %v1054_v16 = vld [vmem:[#allocation13 + $0x3a0] sm:$0xff] }
 0x2a9   :  { %914 = vmatprep.mubr.f32.mxu1 %v4453_v0  ;;  %3477 = vmatpush1.bf16.msra.mxu1 %v3476_v27  ;;  %v990_v27 = vld [vmem:[#allocation13 + $0x1a0] sm:$0xff] }
 0x2aa   :  { %3479 = vmatprep.subr.bf16.mxu1 %v3478_v29  ;;  %v999_v29 = vld [vmem:[#allocation13 + $0x1e8] sm:$0xff] }
 0x2ad   :  { %3481 = vmatpush1.bf16.msra.mxu1 %v3480_v39  ;;  %v1002_v39 = vld [vmem:[#allocation13 + $0x200] sm:$0xff] }
 0x2ae   :  { %3483 = vmatprep.subr.bf16.mxu1 %v3482_v47  ;;  %v1014_v47 = vld [vmem:[#allocation13 + $0x260] sm:$0xff] }
 0x2af   :  { %v3520_v49 = vpack.c.bf16 %v1014_v47, %v1010_v46  ;;  %v1239_v46 = vld [vmem:[%s5385_s9 + $0x20] sm:$0xff]  ;;  %v1240_v47 = vld [vmem:[%s5385_s9 + $0x28] sm:$0xff] }
 0x2b0   :  { %2980 = vmatmul.mubr.msk.f32.vlgmr.msra.gmra.mrb[4].mxu1 %vm847_vm1, %v4668_v43  ;;  %v3488_v43 = vpack.c.bf16 %v950_v52, %v946_v57  ;;  %v1022_v57 = vld [vmem:[#allocation13 + $0x2a0] sm:$0xff]  ;;  %v1027_v52 = vld [vmem:[#allocation13 + $0x2c8] sm:$0xff] }
 0x2b1   :  { %3485 = vmatpush1.bf16.msra.mxu1 %v3484_v54  ;;  %v3522_v54 = vpack.c.bf16 %v1023_v48, %v1019_v50  ;;  %v1257_v50 = vld [vmem:[%s5385_s9 + $0xb0] sm:$0xff]  ;;  %v1258_v48 = vld [vmem:[%s5385_s9 + $0xb8] sm:$0xff] }
 0x2b2   :  { %3487 = vmatprep.subr.bf16.mxu1 %v3486_v55  ;;  %v1018_v55 = vld [vmem:[#allocation13 + $0x280] sm:$0xff] }
 0x2b3   :  { %v3524_v7 = vpack.c.bf16 %v1022_v57, %v1018_v55  ;;  %v1241_v55 = vld [vmem:[%s5385_s9 + $0x30] sm:$0xff]  ;;  %v1242_v57 = vld [vmem:[%s5385_s9 + $0x38] sm:$0xff] }
 0x2b5   :  { %3489 = vmatpush1.bf16.msra.mxu1 %v3488_v43  ;;  %v3526_v43 = vpack.c.bf16 %v1031_v58, %v1027_v52  ;;  %v1259_v52 = vld [vmem:[%s5385_s9 + $0xc0] sm:$0xff]  ;;  %v1260_v58 = vld [vmem:[%s5385_s9 + $0xc8] sm:$0xff] }
 0x2b6   :  { %3491 = vmatprep.subr.bf16.mxu1 %v3490_v59  ;;  %v1026_v59 = vld [vmem:[#allocation13 + $0x2c0] sm:$0xff] }
 0x2b7   :  { %v3528_v63 = vpack.c.bf16 %v1030_v60, %v1026_v59  ;;  %v1243_v59 = vld [vmem:[%s5385_s9 + $0x40] sm:$0xff]  ;;  %v1244_v60 = vld [vmem:[%s5385_s9 + $0x48] sm:$0xff] }
 0x2b9   :  { %3493 = vmatpush1.bf16.msra.mxu1 %v3492_v2  ;;  %v1034_v2 = vld [vmem:[#allocation13 + $0x300] sm:$0xff] }
 0x2ba   :  { %3495 = vmatprep.subr.bf16.mxu1 %v3494_v4  ;;  %v1043_v4 = vld [vmem:[#allocation13 + $0x348] sm:$0xff] }
 0x2bd   :  { %3497 = vmatpush1.bf16.msra.mxu1 %v3496_v12  ;;  %v1051_v12 = vld [vmem:[#allocation13 + $0x388] sm:$0xff] }
 0x2be   :  { %3499 = vmatprep.subr.bf16.mxu1 %v3498_v13  ;;  %v1055_v13 = vld [vmem:[#allocation13 + $0x3a8] sm:$0xff] }
 0x2bf   :  { %v3538_v14 = vpack.c.bf16 %v1055_v13, %v1051_v12 }
 0x2c1   :  { %3501 = vmatpush1.bf16.msra.mxu1 %v3500_v18  ;;  %v3540_v18 = vpack.c.bf16 %v1054_v16, %v1050_v15 }
 0x2c2   :  { %3503 = vmatprep.subr.bf16.mxu1 %v3502_v19 }
 0x2c5   :  { %3505 = vmatpush1.bf16.msra.mxu1 %v3504_v24  ;;  %v1062_v24 = vld [vmem:[#allocation13 + $0x3e0] sm:$0xff] }
 0x2c6   :  { %3507 = vmatprep.subr.bf16.mxu1 %v3506_v25  ;;  %v3544_v25 = vpack.c.bf16 %v1062_v24, %v1058_v23  ;;  %v953_v23 = vld [vmem:[#allocation13 + $0x78] sm:$0xff] }
 0x37b   :  { %v3112_v30 = vpop.f32.mrb[2].mxu1 }
 0x37c   :  { %v3113_v32 = vpop.f32.mrb[3].mxu1 }
 0x37d   :  { %v3114_v33 = vadd.f32 %v3113_v32, %v3112_v30  ;;  %v3508_v30 = vpack.c.bf16 %v990_v27, %v986_v26  ;;  %v994_v32 = vld [vmem:[#allocation13 + $0x1c0] sm:$0xff]  ;;  %v941_v26 = vld [vmem:[#allocation13 + $0x18] sm:$0xff] }
 0x37e   :  { %v945_v27 = vld [vmem:[#allocation13 + $0x38] sm:$0xff] }
 0x37f   :  { %v750_v34 = vadd.f32 %v3114_v33, %v682_v31  ;;  %v3510_v31 = vpack.c.bf16 %v999_v29, %v995_v28  ;;  %v998_v33 = vld [vmem:[#allocation13 + $0x1e0] sm:$0xff]  ;;  %3509 = vmatpush1.bf16.msra.mxu1 %v3508_v30  ;;  %v3546_v28 = vpack.c.bf16 %v945_v27, %v941_v26  ;;  %v1252_v30 = vld [vmem:[%s5385_s9 + $0x88] sm:$0xff] }
 0x380   :  { %v3512_v37 = vpack.c.bf16 %v998_v33, %v994_v32  ;;  %v1251_v29 = vld [vmem:[%s5385_s9 + $0x80] sm:$0xff]  ;;  %v1236_v33 = vld [vmem:[%s5385_s9 + $0x8] sm:$0xff] }
 0x381   :  { %v753_v38 = vmul.f32 0.5, %v750_v34  ;;  %2925 = vrot.lane.b32.xlu1 %v750_v34, %s4447_s16  ;;  %3511 = vmatprep.subr.bf16.mxu1 %v3510_v31  ;;  %v1235_v31 = vld [vmem:[%s5385_s9] sm:$0xff]  ;;  %v3610_v32 = vpack.c.bf16 %v1252_v30, %v1251_v29  ;;  %v952_v29 = vld [vmem:[#allocation13 + $0x70] sm:$0xff]  ;;  %v957_v30 = vld [vmem:[#allocation13 + $0x98] sm:$0xff] }
 0x383   :  { %v754_v40 = vmul.f32 1.442695, %v753_v38  ;;  %3513 = vmatpush1.bf16.msra.mxu1 %v3512_v37  ;;  %v4807_v17 = vpop.f32.mrb[4].mxu1  ;;  %v3612_v37 = vpack.c.bf16 %v1236_v33, %v1235_v31  ;;  %3611 = vmatprep.subr.bf16.mxu0 %v3610_v32  ;;  %v956_v32 = vld [vmem:[#allocation13 + $0x90] sm:$0xff] }
 0x384   :  { %v4809_v19 = vpop.f32.mrb[5].mxu1  ;;  %v960_v33 = vld [vmem:[#allocation13 + $0xb0] sm:$0xff] }
 0x385   :  { %4201 = vpow2.f32 %v754_v40  ;;  %v1006_v40 = vld [vmem:[#allocation13 + $0x220] sm:$0xff] }
 0x386   :  { %v3516_v44 = vpack.c.bf16 %v1006_v40, %v1002_v39  ;;  %v1237_v39 = vld [vmem:[%s5385_s9 + $0x10] sm:$0xff]  ;;  %v1238_v40 = vld [vmem:[%s5385_s9 + $0x18] sm:$0xff] }
 0x38f   :  { %v4202_v42 = vpop.eup %4201 }
 0x390   :  { %757 = vrot.lane.b32.xlu0 %v4202_v42, %s4454_s4  ;;  %v1015_v42 = vld [vmem:[#allocation13 + $0x268] sm:$0xff] }
 0x391   :  { %v3518_v45 = vpack.c.bf16 %v1015_v42, %v1011_v41  ;;  %v1255_v41 = vld [vmem:[%s5385_s9 + $0xa0] sm:$0xff]  ;;  %v1256_v42 = vld [vmem:[%s5385_s9 + $0xa8] sm:$0xff] }
 0x402   :  { %v758_v3 = vpop.permute.xlu0 %757 }
 0x403   :  { %v760_v8 = vmul.f32 %v758_v3, %v156_v1  ;;  %v3530_v1 = vpack.c.bf16 %v1039_v62, %v1035_v61  ;;  %v1038_v3 = vld [vmem:[#allocation13 + $0x320] sm:$0xff]  ;;  %v1261_v61 = vld [vmem:[%s5385_s9 + $0xd0] sm:$0xff]  ;;  %v1262_v62 = vld [vmem:[%s5385_s9 + $0xd8] sm:$0xff] }
 0x404   :  { %v3532_v6 = vpack.c.bf16 %v1038_v3, %v1034_v2  ;;  %v1245_v2 = vld [vmem:[%s5385_s9 + $0x50] sm:$0xff]  ;;  %v1246_v3 = vld [vmem:[%s5385_s9 + $0x58] sm:$0xff] }
 0x405   :  { %v761_v11 = vadd.f32 %v760_v8, %v750_v34  ;;  %v1003_v34 = vld [vmem:[#allocation13 + $0x208] sm:$0xff]  ;;  %v3534_v8 = vpack.c.bf16 %v1047_v5, %v1043_v4  ;;  %v1263_v4 = vld [vmem:[%s5385_s9 + $0xe0] sm:$0xff] }
 0x406   :  { %v3514_v38 = vpack.c.bf16 %v1007_v36, %v1003_v34  ;;  %v1253_v34 = vld [vmem:[%s5385_s9 + $0x90] sm:$0xff]  ;;  %v1254_v36 = vld [vmem:[%s5385_s9 + $0x98] sm:$0xff]  ;;  %v1264_v5 = vld [vmem:[%s5385_s9 + $0xe8] sm:$0xff] }
 0x407   :  { %2928 = vrot.lane.b32.xlu1 %v761_v11, %s4443_s18  ;;  %2979 = vmatmul.mubr.msk.f32.vlgmr.msra.gmra.mrb[4].mxu0 %vm772_vm2, %v761_v11  ;;  %v3536_v11 = vpack.c.bf16 %v1046_v10, %v1042_v9  ;;  %v922_v9 = vld [vmem:[#allocation16 + $0x3] ss:$8 sm:$0x3] }
 0x408   :  { %3515 = vmatprep.subr.bf16.mxu1 %v3514_v38  ;;  %v3614_v38 = vpack.c.bf16 %v1254_v36, %v1253_v34  ;;  %3613 = vmatpush3.bf16.msra.mxu0 %v3612_v37  ;;  %v927_v10 = vrot.slane %v922_v9, %v4749_v51  ;;  %v931_v12 = vrot.slane %v922_v9, %v4754_v53  ;;  %v965_v34 = vld [vmem:[#allocation13 + $0xd8] sm:$0xff]  ;;  %v1004_v9 = vld [vmem:[#allocation13 + $0x210] sm:$0xff] }
 0x409   :  { %3517 = vmatpush1.bf16.msra.mxu1 %v3516_v44  ;;  %v3616_v44 = vpack.c.bf16 %v1238_v40, %v1237_v39  ;;  %v969_v36 = vld [vmem:[#allocation13 + $0xf8] sm:$0xff]  ;;  %v3556_v37 = vpack.c.bf16 %v960_v33, %v956_v32  ;;  %v964_v39 = vld [vmem:[#allocation13 + $0xd0] sm:$0xff] }
 0x40a   :  { %3519 = vmatprep.subr.bf16.mxu1 %v3518_v45  ;;  %3615 = vmatprep.subr.bf16.mxu0 %v3614_v38  ;;  %v3618_v45 = vpack.c.bf16 %v1256_v42, %v1255_v41  ;;  %v3558_v38 = vpack.c.bf16 %v969_v36, %v965_v34  ;;  %v968_v40 = vld [vmem:[#allocation13 + $0xf0] sm:$0xff]  ;;  %v973_v41 = vld [vmem:[#allocation13 + $0x118] sm:$0xff] }
 0x40b   :  { %v977_v42 = vld [vmem:[#allocation13 + $0x138] sm:$0xff]  ;;  %v1036_v36 = vld [vmem:[#allocation13 + $0x310] sm:$0xff] }
 0x40c   :  { %3617 = vmatpush3.bf16.msra.mxu0 %v3616_v44  ;;  %v3560_v44 = vpack.c.bf16 %v968_v40, %v964_v39  ;;  %v1041_v32 = vld [vmem:[#allocation13 + $0x338] sm:$0xff] }
 0x40d   :  { %3521 = vmatpush1.bf16.msra.mxu1 %v3520_v49  ;;  %v3620_v49 = vpack.c.bf16 %v1240_v47, %v1239_v46  ;;  %3619 = vmatprep.subr.bf16.mxu0 %v3618_v45  ;;  %v3562_v45 = vpack.c.bf16 %v977_v42, %v973_v41  ;;  %v972_v46 = vld [vmem:[#allocation13 + $0x110] sm:$0xff]  ;;  %v1049_v39 = vld [vmem:[#allocation13 + $0x378] sm:$0xff] }
 0x40e   :  { %3523 = vmatprep.subr.bf16.mxu1 %v3522_v54  ;;  %v3622_v54 = vpack.c.bf16 %v1258_v48, %v1257_v50  ;;  %v976_v47 = vld [vmem:[#allocation13 + $0x130] sm:$0xff]  ;;  %v981_v50 = vld [vmem:[#allocation13 + $0x158] sm:$0xff] }
 0x40f   :  { %v985_v48 = vld [vmem:[#allocation13 + $0x178] sm:$0xff]  ;;  %v1044_v42 = vld [vmem:[#allocation13 + $0x350] sm:$0xff] }
 0x410   :  { %3621 = vmatpush3.bf16.msra.mxu0 %v3620_v49  ;;  %v3564_v49 = vpack.c.bf16 %v976_v47, %v972_v46  ;;  %v1057_v46 = vld [vmem:[#allocation13 + $0x3b8] sm:$0xff] }
 0x411   :  { %3525 = vmatpush1.bf16.msra.mxu1 %v3524_v7  ;;  %v3624_v7 = vpack.c.bf16 %v1242_v57, %v1241_v55  ;;  %3623 = vmatprep.subr.bf16.mxu0 %v3622_v54  ;;  %v3566_v54 = vpack.c.bf16 %v985_v48, %v981_v50  ;;  %v980_v55 = vld [vmem:[#allocation13 + $0x150] sm:$0xff] }
 0x412   :  { %3527 = vmatprep.subr.bf16.mxu1 %v3526_v43  ;;  %v3626_v43 = vpack.c.bf16 %v1260_v58, %v1259_v52  ;;  %v984_v57 = vld [vmem:[#allocation13 + $0x170] sm:$0xff]  ;;  %v989_v52 = vld [vmem:[#allocation13 + $0x198] sm:$0xff] }
 0x413   :  { %v993_v58 = vld [vmem:[#allocation13 + $0x1b8] sm:$0xff]  ;;  %v1052_v48 = vld [vmem:[#allocation13 + $0x390] sm:$0xff] }
 0x414   :  { %3625 = vmatpush3.bf16.msra.mxu0 %v3624_v7  ;;  %v3568_v7 = vpack.c.bf16 %v984_v57, %v980_v55  ;;  %v1065_v55 = vld [vmem:[#allocation13 + $0x3f8] sm:$0xff] }
 0x415   :  { %3529 = vmatpush1.bf16.msra.mxu1 %v3528_v63  ;;  %v3628_v63 = vpack.c.bf16 %v1244_v60, %v1243_v59  ;;  %3627 = vmatprep.subr.bf16.mxu0 %v3626_v43  ;;  %v3570_v43 = vpack.c.bf16 %v993_v58, %v989_v52  ;;  %v988_v59 = vld [vmem:[#allocation13 + $0x190] sm:$0xff] }
 0x416   :  { %3531 = vmatprep.subr.bf16.mxu1 %v3530_v1  ;;  %v3630_v1 = vpack.c.bf16 %v1262_v62, %v1261_v61  ;;  %v992_v60 = vld [vmem:[#allocation13 + $0x1b0] sm:$0xff]  ;;  %v997_v61 = vld [vmem:[#allocation13 + $0x1d8] sm:$0xff] }
 0x417   :  { %v1001_v62 = vld [vmem:[#allocation13 + $0x1f8] sm:$0xff]  ;;  %v1060_v58 = vld [vmem:[#allocation13 + $0x3d0] sm:$0xff] }
 0x418   :  { %3629 = vmatpush3.bf16.msra.mxu0 %v3628_v63  ;;  %v3572_v63 = vpack.c.bf16 %v992_v60, %v988_v59  ;;  %v1443_v59 = vld [vmem:[#allocation10 + $0x18] sm:$0xff] }
 0x419   :  { %3533 = vmatpush1.bf16.msra.mxu1 %v3532_v6  ;;  %v3632_v6 = vpack.c.bf16 %v1246_v3, %v1245_v2  ;;  %3631 = vmatprep.subr.bf16.mxu0 %v3630_v1  ;;  %v3574_v1 = vpack.c.bf16 %v1001_v62, %v997_v61  ;;  %v996_v2 = vld [vmem:[#allocation13 + $0x1d0] sm:$0xff]  ;;  %v1440_v62 = vld [vmem:[#allocation10] sm:$0xff] }
 0x41a   :  { %3535 = vmatprep.subr.bf16.mxu1 %v3534_v8  ;;  %v3634_v8 = vpack.c.bf16 %v1264_v5, %v1263_v4  ;;  %v1000_v3 = vld [vmem:[#allocation13 + $0x1f0] sm:$0xff]  ;;  %v1005_v4 = vld [vmem:[#allocation13 + $0x218] sm:$0xff] }
 0x41b   :  { %v1009_v5 = vld [vmem:[#allocation13 + $0x238] sm:$0xff] }
 0x41c   :  { %3633 = vmatpush3.bf16.msra.mxu0 %v3632_v6  ;;  %v3576_v6 = vpack.c.bf16 %v1000_v3, %v996_v2  ;;  %v1447_v2 = vld [vmem:[#allocation10 + $0x38] sm:$0xff] }
 0x41d   :  { %3537 = vmatpush1.bf16.msra.mxu1 %v3536_v11  ;;  %3635 = vmatprep.subr.bf16.mxu0 %v3634_v8  ;;  %v3578_v8 = vpack.c.bf16 %v1009_v5, %v1005_v4  ;;  %v1444_v5 = vld [vmem:[#allocation10 + $0x20] sm:$0xff] }
 0x41e   :  { %3539 = vmatprep.subr.bf16.mxu1 %v3538_v14 }
 0x421   :  { %3541 = vmatpush1.bf16.msra.mxu1 %v3540_v18  ;;  %v940_v18 = vld [vmem:[#allocation13 + $0x10] sm:$0xff] }
 0x422   :  { %3543 = vmatprep.subr.bf16.mxu1 %v3542_v22  ;;  %v949_v22 = vld [vmem:[#allocation13 + $0x58] sm:$0xff] }
 0x423   :  { %v3550_v27 = vpack.c.bf16 %v953_v23, %v949_v22 }
 0x425   :  { %3545 = vmatpush1.bf16.msra.mxu1 %v3544_v25  ;;  %v3548_v25 = vpack.c.bf16 %v944_v20, %v940_v18  ;;  %v1016_v18 = vld [vmem:[#allocation13 + $0x270] sm:$0xff]  ;;  %v1021_v20 = vld [vmem:[#allocation13 + $0x298] sm:$0xff] }
 0x426   :  { %3547 = vmatprep.subr.bf16.mxu1 %v3546_v28  ;;  %v948_v28 = vld [vmem:[#allocation13 + $0x50] sm:$0xff] }
 0x4da   :  { %v842_v11 = vpop.f32.mrb[4].mxu0 }
 0x4db   :  { %v917_v13 = vadd.f32 %v4807_v17, %v842_v11  ;;  %v844_v14 = vpop.f32.mrb[5].mxu0  ;;  %v961_v17 = vld [vmem:[#allocation13 + $0xb8] sm:$0xff] }
 0x4dc   :  { %v919_v15 = vadd.f32 %v4809_v19, %v844_v14  ;;  %v3552_v19 = vpack.c.bf16 %v952_v29, %v948_v28  ;;  %v3554_v31 = vpack.c.bf16 %v961_v17, %v957_v30  ;;  %v1013_v11 = vld [vmem:[#allocation13 + $0x258] sm:$0xff]  ;;  %v1028_v17 = vld [vmem:[#allocation13 + $0x2d0] sm:$0xff] }
 0x4dd   :  { %v4893_v16 = vadd.f32 %v927_v10, %v917_v13  ;;  %v1008_v10 = vld [vmem:[#allocation13 + $0x230] sm:$0xff]  ;;  %v1033_v28 = vld [vmem:[#allocation13 + $0x2f8] sm:$0xff] }
 0x4de   :  { %v935_v21 = vadd.f32 %v931_v12, %v919_v15  ;;  %v1017_v12 = vld [vmem:[#allocation13 + $0x278] sm:$0xff]  ;;  %v3580_v13 = vpack.c.bf16 %v1008_v10, %v1004_v9  ;;  %v1012_v15 = vld [vmem:[#allocation13 + $0x250] sm:$0xff]  ;;  %v4205_v9 = vld [vmem:[#allocation2] sm:$0xff] }
 0x4df   :  { %v936_v26 = vmax.f32 %v4893_v16, 0.0  ;;  %v3582_v14 = vpack.c.bf16 %v1017_v12, %v1013_v11  ;;  %v3584_v22 = vpack.c.bf16 %v1016_v18, %v1012_v15  ;;  %v1247_v10 = vld [vmem:[%s5385_s9 + $0x60] sm:$0xff]  ;;  %v1248_v11 = vld [vmem:[%s5385_s9 + $0x68] sm:$0xff]  ;;  %v1265_v16 = vld [vmem:[%s5385_s9 + $0xf0] sm:$0xff] }
 0x4e0   :  { %v937_v24 = vmax.f32 %v935_v21, 0.0  ;;  %v1025_v21 = vld [vmem:[#allocation13 + $0x2b8] sm:$0xff]  ;;  %v3636_v12 = vpack.c.bf16 %v1248_v11, %v1247_v10  ;;  %v1604_v10 = vld [vmem:[#allocation13 + $0xa08] sm:$0xff] }
 0x4e1   :  { %v3586_v23 = vpack.c.bf16 %v1025_v21, %v1021_v20  ;;  %v1250_v15 = vld [vmem:[%s5385_s9 + $0x78] sm:$0xff]  ;;  %v1540_v20 = vld [vmem:[#allocation13 + $0x808] sm:$0xff] }
 0x4e2   :  { %1153 = vmatprep.mubr.f32.mxu1 %v937_v24  ;;  %3637 = vmatpush3.bf16.msra.mxu0 %v3636_v12  ;;  %v1544_v21 = vld [vmem:[#allocation13 + $0x828] sm:$0xff] }
 0x4e3   :  { %1154 = vmatmul.mubr.f32.vlgmr.msra.gmra.mrb[6].mxu1 %v936_v26  ;;  %v1608_v11 = vld [vmem:[#allocation13 + $0xa28] sm:$0xff] }
 0x4e4   :  { %3549 = vmatpush1.bf16.msra.mxu1 %v3548_v25  ;;  %1224 = vmatprep.mubr.f32.mxu1 %v937_v24  ;;  %v1020_v24 = vld [vmem:[#allocation13 + $0x290] sm:$0xff] }
 0x4e5   :  { %3551 = vmatprep.subr.bf16.mxu1 %v3550_v27  ;;  %v1024_v25 = vld [vmem:[#allocation13 + $0x2b0] sm:$0xff]  ;;  %v1029_v27 = vld [vmem:[#allocation13 + $0x2d8] sm:$0xff] }
 0x4e6   :  { %v3588_v29 = vpack.c.bf16 %v1024_v25, %v1020_v24  ;;  %v3590_v30 = vpack.c.bf16 %v1033_v28, %v1029_v27  ;;  %v1543_v24 = vld [vmem:[#allocation13 + $0x820] sm:$0xff]  ;;  %v1548_v25 = vld [vmem:[#allocation13 + $0x848] sm:$0xff] }
 0x4e7   :  { %v1552_v27 = vld [vmem:[#allocation13 + $0x868] sm:$0xff] }
 0x4e8   :  { %3553 = vmatpush1.bf16.msra.mxu1 %v3552_v19  ;;  %v1032_v19 = vld [vmem:[#allocation13 + $0x2f0] sm:$0xff] }
 0x4e9   :  { %3555 = vmatprep.subr.bf16.mxu1 %v3554_v31  ;;  %v1037_v31 = vld [vmem:[#allocation13 + $0x318] sm:$0xff]  ;;  %v3592_v33 = vpack.c.bf16 %v1032_v19, %v1028_v17  ;;  %v1551_v17 = vld [vmem:[#allocation13 + $0x860] sm:$0xff]  ;;  %v1556_v19 = vld [vmem:[#allocation13 + $0x888] sm:$0xff] }
 0x4ea   :  { %v3594_v34 = vpack.c.bf16 %v1041_v32, %v1037_v31  ;;  %v1560_v31 = vld [vmem:[#allocation13 + $0x8a8] sm:$0xff] }
 0x4ec   :  { %3557 = vmatpush1.bf16.msra.mxu1 %v3556_v37  ;;  %v1040_v37 = vld [vmem:[#allocation13 + $0x330] sm:$0xff] }
 0x4ed   :  { %3559 = vmatprep.subr.bf16.mxu1 %v3558_v38  ;;  %v1045_v38 = vld [vmem:[#allocation13 + $0x358] sm:$0xff]  ;;  %v3596_v40 = vpack.c.bf16 %v1040_v37, %v1036_v36  ;;  %v1559_v36 = vld [vmem:[#allocation13 + $0x8a0] sm:$0xff]  ;;  %v1564_v37 = vld [vmem:[#allocation13 + $0x8c8] sm:$0xff] }
 0x4ee   :  { %v3598_v41 = vpack.c.bf16 %v1049_v39, %v1045_v38  ;;  %v1568_v38 = vld [vmem:[#allocation13 + $0x8e8] sm:$0xff]  ;;  %v1283_v39 = vld [vmem:[%s5385_s9 + $0x180] sm:$0xff] }
 0x4f0   :  { %3561 = vmatpush1.bf16.msra.mxu1 %v3560_v44  ;;  %v1048_v44 = vld [vmem:[#allocation13 + $0x370] sm:$0xff] }
 0x4f1   :  { %3563 = vmatprep.subr.bf16.mxu1 %v3562_v45  ;;  %v1053_v45 = vld [vmem:[#allocation13 + $0x398] sm:$0xff]  ;;  %v3600_v47 = vpack.c.bf16 %v1048_v44, %v1044_v42  ;;  %v3694_v44 = vpack.c.bf16 %v1568_v38, %v1564_v37  ;;  %v1640_v37 = vld [vmem:[#allocation13 + $0xb28] sm:$0xff] }
 0x4f2   :  { %v3602_v50 = vpack.c.bf16 %v1057_v46, %v1053_v45  ;;  %v1563_v45 = vld [vmem:[#allocation13 + $0x8c0] sm:$0xff] }
 0x4f3   :  { %v1567_v46 = vld [vmem:[#allocation13 + $0x8e0] sm:$0xff] }
 0x4f4   :  { %3565 = vmatpush1.bf16.msra.mxu1 %v3564_v49  ;;  %v1056_v49 = vld [vmem:[#allocation13 + $0x3b0] sm:$0xff] }
 0x4f5   :  { %3567 = vmatprep.subr.bf16.mxu1 %v3566_v54  ;;  %v1061_v54 = vld [vmem:[#allocation13 + $0x3d8] sm:$0xff]  ;;  %v3604_v57 = vpack.c.bf16 %v1056_v49, %v1052_v48  ;;  %v3696_v48 = vpack.c.bf16 %v1567_v46, %v1563_v45  ;;  %v1643_v46 = vld [vmem:[#allocation13 + $0xb40] sm:$0xff] }
 0x4f6   :  { %v3606_v52 = vpack.c.bf16 %v1065_v55, %v1061_v54  ;;  %v1571_v54 = vld [vmem:[#allocation13 + $0x900] sm:$0xff] }
 0x4f7   :  { %v1575_v55 = vld [vmem:[#allocation13 + $0x920] sm:$0xff] }
 0x4f8   :  { %3569 = vmatpush1.bf16.msra.mxu1 %v3568_v7  ;;  %v1064_v7 = vld [vmem:[#allocation13 + $0x3f0] sm:$0xff] }
 0x4f9   :  { %3571 = vmatprep.subr.bf16.mxu1 %v3570_v43  ;;  %v1441_v43 = vld [vmem:[#allocation10 + $0x8] sm:$0xff]  ;;  %v3608_v60 = vpack.c.bf16 %v1064_v7, %v1060_v58  ;;  %v3700_v58 = vpack.c.bf16 %v1575_v55, %v1571_v54  ;;  %v1651_v55 = vld [vmem:[#allocation13 + $0xb80] sm:$0xff] }
 0x4fa   :  { %v3674_v61 = vpack.c.bf16 %v1443_v59, %v1441_v43  ;;  %v1579_v43 = vld [vmem:[#allocation13 + $0x940] sm:$0xff] }
 0x4fb   :  { %v1583_v59 = vld [vmem:[#allocation13 + $0x960] sm:$0xff] }
 0x4fc   :  { %3573 = vmatpush1.bf16.msra.mxu1 %v3572_v63  ;;  %v1442_v63 = vld [vmem:[#allocation10 + $0x10] sm:$0xff] }
 0x4fd   :  { %3575 = vmatprep.subr.bf16.mxu1 %v3574_v1  ;;  %v1445_v1 = vld [vmem:[#allocation10 + $0x28] sm:$0xff]  ;;  %v3676_v3 = vpack.c.bf16 %v1442_v63, %v1440_v62  ;;  %v3704_v62 = vpack.c.bf16 %v1583_v59, %v1579_v43  ;;  %v1659_v59 = vld [vmem:[#allocation13 + $0xbc0] sm:$0xff] }
 0x4fe   :  { %v3678_v4 = vpack.c.bf16 %v1447_v2, %v1445_v1  ;;  %v1587_v1 = vld [vmem:[#allocation13 + $0x980] sm:$0xff] }
 0x4ff   :  { %v1591_v2 = vld [vmem:[#allocation13 + $0x9a0] sm:$0xff] }
 0x500   :  { %3577 = vmatpush1.bf16.msra.mxu1 %v3576_v6  ;;  %v1446_v6 = vld [vmem:[#allocation10 + $0x30] sm:$0xff] }
 0x501   :  { %3579 = vmatprep.subr.bf16.mxu1 %v3578_v8  ;;  %v3680_v8 = vpack.c.bf16 %v1446_v6, %v1444_v5  ;;  %v3708_v5 = vpack.c.bf16 %v1591_v2, %v1587_v1 }
 0x504   :  { %3581 = vmatpush1.bf16.msra.mxu1 %v3580_v13 }
 0x505   :  { %3583 = vmatprep.subr.bf16.mxu1 %v3582_v14  ;;  %v1249_v14 = vld [vmem:[%s5385_s9 + $0x70] sm:$0xff] }
 0x506   :  { %v3640_v18 = vpack.c.bf16 %v1250_v15, %v1249_v14  ;;  %v1612_v14 = vld [vmem:[#allocation13 + $0xa48] sm:$0xff] }
 0x507   :  { %v1616_v15 = vld [vmem:[#allocation13 + $0xa68] sm:$0xff] }
 0x508   :  { %3585 = vmatpush1.bf16.msra.mxu1 %v3584_v22  ;;  %v1539_v22 = vld [vmem:[#allocation13 + $0x800] sm:$0xff] }
 0x509   :  { %3587 = vmatprep.subr.bf16.mxu1 %v3586_v23  ;;  %v3682_v23 = vpack.c.bf16 %v1544_v21, %v1540_v20  ;;  %v3684_v28 = vpack.c.bf16 %v1543_v24, %v1539_v22  ;;  %v3718_v20 = vpack.c.bf16 %v1616_v15, %v1612_v14  ;;  %v1611_v21 = vld [vmem:[#allocation13 + $0xa40] sm:$0xff]  ;;  %v1624_v24 = vld [vmem:[#allocation13 + $0xaa8] sm:$0xff]  ;;  %v1270_v14 = vld [vmem:[%s5385_s9 + $0x118] sm:$0xff] }
 0x50a   :  { %v1615_v22 = vld [vmem:[#allocation13 + $0xa60] sm:$0xff] }
 0x50b   :  { %v1287_v15 = vld [vmem:[%s5385_s9 + $0x1a0] sm:$0xff] }
 0x50c   :  { %3589 = vmatpush1.bf16.msra.mxu1 %v3588_v29  ;;  %v3686_v29 = vpack.c.bf16 %v1552_v27, %v1548_v25  ;;  %v3720_v25 = vpack.c.bf16 %v1615_v22, %v1611_v21  ;;  %v1271_v22 = vld [vmem:[%s5385_s9 + $0x120] sm:$0xff] }
 0x50d   :  { %3591 = vmatprep.subr.bf16.mxu1 %v3590_v30  ;;  %v1547_v30 = vld [vmem:[#allocation13 + $0x840] sm:$0xff] }
 0x50e   :  { %v3688_v32 = vpack.c.bf16 %v1551_v17, %v1547_v30  ;;  %v1628_v30 = vld [vmem:[#allocation13 + $0xac8] sm:$0xff] }
 0x50f   :  { %v1632_v17 = vld [vmem:[#allocation13 + $0xae8] sm:$0xff] }
 0x510   :  { %3593 = vmatpush1.bf16.msra.mxu1 %v3592_v33  ;;  %v3690_v33 = vpack.c.bf16 %v1560_v31, %v1556_v19  ;;  %v3726_v31 = vpack.c.bf16 %v1632_v17, %v1628_v30  ;;  %v1274_v30 = vld [vmem:[%s5385_s9 + $0x138] sm:$0xff]  ;;  %v1291_v17 = vld [vmem:[%s5385_s9 + $0x1c0] sm:$0xff] }
 0x511   :  { %3595 = vmatprep.subr.bf16.mxu1 %v3594_v34  ;;  %v1555_v34 = vld [vmem:[#allocation13 + $0x880] sm:$0xff] }
 0x514   :  { %3597 = vmatpush1.bf16.msra.mxu1 %v3596_v40  ;;  %v1284_v40 = vld [vmem:[%s5385_s9 + $0x188] sm:$0xff] }
 0x515   :  { %3599 = vmatprep.subr.bf16.mxu1 %v3598_v41  ;;  %v3692_v41 = vpack.c.bf16 %v1559_v36, %v1555_v34  ;;  %v3642_v42 = vpack.c.bf16 %v1284_v40, %v1283_v39  ;;  %v1636_v36 = vld [vmem:[#allocation13 + $0xb08] sm:$0xff]  ;;  %v1635_v39 = vld [vmem:[#allocation13 + $0xb00] sm:$0xff] }
 0x516   :  { %v3730_v38 = vpack.c.bf16 %v1640_v37, %v1636_v36  ;;  %v1639_v40 = vld [vmem:[#allocation13 + $0xb20] sm:$0xff]  ;;  %v1293_v36 = vld [vmem:[%s5385_s9 + $0x1d0] sm:$0xff]  ;;  %v1294_v37 = vld [vmem:[%s5385_s9 + $0x1d8] sm:$0xff] }
 0x518   :  { %3601 = vmatpush1.bf16.msra.mxu1 %v3600_v47  ;;  %v1572_v47 = vld [vmem:[#allocation13 + $0x908] sm:$0xff] }
 0x519   :  { %3603 = vmatprep.subr.bf16.mxu1 %v3602_v50  ;;  %v1576_v50 = vld [vmem:[#allocation13 + $0x928] sm:$0xff] }
 0x51a   :  { %v3698_v49 = vpack.c.bf16 %v1576_v50, %v1572_v47  ;;  %v1647_v47 = vld [vmem:[#allocation13 + $0xb60] sm:$0xff] }
 0x51b   :  { %v3736_v50 = vpack.c.bf16 %v1647_v47, %v1643_v46  ;;  %v1279_v47 = vld [vmem:[%s5385_s9 + $0x160] sm:$0xff] }
 0x51c   :  { %3605 = vmatpush1.bf16.msra.mxu1 %v3604_v57  ;;  %v1580_v57 = vld [vmem:[#allocation13 + $0x948] sm:$0xff] }
 0x51d   :  { %3607 = vmatprep.subr.bf16.mxu1 %v3606_v52  ;;  %v1584_v52 = vld [vmem:[#allocation13 + $0x968] sm:$0xff] }
 0x51e   :  { %v3702_v7 = vpack.c.bf16 %v1584_v52, %v1580_v57  ;;  %v1655_v57 = vld [vmem:[#allocation13 + $0xba0] sm:$0xff] }
 0x51f   :  { %v3740_v52 = vpack.c.bf16 %v1655_v57, %v1651_v55  ;;  %v1281_v57 = vld [vmem:[%s5385_s9 + $0x170] sm:$0xff] }
 0x520   :  { %3609 = vmatpush1.bf16.msra.mxu1 %v3608_v60  ;;  %v1588_v60 = vld [vmem:[#allocation13 + $0x988] sm:$0xff] }
 0x521   :  { %3675 = vmatprep.subr.bf16.mxu1 %v3674_v61  ;;  %v1592_v61 = vld [vmem:[#allocation13 + $0x9a8] sm:$0xff] }
 0x522   :  { %v3706_v63 = vpack.c.bf16 %v1592_v61, %v1588_v60  ;;  %v1663_v60 = vld [vmem:[#allocation13 + $0xbe0] sm:$0xff] }
 0x523   :  { %1225 = vmatmul.mubr.f32.vlgmr.msra.gmra.mrb[8].mxu1 %v936_v26  ;;  %v1266_v26 = vld [vmem:[%s5385_s9 + $0xf8] sm:$0xff]  ;;  %v3744_v61 = vpack.c.bf16 %v1663_v60, %v1659_v59 }
 0x524   :  { %3677 = vmatpush1.bf16.msra.mxu1 %v3676_v3  ;;  %1525 = vmatprep.mubr.f32.mxu1 %v4453_v0  ;;  %v3638_v13 = vpack.c.bf16 %v1266_v26, %v1265_v16  ;;  %v1596_v3 = vld [vmem:[#allocation13 + $0x9c8] sm:$0xff]  ;;  %v3714_v16 = vpack.c.bf16 %v1608_v11, %v1604_v10  ;;  %v1603_v26 = vld [vmem:[#allocation13 + $0xa00] sm:$0xff]  ;;  %v1286_v10 = vld [vmem:[%s5385_s9 + $0x198] sm:$0xff] }
 0x525   :  { %3679 = vmatprep.subr.bf16.mxu1 %v3678_v4  ;;  %v1600_v4 = vld [vmem:[#allocation13 + $0x9e8] sm:$0xff] }
 0x526   :  { %3639 = vmatprep.subr.bf16.mxu0 %v3638_v13  ;;  %v3710_v6 = vpack.c.bf16 %v1600_v4, %v1596_v3  ;;  %v1607_v13 = vld [vmem:[#allocation13 + $0xa20] sm:$0xff] }
 0x527   :  { %3641 = vmatpush3.bf16.msra.mxu0 %v3640_v18  ;;  %v3716_v18 = vpack.c.bf16 %v1607_v13, %v1603_v26  ;;  %v1269_v13 = vld [vmem:[%s5385_s9 + $0x110] sm:$0xff] }
 0x528   :  { %3681 = vmatpush1.bf16.msra.mxu1 %v3680_v8  ;;  %3643 = vmatprep.subr.bf16.mxu0 %v3642_v42  ;;  %v1595_v8 = vld [vmem:[#allocation13 + $0x9c0] sm:$0xff]  ;;  %v1644_v42 = vld [vmem:[#allocation13 + $0xb48] sm:$0xff] }
 0x529   :  { %3683 = vmatprep.subr.bf16.mxu1 %v3682_v23  ;;  %v1620_v23 = vld [vmem:[#allocation13 + $0xa88] sm:$0xff] }
 0x52a   :  { %v3722_v27 = vpack.c.bf16 %v1624_v24, %v1620_v23  ;;  %v1272_v23 = vld [vmem:[%s5385_s9 + $0x128] sm:$0xff]  ;;  %v1289_v24 = vld [vmem:[%s5385_s9 + $0x1b0] sm:$0xff] }
 0x52b   :  { %2981 = vmatmul.mubr.msk.f32.vlgmr.msra.gmra.mrb[10].mxu1 %vm847_vm1, %v4205_v9  ;;  %v1599_v9 = vld [vmem:[#allocation13 + $0x9e0] sm:$0xff] }
 0x52c   :  { %3685 = vmatpush1.bf16.msra.mxu1 %v3684_v28  ;;  %v3712_v12 = vpack.c.bf16 %v1599_v9, %v1595_v8  ;;  %v1619_v28 = vld [vmem:[#allocation13 + $0xa80] sm:$0xff]  ;;  %v1285_v9 = vld [vmem:[%s5385_s9 + $0x190] sm:$0xff] }
 0x52d   :  { %3687 = vmatprep.subr.bf16.mxu1 %v3686_v29  ;;  %v1623_v29 = vld [vmem:[#allocation13 + $0xaa0] sm:$0xff]  ;;  %v3646_v26 = vpack.c.bf16 %v1286_v10, %v1285_v9  ;;  %v1554_v9 = vld [vmem:[#allocation13 + $0x878] sm:$0xff] }
 0x52e   :  { %v3724_v19 = vpack.c.bf16 %v1623_v29, %v1619_v28  ;;  %v1273_v29 = vld [vmem:[%s5385_s9 + $0x130] sm:$0xff] }
 0x530   :  { %3689 = vmatpush1.bf16.msra.mxu1 %v3688_v32  ;;  %v1627_v32 = vld [vmem:[#allocation13 + $0xac0] sm:$0xff] }
 0x531   :  { %3691 = vmatprep.subr.bf16.mxu1 %v3690_v33  ;;  %v1631_v33 = vld [vmem:[#allocation13 + $0xae0] sm:$0xff] }
 0x532   :  { %v3728_v34 = vpack.c.bf16 %v1631_v33, %v1627_v32  ;;  %v1275_v33 = vld [vmem:[%s5385_s9 + $0x140] sm:$0xff] }
 0x534   :  { %3693 = vmatpush1.bf16.msra.mxu1 %v3692_v41  ;;  %v3732_v41 = vpack.c.bf16 %v1639_v40, %v1635_v39  ;;  %v3662_v39 = vpack.c.bf16 %v1294_v37, %v1293_v36  ;;  %v1277_v40 = vld [vmem:[%s5385_s9 + $0x150] sm:$0xff] }
 0x535   :  { %3695 = vmatprep.subr.bf16.mxu1 %v3694_v44  ;;  %v1648_v44 = vld [vmem:[#allocation13 + $0xb68] sm:$0xff]  ;;  %v1569_v36 = vld [vmem:[#allocation13 + $0x8f0] sm:$0xff] }
 0x536   :  { %v3734_v45 = vpack.c.bf16 %v1648_v44, %v1644_v42  ;;  %v1295_v42 = vld [vmem:[%s5385_s9 + $0x1e0] sm:$0xff]  ;;  %v1296_v44 = vld [vmem:[%s5385_s9 + $0x1e8] sm:$0xff] }
 0x537   :  { %v3666_v46 = vpack.c.bf16 %v1296_v44, %v1295_v42 }
 0x538   :  { %3697 = vmatpush1.bf16.msra.mxu1 %v3696_v48  ;;  %v1652_v48 = vld [vmem:[#allocation13 + $0xb88] sm:$0xff] }
 0x539   :  { %3699 = vmatprep.subr.bf16.mxu1 %v3698_v49  ;;  %v1656_v49 = vld [vmem:[#allocation13 + $0xba8] sm:$0xff] }
 0x53a   :  { %v3738_v54 = vpack.c.bf16 %v1656_v49, %v1652_v48  ;;  %v1297_v48 = vld [vmem:[%s5385_s9 + $0x1f0] sm:$0xff]  ;;  %v1298_v49 = vld [vmem:[%s5385_s9 + $0x1f8] sm:$0xff] }
 0x53b   :  { %v3670_v55 = vpack.c.bf16 %v1298_v49, %v1297_v48 }
 0x53c   :  { %3701 = vmatpush1.bf16.msra.mxu1 %v3700_v58  ;;  %v1660_v58 = vld [vmem:[#allocation13 + $0xbc8] sm:$0xff] }
 0x53d   :  { %3703 = vmatprep.subr.bf16.mxu1 %v3702_v7  ;;  %v1664_v7 = vld [vmem:[#allocation13 + $0xbe8] sm:$0xff] }
 0x53e   :  { %v3742_v43 = vpack.c.bf16 %v1664_v7, %v1660_v58  ;;  %v1542_v58 = vld [vmem:[#allocation13 + $0x818] sm:$0xff] }
 0x53f   :  { %v1546_v7 = vld [vmem:[#allocation13 + $0x838] sm:$0xff] }
 0x540   :  { %3705 = vmatpush1.bf16.msra.mxu1 %v3704_v62  ;;  %v4926_v62 = vld [vmem:[#allocation16 + $0x4] ss:$8 sm:$0xf]  ;;  %v3746_v59 = vpack.c.bf16 %v1546_v7, %v1542_v58 }
 0x541   :  { %3707 = vmatprep.subr.bf16.mxu1 %v3706_v63  ;;  %v1072_v63 = vrot.slane %v4926_v62, %v4749_v51  ;;  %v1076_v1 = vrot.slane %v4926_v62, %v4754_v53  ;;  %v1080_v60 = vrot.slane %v4926_v62, %v4768_v35 }
 0x544   :  { %3709 = vmatpush1.bf16.msra.mxu1 %v3708_v5  ;;  %v1267_v5 = vld [vmem:[%s5385_s9 + $0x100] sm:$0xff] }
 0x545   :  { %3711 = vmatprep.subr.bf16.mxu1 %v3710_v6  ;;  %v1268_v6 = vld [vmem:[%s5385_s9 + $0x108] sm:$0xff] }
 0x548   :  { %3713 = vmatpush1.bf16.msra.mxu1 %v3712_v12  ;;  %v3644_v12 = vpack.c.bf16 %v1268_v6, %v1267_v5  ;;  %v1449_v6 = vld [vmem:[#allocation16 + $0x6] ss:$8 sm:$0x3] }
 0x549   :  { %3715 = vmatprep.subr.bf16.mxu1 %v3714_v16 }
 0x54c   :  { %3717 = vmatpush1.bf16.msra.mxu1 %v3716_v18  ;;  %v1288_v18 = vld [vmem:[%s5385_s9 + $0x1a8] sm:$0xff] }
 0x54d   :  { %3719 = vmatprep.subr.bf16.mxu1 %v3718_v20  ;;  %v3648_v20 = vpack.c.bf16 %v1270_v14, %v1269_v13  ;;  %v3650_v21 = vpack.c.bf16 %v1288_v18, %v1287_v15  ;;  %v1549_v13 = vld [vmem:[#allocation13 + $0x850] sm:$0xff]  ;;  %v1558_v15 = vld [vmem:[#allocation13 + $0x898] sm:$0xff] }
 0x54e   :  { %v1553_v14 = vld [vmem:[#allocation13 + $0x870] sm:$0xff]  ;;  %v1562_v18 = vld [vmem:[#allocation13 + $0x8b8] sm:$0xff] }
 0x550   :  { %3721 = vmatpush1.bf16.msra.mxu1 %v3720_v25  ;;  %v1290_v25 = vld [vmem:[%s5385_s9 + $0x1b8] sm:$0xff] }
 0x551   :  { %3723 = vmatprep.subr.bf16.mxu1 %v3722_v27  ;;  %v3652_v27 = vpack.c.bf16 %v1272_v23, %v1271_v22  ;;  %v3654_v28 = vpack.c.bf16 %v1290_v25, %v1289_v24  ;;  %v3754_v24 = vpack.c.bf16 %v1562_v18, %v1558_v15  ;;  %v1557_v25 = vld [vmem:[#allocation13 + $0x890] sm:$0xff]  ;;  %v1854_v18 = vld [vmem:[#allocation11 + $0x448] sm:$0xff] }
 0x552   :  { %v1851_v15 = vld [vmem:[#allocation11 + $0x430] sm:$0xff] }
 0x554   :  { %3725 = vmatpush1.bf16.msra.mxu1 %v3724_v19  ;;  %v1292_v19 = vld [vmem:[%s5385_s9 + $0x1c8] sm:$0xff] }
 0x555   :  { %3727 = vmatprep.subr.bf16.mxu1 %v3726_v31  ;;  %v3656_v31 = vpack.c.bf16 %v1274_v30, %v1273_v29  ;;  %v3658_v32 = vpack.c.bf16 %v1292_v19, %v1291_v17  ;;  %v1535_v30 = vld [vmem:[#allocation7 + $0x38] sm:$0xff]  ;;  %v1566_v17 = vld [vmem:[#allocation13 + $0x8d8] sm:$0xff] }
 0x556   :  { %v1570_v19 = vld [vmem:[#allocation13 + $0x8f8] sm:$0xff] }
 0x558   :  { %3729 = vmatpush1.bf16.msra.mxu1 %v3728_v34  ;;  %v1276_v34 = vld [vmem:[%s5385_s9 + $0x148] sm:$0xff] }
 0x559   :  { %3731 = vmatprep.subr.bf16.mxu1 %v3730_v38  ;;  %v3660_v38 = vpack.c.bf16 %v1276_v34, %v1275_v33  ;;  %v1565_v34 = vld [vmem:[#allocation13 + $0x8d0] sm:$0xff] }
 0x55a   :  { %v3760_v42 = vpack.c.bf16 %v1569_v36, %v1565_v34  ;;  %v1617_v34 = vld [vmem:[#allocation13 + $0xa70] sm:$0xff]  ;;  %v1622_v36 = vld [vmem:[#allocation13 + $0xa98] sm:$0xff] }
 0x55c   :  { %3733 = vmatpush1.bf16.msra.mxu1 %v3732_v41  ;;  %v1278_v41 = vld [vmem:[%s5385_s9 + $0x158] sm:$0xff] }
 0x55d   :  { %3735 = vmatprep.subr.bf16.mxu1 %v3734_v45  ;;  %v3664_v45 = vpack.c.bf16 %v1278_v41, %v1277_v40  ;;  %v1578_v40 = vld [vmem:[#allocation13 + $0x938] sm:$0xff] }
 0x560   :  { %3737 = vmatpush1.bf16.msra.mxu1 %v3736_v50  ;;  %v1280_v50 = vld [vmem:[%s5385_s9 + $0x168] sm:$0xff] }
 0x561   :  { %3739 = vmatprep.subr.bf16.mxu1 %v3738_v54  ;;  %v3668_v54 = vpack.c.bf16 %v1280_v50, %v1279_v47  ;;  %v1582_v47 = vld [vmem:[#allocation13 + $0x958] sm:$0xff] }
 0x562   :  { %v1586_v50 = vld [vmem:[#allocation13 + $0x978] sm:$0xff] }
 0x563   :  { %v3766_v49 = vpack.c.bf16 %v1586_v50, %v1582_v47  ;;  %v1621_v50 = vld [vmem:[#allocation13 + $0xa90] sm:$0xff] }
 0x564   :  { %3741 = vmatpush1.bf16.msra.mxu1 %v3740_v52  ;;  %v1282_v52 = vld [vmem:[%s5385_s9 + $0x178] sm:$0xff] }
 0x565   :  { %3743 = vmatprep.subr.bf16.mxu1 %v3742_v43  ;;  %v3672_v43 = vpack.c.bf16 %v1282_v52, %v1281_v57  ;;  %v1590_v57 = vld [vmem:[#allocation13 + $0x998] sm:$0xff] }
 0x566   :  { %v1594_v52 = vld [vmem:[#allocation13 + $0x9b8] sm:$0xff] }
 0x567   :  { %v3770_v7 = vpack.c.bf16 %v1594_v52, %v1590_v57  ;;  %v1861_v52 = vld [vmem:[#allocation11 + $0x480] sm:$0xff] }
 0x568   :  { %3745 = vmatpush1.bf16.msra.mxu1 %v3744_v61  ;;  %v1084_v61 = vrot.slane %v4926_v62, %v4761_v56  ;;  %v1458_v62 = vrot.slane %v1449_v6, %v4754_v53 }
 0x5b6   :  { %v1155_v2 = vpop.f32.mrb[6].mxu1 }
 0x5b7   :  { %v1156_v3 = vadd.f32 %v1155_v2, %v1072_v63  ;;  %v1157_v4 = vpop.f32.mrb[7].mxu1 }
 0x5b8   :  { %v1158_v8 = vadd.f32 %v1157_v4, %v1076_v1  ;;  %v1545_v4 = vld [vmem:[#allocation13 + $0x830] sm:$0xff] }
 0x5b9   :  { %v1231_v16 = vmax.f32 %v1156_v3, 0.0  ;;  %v1541_v3 = vld [vmem:[#allocation13 + $0x810] sm:$0xff] }
 0x5ba   :  { %v1232_v11 = vmax.f32 %v1158_v8, 0.0  ;;  %v1550_v8 = vld [vmem:[#allocation13 + $0x858] sm:$0xff] }
 0x5bc   :  { %1364 = vmatprep.mubr.f32.mxu0 %v1232_v11  ;;  %v3748_v11 = vpack.c.bf16 %v1545_v4, %v1541_v3  ;;  %v1601_v3 = vld [vmem:[#allocation13 + $0x9f0] sm:$0xff]  ;;  %v1606_v4 = vld [vmem:[#allocation13 + $0xa18] sm:$0xff] }
 0x5bd   :  { %1365 = vmatmul.mubr.f32.vlgmr.msra.gmra.mrb[6].mxu0 %v1231_v16  ;;  %v1454_v16 = vrot.slane %v1449_v6, %v4749_v51  ;;  %v1846_v6 = vld [vmem:[#allocation11 + $0x408] sm:$0xff] }
 0x5be   :  { %3645 = vmatpush3.bf16.msra.mxu0 %v3644_v12 }
 0x5bf   :  { %3647 = vmatprep.subr.bf16.mxu0 %v3646_v26  ;;  %v3750_v26 = vpack.c.bf16 %v1554_v9, %v1550_v8  ;;  %v1848_v8 = vld [vmem:[#allocation11 + $0x418] sm:$0xff]  ;;  %v1845_v9 = vld [vmem:[#allocation11 + $0x400] sm:$0xff] }
 0x5c2   :  { %3649 = vmatpush3.bf16.msra.mxu0 %v3648_v20 }
 0x5c3   :  { %3651 = vmatprep.subr.bf16.mxu0 %v3650_v21  ;;  %v3752_v21 = vpack.c.bf16 %v1553_v14, %v1549_v13 }
 0x5c6   :  { %3653 = vmatpush3.bf16.msra.mxu0 %v3652_v27  ;;  %v1561_v27 = vld [vmem:[#allocation13 + $0x8b0] sm:$0xff] }
 0x5c7   :  { %3655 = vmatprep.subr.bf16.mxu0 %v3654_v28  ;;  %v3756_v33 = vpack.c.bf16 %v1561_v27, %v1557_v25  ;;  %v1618_v25 = vld [vmem:[#allocation13 + $0xa78] sm:$0xff] }
 0x5ca   :  { %3657 = vmatpush3.bf16.msra.mxu0 %v3656_v31  ;;  %v1534_v31 = vld [vmem:[#allocation7 + $0x30] sm:$0xff] }
 0x5cb   :  { %3659 = vmatprep.subr.bf16.mxu0 %v3658_v32 }
 0x5ce   :  { %3661 = vmatpush3.bf16.msra.mxu0 %v3660_v38  ;;  %v3758_v38 = vpack.c.bf16 %v1570_v19, %v1566_v17  ;;  %v1858_v19 = vld [vmem:[#allocation11 + $0x468] sm:$0xff] }
 0x5cf   :  { %3663 = vmatprep.subr.bf16.mxu0 %v3662_v39  ;;  %v1574_v39 = vld [vmem:[#allocation13 + $0x918] sm:$0xff] }
 0x5d0   :  { %v3762_v44 = vpack.c.bf16 %v1578_v40, %v1574_v39  ;;  %v1857_v40 = vld [vmem:[#allocation11 + $0x460] sm:$0xff] }
 0x5d2   :  { %3665 = vmatpush3.bf16.msra.mxu0 %v3664_v45  ;;  %v1573_v45 = vld [vmem:[#allocation13 + $0x910] sm:$0xff] }
 0x5d3   :  { %3667 = vmatprep.subr.bf16.mxu0 %v3666_v46  ;;  %v1577_v46 = vld [vmem:[#allocation13 + $0x930] sm:$0xff] }
 0x5d4   :  { %v3764_v48 = vpack.c.bf16 %v1577_v46, %v1573_v45  ;;  %v1862_v45 = vld [vmem:[#allocation11 + $0x488] sm:$0xff]  ;;  %v1864_v46 = vld [vmem:[#allocation11 + $0x498] sm:$0xff] }
 0x5d5   :  { %v3826_v57 = vpack.c.bf16 %v1864_v46, %v1862_v45  ;;  %v1879_v45 = vld [vmem:[#allocation11 + $0x510] sm:$0xff] }
 0x5d6   :  { %3669 = vmatpush3.bf16.msra.mxu0 %v3668_v54  ;;  %v1581_v54 = vld [vmem:[#allocation13 + $0x950] sm:$0xff] }
 0x5d7   :  { %3671 = vmatprep.subr.bf16.mxu0 %v3670_v55  ;;  %v1585_v55 = vld [vmem:[#allocation13 + $0x970] sm:$0xff] }
 0x5d8   :  { %v3768_v58 = vpack.c.bf16 %v1585_v55, %v1581_v54  ;;  %v1634_v54 = vld [vmem:[#allocation13 + $0xaf8] sm:$0xff] }
 0x5da   :  { %3673 = vmatpush3.bf16.msra.mxu0 %v3672_v43  ;;  %v1589_v43 = vld [vmem:[#allocation13 + $0x990] sm:$0xff] }
 0x5db   :  { %3747 = vmatprep.subr.bf16.mxu0 %v3746_v59  ;;  %v1593_v59 = vld [vmem:[#allocation13 + $0x9b0] sm:$0xff] }
 0x5f6   :  { %v1226_v63 = vpop.f32.mrb[8].mxu1 }
 0x5f7   :  { %v1227_v1 = vadd.f32 %v1226_v63, %v1080_v60  ;;  %v1228_v2 = vpop.f32.mrb[9].mxu1  ;;  %v1598_v60 = vld [vmem:[#allocation13 + $0x9d8] sm:$0xff]  ;;  %v3772_v63 = vpack.c.bf16 %v1593_v59, %v1589_v43  ;;  %v1866_v43 = vld [vmem:[#allocation11 + $0x4a8] sm:$0xff] }
 0x5f8   :  { %v1229_v5 = vadd.f32 %v1228_v2, %v1084_v61  ;;  %v1602_v61 = vld [vmem:[#allocation13 + $0x9f8] sm:$0xff] }
 0x5f9   :  { %v1233_v12 = vmax.f32 %v1227_v1, 0.0  ;;  %v1597_v1 = vld [vmem:[#allocation13 + $0x9d0] sm:$0xff]  ;;  %v3774_v2 = vpack.c.bf16 %v1602_v61, %v1598_v60  ;;  %v1868_v59 = vld [vmem:[#allocation11 + $0x4b8] sm:$0xff] }
 0x5fa   :  { %v1234_v10 = vmax.f32 %v1229_v5, 0.0  ;;  %v1610_v5 = vld [vmem:[#allocation13 + $0xa38] sm:$0xff]  ;;  %v1629_v61 = vld [vmem:[#allocation13 + $0xad0] sm:$0xff] }
 0x5fc   :  { %1434 = vmatprep.mubr.f32.mxu0 %v1234_v10  ;;  %v3810_v10 = vpack.c.bf16 %v1848_v8, %v1846_v6  ;;  %v1867_v6 = vld [vmem:[#allocation11 + $0x4b0] sm:$0xff] }
 0x5fd   :  { %1435 = vmatmul.mubr.f32.vlgmr.msra.gmra.mrb[8].mxu0 %v1233_v12  ;;  %v1850_v12 = vld [vmem:[#allocation11 + $0x428] sm:$0xff] }
 0x5fe   :  { %3749 = vmatpush1.bf16.msra.mxu0 %v3748_v11  ;;  %v1527_v20 = vpop.f32.mrb[10].mxu1  ;;  %v1847_v11 = vld [vmem:[#allocation11 + $0x410] sm:$0xff]  ;;  %3811 = vmatprep.subr.bf16.mxu1 %v3810_v10  ;;  %v1872_v10 = vld [vmem:[#allocation11 + $0x4d8] sm:$0xff] }
 0x5ff   :  { %v1528_v22 = vadd.f32 %v1527_v20, %v1454_v16  ;;  %v1529_v23 = vpop.f32.mrb[11].mxu1  ;;  %3751 = vmatprep.subr.bf16.mxu0 %v3750_v26  ;;  %v1852_v16 = vld [vmem:[#allocation11 + $0x438] sm:$0xff]  ;;  %v3776_v26 = vpack.c.bf16 %v1601_v3, %v1597_v1  ;;  %v3812_v13 = vpack.c.bf16 %v1847_v11, %v1845_v9  ;;  %v3778_v20 = vpack.c.bf16 %v1610_v5, %v1606_v4  ;;  %v1865_v5 = vld [vmem:[#allocation11 + $0x4a0] sm:$0xff]  ;;  %v1870_v9 = vld [vmem:[#allocation11 + $0x4c8] sm:$0xff] }
 0x600   :  { %v1530_v28 = vadd.f32 %v1529_v23, %v1458_v62  ;;  %v3814_v14 = vpack.c.bf16 %v1852_v16, %v1850_v12  ;;  %v1849_v62 = vld [vmem:[#allocation11 + $0x420] sm:$0xff]  ;;  %v1856_v23 = vld [vmem:[#allocation11 + $0x458] sm:$0xff]  ;;  %v3830_v4 = vpack.c.bf16 %v1868_v59, %v1866_v43  ;;  %v1637_v12 = vld [vmem:[#allocation13 + $0xb10] sm:$0xff] }
 0x601   :  { %v1532_v29 = vmax.f32 %v1528_v22, 0.0  ;;  %v1609_v22 = vld [vmem:[#allocation13 + $0xa30] sm:$0xff]  ;;  %v3816_v27 = vpack.c.bf16 %v1851_v15, %v1849_v62  ;;  %v1638_v1 = vld [vmem:[#allocation13 + $0xb18] sm:$0xff]  ;;  %v3834_v62 = vpack.c.bf16 %v1872_v10, %v1870_v9  ;;  %v1869_v15 = vld [vmem:[#allocation11 + $0x4c0] sm:$0xff] }
 0x602   :  { %v1533_v32 = vmax.f32 %v1530_v28, 0.0  ;;  %3753 = vmatpush1.bf16.msra.mxu0 %v3752_v21  ;;  %v1605_v21 = vld [vmem:[#allocation13 + $0xa10] sm:$0xff]  ;;  %v3818_v28 = vpack.c.bf16 %v1856_v23, %v1854_v18  ;;  %v1886_v43 = vld [vmem:[#allocation11 + $0x548] sm:$0xff]  ;;  %v1888_v59 = vld [vmem:[#allocation11 + $0x558] sm:$0xff] }
 0x603   :  { %3755 = vmatprep.subr.bf16.mxu0 %v3754_v24  ;;  %v5028_v41 = vmul.f32 %v1534_v31, %v1532_v29  ;;  %v1614_v24 = vld [vmem:[#allocation13 + $0xa58] sm:$0xff]  ;;  %v1853_v29 = vld [vmem:[#allocation11 + $0x440] sm:$0xff]  ;;  %v3780_v17 = vpack.c.bf16 %v1609_v22, %v1605_v21  ;;  %v1641_v16 = vld [vmem:[#allocation13 + $0xb30] sm:$0xff] }
 0x604   :  { %v1537_v37 = vmul.f32 %v1535_v30, %v1533_v32  ;;  %v1855_v30 = vld [vmem:[#allocation11 + $0x450] sm:$0xff]  ;;  %v1860_v31 = vld [vmem:[#allocation11 + $0x478] sm:$0xff]  ;;  %v3782_v32 = vpack.c.bf16 %v1618_v25, %v1614_v24  ;;  %v1874_v21 = vld [vmem:[#allocation11 + $0x4e8] sm:$0xff] }
 0x605   :  { %v3822_v39 = vpack.c.bf16 %v1860_v31, %v1858_v19  ;;  %v1871_v18 = vld [vmem:[#allocation11 + $0x4d0] sm:$0xff]  ;;  %v1876_v22 = vld [vmem:[#allocation11 + $0x4f8] sm:$0xff]  ;;  %v1894_v10 = vld [vmem:[#allocation11 + $0x588] sm:$0xff] }
 0x606   :  { %3757 = vmatpush1.bf16.msra.mxu0 %v3756_v33  ;;  %1754 = vmatprep.mubr.f32.mxu1 %v1537_v37  ;;  %v1613_v33 = vld [vmem:[#allocation13 + $0xa50] sm:$0xff] }
 0x607   :  { %1825 = vmatprep.mubr.f32.mxu0 %v1537_v37  ;;  %1755 = vmatmul.mubr.f32.vlgmr.msra.gmra.mrb[12].mxu1 %v5028_v41  ;;  %v1626_v37 = vld [vmem:[#allocation13 + $0xab8] sm:$0xff]  ;;  %v1645_v24 = vld [vmem:[#allocation13 + $0xb50] sm:$0xff] }
 0x608   :  { %3759 = vmatprep.subr.bf16.mxu0 %v3758_v38  ;;  %3813 = vmatpush1.bf16.msra.mxu1 %v3812_v13  ;;  %v3820_v38 = vpack.c.bf16 %v1855_v30, %v1853_v29  ;;  %v3786_v47 = vpack.c.bf16 %v1626_v37, %v1622_v36  ;;  %v1650_v13 = vld [vmem:[#allocation13 + $0xb78] sm:$0xff]  ;;  %v1649_v25 = vld [vmem:[#allocation13 + $0xb70] sm:$0xff]  ;;  %v3836_v29 = vpack.c.bf16 %v1871_v18, %v1869_v15 }
 0x609   :  { %3815 = vmatprep.subr.bf16.mxu1 %v3814_v14  ;;  %v3832_v14 = vpack.c.bf16 %v1867_v6, %v1865_v5  ;;  %v3838_v30 = vpack.c.bf16 %v1876_v22, %v1874_v21  ;;  %v1875_v19 = vld [vmem:[#allocation11 + $0x4f0] sm:$0xff]  ;;  %v3800_v31 = vpack.c.bf16 %v1649_v25, %v1645_v24  ;;  %v1889_v6 = vld [vmem:[#allocation11 + $0x560] sm:$0xff]  ;;  %v1902_v21 = vld [vmem:[#allocation11 + $0x5c8] sm:$0xff] }
 0x60a   :  { %3761 = vmatpush1.bf16.msra.mxu0 %v3760_v42  ;;  %v1859_v42 = vld [vmem:[#allocation11 + $0x470] sm:$0xff]  ;;  %v1904_v22 = vld [vmem:[#allocation11 + $0x5d8] sm:$0xff]  ;;  %v1901_v24 = vld [vmem:[#allocation11 + $0x5c0] sm:$0xff] }
 0x60b   :  { %3763 = vmatprep.subr.bf16.mxu0 %v3762_v44  ;;  %v3784_v44 = vpack.c.bf16 %v1617_v34, %v1613_v33  ;;  %v3824_v55 = vpack.c.bf16 %v1859_v42, %v1857_v40  ;;  %v1880_v33 = vld [vmem:[#allocation11 + $0x518] sm:$0xff]  ;;  %v1653_v36 = vld [vmem:[#allocation13 + $0xb90] sm:$0xff] }
 0x60c   :  { %3817 = vmatpush1.bf16.msra.mxu1 %v3816_v27  ;;  %v1654_v27 = vld [vmem:[#allocation13 + $0xb98] sm:$0xff]  ;;  %v1657_v37 = vld [vmem:[#allocation13 + $0xbb0] sm:$0xff] }
 0x60d   :  { %3819 = vmatprep.subr.bf16.mxu1 %v3818_v28  ;;  %v1658_v28 = vld [vmem:[#allocation13 + $0xbb8] sm:$0xff]  ;;  %v3804_v46 = vpack.c.bf16 %v1657_v37, %v1653_v36  ;;  %v1899_v18 = vld [vmem:[#allocation11 + $0x5b0] sm:$0xff] }
 0x60e   :  { %3765 = vmatpush1.bf16.msra.mxu0 %v3764_v48  ;;  %v1625_v48 = vld [vmem:[#allocation13 + $0xab0] sm:$0xff]  ;;  %v3802_v34 = vpack.c.bf16 %v1658_v28, %v1654_v27  ;;  %v1906_v28 = vld [vmem:[#allocation11 + $0x5e8] sm:$0xff] }
 0x60f   :  { %3767 = vmatprep.subr.bf16.mxu0 %v3766_v49  ;;  %v1630_v49 = vld [vmem:[#allocation13 + $0xad8] sm:$0xff]  ;;  %v1903_v25 = vld [vmem:[#allocation11 + $0x5d0] sm:$0xff] }
 0x610   :  { %3821 = vmatpush1.bf16.msra.mxu1 %v3820_v38  ;;  %v3790_v60 = vpack.c.bf16 %v1634_v54, %v1630_v49  ;;  %v1662_v38 = vld [vmem:[#allocation13 + $0xbd8] sm:$0xff]  ;;  %v1661_v49 = vld [vmem:[#allocation13 + $0xbd0] sm:$0xff]  ;;  %v3868_v27 = vpack.c.bf16 %v1903_v25, %v1901_v24 }
 0x611   :  { %3823 = vmatprep.subr.bf16.mxu1 %v3822_v39  ;;  %v1666_v39 = vld [vmem:[#allocation13 + $0xbf8] sm:$0xff]  ;;  %v1665_v54 = vld [vmem:[#allocation13 + $0xbf0] sm:$0xff] }
 0x612   :  { %3769 = vmatpush1.bf16.msra.mxu0 %v3768_v58  ;;  %v1863_v58 = vld [vmem:[#allocation11 + $0x490] sm:$0xff] }
 0x613   :  { %3771 = vmatprep.subr.bf16.mxu0 %v3770_v7  ;;  %v3788_v7 = vpack.c.bf16 %v1625_v48, %v1621_v50  ;;  %v3828_v3 = vpack.c.bf16 %v1863_v58, %v1861_v52  ;;  %v1884_v50 = vld [vmem:[#allocation11 + $0x538] sm:$0xff]  ;;  %v3806_v48 = vpack.c.bf16 %v1666_v39, %v1662_v38  ;;  %v1881_v52 = vld [vmem:[#allocation11 + $0x520] sm:$0xff]  ;;  %v1883_v58 = vld [vmem:[#allocation11 + $0x530] sm:$0xff] }
 0x614   :  { %3825 = vmatpush1.bf16.msra.mxu1 %v3824_v55  ;;  %v2998_v39 = vld [vmem:[%s5383_s7 + $0x180] sm:$0xff] }
 0x615   :  { %3827 = vmatprep.subr.bf16.mxu1 %v3826_v57 }
 0x616   :  { %3773 = vmatpush1.bf16.msra.mxu0 %v3772_v63  ;;  %v1633_v63 = vld [vmem:[#allocation13 + $0xaf0] sm:$0xff] }
 0x617   :  { %3775 = vmatprep.subr.bf16.mxu0 %v3774_v2  ;;  %v1642_v2 = vld [vmem:[#allocation13 + $0xb38] sm:$0xff]  ;;  %v3792_v8 = vpack.c.bf16 %v1633_v63, %v1629_v61  ;;  %v3850_v61 = vpack.c.bf16 %v1888_v59, %v1886_v43  ;;  %v1885_v63 = vld [vmem:[#allocation11 + $0x540] sm:$0xff]  ;;  %v2987_v43 = vld [vmem:[%s5383_s7 + $0x128] sm:$0xff] }
 0x618   :  { %v3794_v11 = vpack.c.bf16 %v1642_v2, %v1638_v1  ;;  %3829 = vmatpush1.bf16.msra.mxu1 %v3828_v3  ;;  %v1887_v1 = vld [vmem:[#allocation11 + $0x550] sm:$0xff]  ;;  %v1890_v2 = vld [vmem:[#allocation11 + $0x568] sm:$0xff]  ;;  %v1892_v3 = vld [vmem:[#allocation11 + $0x578] sm:$0xff] }
 0x619   :  { %3831 = vmatprep.subr.bf16.mxu1 %v3830_v4  ;;  %v3852_v4 = vpack.c.bf16 %v1887_v1, %v1885_v63  ;;  %v3854_v5 = vpack.c.bf16 %v1892_v3, %v1890_v2  ;;  %v3004_v59 = vld [vmem:[%s5383_s7 + $0x1b0] sm:$0xff]  ;;  %v2989_v2 = vld [vmem:[%s5383_s7 + $0x138] sm:$0xff]  ;;  %v3006_v3 = vld [vmem:[%s5383_s7 + $0x1c0] sm:$0xff] }
 0x61a   :  { %3777 = vmatpush1.bf16.msra.mxu0 %v3776_v26  ;;  %v1646_v26 = vld [vmem:[#allocation13 + $0xb58] sm:$0xff]  ;;  %v2988_v1 = vld [vmem:[%s5383_s7 + $0x130] sm:$0xff] }
 0x61b   :  { %3779 = vmatprep.subr.bf16.mxu0 %v3778_v20  ;;  %v3796_v20 = vpack.c.bf16 %v1641_v16, %v1637_v12  ;;  %v3798_v23 = vpack.c.bf16 %v1650_v13, %v1646_v26  ;;  %v1893_v16 = vld [vmem:[#allocation11 + $0x580] sm:$0xff]  ;;  %v1895_v26 = vld [vmem:[#allocation11 + $0x590] sm:$0xff] }
 0x61c   :  { %3833 = vmatpush1.bf16.msra.mxu1 %v3832_v14  ;;  %v3860_v13 = vpack.c.bf16 %v1895_v26, %v1893_v16  ;;  %v1898_v14 = vld [vmem:[#allocation11 + $0x5a8] sm:$0xff]  ;;  %v2992_v26 = vld [vmem:[%s5383_s7 + $0x150] sm:$0xff] }
 0x61d   :  { %3835 = vmatprep.subr.bf16.mxu1 %v3834_v62  ;;  %v1900_v62 = vld [vmem:[#allocation11 + $0x5b8] sm:$0xff] }
 0x61e   :  { %3781 = vmatpush1.bf16.msra.mxu0 %v3780_v17  ;;  %v1873_v17 = vld [vmem:[#allocation11 + $0x4e0] sm:$0xff]  ;;  %v3862_v15 = vpack.c.bf16 %v1900_v62, %v1898_v14 }
 0x61f   :  { %3783 = vmatprep.subr.bf16.mxu0 %v3782_v32  ;;  %v1878_v32 = vld [vmem:[#allocation11 + $0x508] sm:$0xff]  ;;  %v3840_v40 = vpack.c.bf16 %v1875_v19, %v1873_v17  ;;  %v1905_v17 = vld [vmem:[#allocation11 + $0x5e0] sm:$0xff]  ;;  %v1907_v19 = vld [vmem:[#allocation11 + $0x5f0] sm:$0xff] }
 0x620   :  { %3837 = vmatpush1.bf16.msra.mxu1 %v3836_v29  ;;  %v3842_v42 = vpack.c.bf16 %v1880_v33, %v1878_v32  ;;  %v1908_v29 = vld [vmem:[#allocation11 + $0x5f8] sm:$0xff]  ;;  %v1910_v32 = vld [vmem:[#allocation11 + $0x608] sm:$0xff]  ;;  %v1299_v62 = vld [vmem:[#allocation16 + $0x5] ss:$0 sm:$0xff] }
 0x621   :  { %3839 = vmatprep.subr.bf16.mxu1 %v3838_v30  ;;  %v3870_v30 = vpack.c.bf16 %v1908_v29, %v1906_v28  ;;  %v1912_v33 = vld [vmem:[#allocation11 + $0x618] sm:$0xff] }
 0x622   :  { %3785 = vmatpush1.bf16.msra.mxu0 %v3784_v44  ;;  %v1877_v44 = vld [vmem:[#allocation11 + $0x500] sm:$0xff] }
 0x623   :  { %3787 = vmatprep.subr.bf16.mxu0 %v3786_v47  ;;  %v1882_v47 = vld [vmem:[#allocation11 + $0x528] sm:$0xff]  ;;  %v3844_v55 = vpack.c.bf16 %v1879_v45, %v1877_v44 }
 0x624   :  { %3841 = vmatpush1.bf16.msra.mxu1 %v3840_v40  ;;  %v3846_v57 = vpack.c.bf16 %v1884_v50, %v1882_v47  ;;  %v2999_v40 = vld [vmem:[%s5383_s7 + $0x188] sm:$0xff]  ;;  %v3001_v47 = vld [vmem:[%s5383_s7 + $0x198] sm:$0xff] }
 0x625   :  { %3843 = vmatprep.subr.bf16.mxu1 %v3842_v42  ;;  %v2982_v42 = vld [vmem:[%s5383_s7 + $0x100] sm:$0xff]  ;;  %v3938_v44 = vpack.c.bf16 %v2999_v40, %v2998_v39  ;;  %v2983_v45 = vld [vmem:[%s5383_s7 + $0x108] sm:$0xff] }
 0x626   :  { %3789 = vmatpush1.bf16.msra.mxu0 %v3788_v7  ;;  %v3808_v7 = vpack.c.bf16 %v1665_v54, %v1661_v49  ;;  %v3940_v50 = vpack.c.bf16 %v2983_v45, %v2982_v42  ;;  %v2984_v49 = vld [vmem:[%s5383_s7 + $0x110] sm:$0xff]  ;;  %v2985_v54 = vld [vmem:[%s5383_s7 + $0x118] sm:$0xff]  ;;  %v1913_v42 = vld [vmem:[#allocation11 + $0x620] sm:$0xff] }
 0x627   :  { %3791 = vmatprep.subr.bf16.mxu0 %v3790_v60  ;;  %v3848_v60 = vpack.c.bf16 %v1883_v58, %v1881_v52  ;;  %v3944_v52 = vpack.c.bf16 %v2985_v54, %v2984_v49  ;;  %v1918_v45 = vld [vmem:[#allocation11 + $0x648] sm:$0xff]  ;;  %v1919_v49 = vld [vmem:[#allocation11 + $0x650] sm:$0xff] }
 0x628   :  { %3845 = vmatpush1.bf16.msra.mxu1 %v3844_v55  ;;  %v3002_v55 = vld [vmem:[%s5383_s7 + $0x1a0] sm:$0xff]  ;;  %v1922_v54 = vld [vmem:[#allocation11 + $0x668] sm:$0xff] }
 0x629   :  { %3847 = vmatprep.subr.bf16.mxu1 %v3846_v57  ;;  %v3003_v57 = vld [vmem:[%s5383_s7 + $0x1a8] sm:$0xff] }
 0x62a   :  { %3793 = vmatpush1.bf16.msra.mxu0 %v3792_v8  ;;  %v1891_v8 = vld [vmem:[#allocation11 + $0x570] sm:$0xff]  ;;  %v3946_v58 = vpack.c.bf16 %v3003_v57, %v3002_v55  ;;  %v1924_v55 = vld [vmem:[#allocation11 + $0x678] sm:$0xff] }
 0x62b   :  { %3795 = vmatprep.subr.bf16.mxu0 %v3794_v11  ;;  %v3856_v9 = vpack.c.bf16 %v1891_v8, %v1889_v6  ;;  %v1896_v11 = vld [vmem:[#allocation11 + $0x598] sm:$0xff]  ;;  %v2990_v8 = vld [vmem:[%s5383_s7 + $0x140] sm:$0xff] }
 0x62c   :  { %3849 = vmatpush1.bf16.msra.mxu1 %v3848_v60  ;;  %v3858_v12 = vpack.c.bf16 %v1896_v11, %v1894_v10  ;;  %v3005_v60 = vld [vmem:[%s5383_s7 + $0x1b8] sm:$0xff]  ;;  %v3008_v10 = vld [vmem:[%s5383_s7 + $0x1d0] sm:$0xff] }
 0x62d   :  { %3851 = vmatprep.subr.bf16.mxu1 %v3850_v61  ;;  %v3950_v63 = vpack.c.bf16 %v3005_v60, %v3004_v59  ;;  %v3009_v11 = vld [vmem:[%s5383_s7 + $0x1d8] sm:$0xff] }
 0x62e   :  { %3797 = vmatpush1.bf16.msra.mxu0 %v3796_v20  ;;  %v3958_v16 = vpack.c.bf16 %v3009_v11, %v3008_v10  ;;  %v1928_v59 = vld [vmem:[#allocation11 + $0x698] sm:$0xff] }
 0x62f   :  { %3799 = vmatprep.subr.bf16.mxu0 %v3798_v23  ;;  %v3866_v23 = vpack.c.bf16 %v1904_v22, %v1902_v21  ;;  %v5106_v22 = vld [vmem:[#allocation16 + $0x7] ss:$8 sm:$0xf] }
 0x630   :  { %3853 = vmatpush1.bf16.msra.mxu1 %v3852_v4  ;;  %v3007_v4 = vld [vmem:[%s5383_s7 + $0x1c8] sm:$0xff]  ;;  %v1677_v24 = vrot.slane %v5106_v22, %v4754_v53  ;;  %v1936_v10 = vld [vmem:[#allocation11 + $0x6d8] sm:$0xff] }
 0x631   :  { %3855 = vmatprep.subr.bf16.mxu1 %v3854_v5  ;;  %v3952_v5 = vpack.c.bf16 %v2989_v2, %v2988_v1  ;;  %v3954_v6 = vpack.c.bf16 %v3007_v4, %v3006_v3  ;;  %v1927_v1 = vld [vmem:[#allocation11 + $0x690] sm:$0xff]  ;;  %v1930_v2 = vld [vmem:[#allocation11 + $0x6a8] sm:$0xff]  ;;  %v1932_v3 = vld [vmem:[#allocation11 + $0x6b8] sm:$0xff] }
 0x632   :  { %3801 = vmatpush1.bf16.msra.mxu0 %v3800_v31  ;;  %v3872_v31 = vpack.c.bf16 %v1907_v19, %v1905_v17  ;;  %v1837_v17 = vld [vmem:[#allocation7 + $0x48] sm:$0xff]  ;;  %v1909_v19 = vld [vmem:[#allocation11 + $0x600] sm:$0xff] }
 0x633   :  { %3803 = vmatprep.subr.bf16.mxu0 %v3802_v34  ;;  %v3874_v34 = vpack.c.bf16 %v1912_v33, %v1910_v32  ;;  %v1836_v32 = vld [vmem:[#allocation7 + $0x40] sm:$0xff] }
 0x634   :  { %3857 = vmatpush1.bf16.msra.mxu1 %v3856_v9  ;;  %v2991_v9 = vld [vmem:[%s5383_s7 + $0x148] sm:$0xff] }
 0x635   :  { %3859 = vmatprep.subr.bf16.mxu1 %v3858_v12  ;;  %v3956_v12 = vpack.c.bf16 %v2991_v9, %v2990_v8  ;;  %v1931_v8 = vld [vmem:[#allocation11 + $0x6b0] sm:$0xff]  ;;  %v1934_v9 = vld [vmem:[#allocation11 + $0x6c8] sm:$0xff] }
 0x636   :  { %3805 = vmatpush1.bf16.msra.mxu0 %v3804_v46  ;;  %v3000_v46 = vld [vmem:[%s5383_s7 + $0x190] sm:$0xff] }
 0x637   :  { %3807 = vmatprep.subr.bf16.mxu0 %v3806_v48  ;;  %v3942_v48 = vpack.c.bf16 %v3001_v47, %v3000_v46  ;;  %v1920_v46 = vld [vmem:[#allocation11 + $0x658] sm:$0xff] }
 0x638   :  { %3861 = vmatpush1.bf16.msra.mxu1 %v3860_v13  ;;  %v2993_v13 = vld [vmem:[%s5383_s7 + $0x158] sm:$0xff] }
 0x639   :  { %3863 = vmatprep.subr.bf16.mxu1 %v3862_v15  ;;  %v3960_v14 = vpack.c.bf16 %v2993_v13, %v2992_v26  ;;  %v1935_v26 = vld [vmem:[#allocation11 + $0x6d0] sm:$0xff]  ;;  %v1938_v13 = vld [vmem:[#allocation11 + $0x6e8] sm:$0xff] }
 0x63a   :  { %3809 = vmatpush1.bf16.msra.mxu0 %v3808_v7  ;;  %v2986_v7 = vld [vmem:[%s5383_s7 + $0x120] sm:$0xff] }
 0x63b   :  { %3939 = vmatprep.subr.bf16.mxu0 %v3938_v44  ;;  %v3948_v61 = vpack.c.bf16 %v2987_v43, %v2986_v7  ;;  %v1915_v44 = vld [vmem:[#allocation11 + $0x630] sm:$0xff]  ;;  %v1926_v43 = vld [vmem:[#allocation11 + $0x688] sm:$0xff] }
 0x63c   :  { %v3880_v47 = vpack.c.bf16 %v1915_v44, %v1913_v42  ;;  %v1923_v7 = vld [vmem:[#allocation11 + $0x670] sm:$0xff]  ;;  %v1956_v42 = vld [vmem:[#allocation11 + $0x778] sm:$0xff] }
 0x63d   :  { %1826 = vmatmul.mubr.f32.vlgmr.msra.gmra.mrb[10].mxu0 %v5028_v41  ;;  %v1897_v41 = vld [vmem:[#allocation11 + $0x5a0] sm:$0xff] }
 0x63e   :  { %v3864_v20 = vpack.c.bf16 %v1899_v18, %v1897_v41  ;;  %3941 = vmatpush3.bf16.msra.mxu0 %v3940_v50  ;;  %v3882_v50 = vpack.c.bf16 %v1920_v46, %v1918_v45  ;;  %v1953_v46 = vld [vmem:[#allocation11 + $0x760] sm:$0xff] }
 0x63f   :  { %3943 = vmatprep.subr.bf16.mxu0 %v3942_v48  ;;  %v1917_v48 = vld [vmem:[#allocation11 + $0x640] sm:$0xff] }
 0x640   :  { %3865 = vmatpush1.bf16.msra.mxu1 %v3864_v20  ;;  %v3884_v57 = vpack.c.bf16 %v1919_v49, %v1917_v48  ;;  %v1960_v48 = vld [vmem:[#allocation11 + $0x798] sm:$0xff] }
 0x641   :  { %3867 = vmatprep.subr.bf16.mxu1 %v3866_v23  ;;  %v1673_v23 = vrot.slane %v5106_v22, %v4749_v51 }
 0x642   :  { %3945 = vmatpush3.bf16.msra.mxu0 %v3944_v52  ;;  %v3886_v52 = vpack.c.bf16 %v1924_v55, %v1922_v54  ;;  %v1681_v54 = vrot.slane %v5106_v22, %v4768_v35 }
 0x643   :  { %3947 = vmatprep.subr.bf16.mxu0 %v3946_v58  ;;  %v1921_v58 = vld [vmem:[#allocation11 + $0x660] sm:$0xff] }
 0x644   :  { %3869 = vmatpush1.bf16.msra.mxu1 %v3868_v27  ;;  %v3888_v60 = vpack.c.bf16 %v1923_v7, %v1921_v58  ;;  %v1685_v58 = vrot.slane %v5106_v22, %v4761_v56  ;;  %v1962_v7 = vld [vmem:[#allocation11 + $0x7a8] sm:$0xff] }
 0x645   :  { %3871 = vmatprep.subr.bf16.mxu1 %v3870_v30 }
 0x646   :  { %3949 = vmatpush3.bf16.msra.mxu0 %v3948_v61  ;;  %v3890_v61 = vpack.c.bf16 %v1928_v59, %v1926_v43  ;;  %v1964_v43 = vld [vmem:[#allocation11 + $0x7b8] sm:$0xff] }
 0x647   :  { %3951 = vmatprep.subr.bf16.mxu0 %v3950_v63  ;;  %v1925_v63 = vld [vmem:[#allocation11 + $0x680] sm:$0xff] }
 0x648   :  { %3873 = vmatpush1.bf16.msra.mxu1 %v3872_v31  ;;  %v1911_v31 = vld [vmem:[#allocation11 + $0x610] sm:$0xff]  ;;  %v3892_v4 = vpack.c.bf16 %v1927_v1, %v1925_v63  ;;  %v3926_v1 = vpack.c.bf16 %v1964_v43, %v1962_v7 }
 0x649   :  { %3875 = vmatprep.subr.bf16.mxu1 %v3874_v34  ;;  %v1914_v34 = vld [vmem:[#allocation11 + $0x628] sm:$0xff] }
 0x64a   :  { %3953 = vmatpush3.bf16.msra.mxu0 %v3952_v5  ;;  %v3894_v5 = vpack.c.bf16 %v1932_v3, %v1930_v2  ;;  %v1961_v2 = vld [vmem:[#allocation11 + $0x7a0] sm:$0xff]  ;;  %v1963_v3 = vld [vmem:[#allocation11 + $0x7b0] sm:$0xff] }
 0x64b   :  { %3955 = vmatprep.subr.bf16.mxu0 %v3954_v6  ;;  %v1929_v6 = vld [vmem:[#allocation11 + $0x6a0] sm:$0xff] }
 0x64c   :  { %v3896_v11 = vpack.c.bf16 %v1931_v8, %v1929_v6  ;;  %v1968_v6 = vld [vmem:[#allocation11 + $0x7d8] sm:$0xff]  ;;  %v1839_v8 = vld [vmem:[#allocation7 + $0x58] sm:$0xff] }
 0x64e   :  { %3957 = vmatpush3.bf16.msra.mxu0 %v3956_v12  ;;  %v3898_v12 = vpack.c.bf16 %v1936_v10, %v1934_v9  ;;  %v3928_v10 = vpack.c.bf16 %v1963_v3, %v1961_v2 }
 0x64f   :  { %3959 = vmatprep.subr.bf16.mxu0 %v3958_v16  ;;  %v1933_v16 = vld [vmem:[#allocation11 + $0x6c0] sm:$0xff] }
 0x652   :  { %3961 = vmatpush3.bf16.msra.mxu0 %v3960_v14  ;;  %v1940_v14 = vld [vmem:[#allocation11 + $0x6f8] sm:$0xff] }
 0x690   :  { %v3147_v36 = vpop.f32.mrb[6].mxu0 }
 0x691   :  { %v3148_v37 = vpop.f32.mrb[7].mxu0 }
 0x692   :  { %v3149_v38 = vadd.f32 %v3148_v37, %v3147_v36  ;;  %v1916_v36 = vld [vmem:[#allocation11 + $0x638] sm:$0xff] }
 0x693   :  { %v3878_v40 = vpack.c.bf16 %v1916_v36, %v1914_v34  ;;  %v1952_v34 = vld [vmem:[#allocation11 + $0x758] sm:$0xff] }
 0x694   :  { %v1367_v18 = vadd.f32 %v3149_v38, %v1299_v62  ;;  %v3876_v38 = vpack.c.bf16 %v1911_v31, %v1909_v19  ;;  %v3900_v62 = vpack.c.bf16 %v1935_v26, %v1933_v16  ;;  %v1945_v31 = vld [vmem:[#allocation11 + $0x720] sm:$0xff]  ;;  %v1970_v26 = vld [vmem:[#allocation11 + $0x7e8] sm:$0xff] }
 0x6d0   :  { %v3182_v15 = vpop.f32.mrb[8].mxu0 }
 0x6d1   :  { %v3183_v41 = vpop.f32.mrb[9].mxu0 }
 0x6d2   :  { %v3184_v20 = vadd.f32 %v3183_v41, %v3182_v15  ;;  %v3902_v15 = vpack.c.bf16 %v1940_v14, %v1938_v13  ;;  %v1937_v41 = vld [vmem:[#allocation11 + $0x6e0] sm:$0xff]  ;;  %v1972_v13 = vld [vmem:[#allocation11 + $0x7f8] sm:$0xff] }
 0x6d4   :  { %v5104_v21 = vadd.f32 %v3184_v20, %v1367_v18  ;;  %v1939_v18 = vld [vmem:[#allocation11 + $0x6f0] sm:$0xff]  ;;  %v1942_v20 = vld [vmem:[#allocation11 + $0x708] sm:$0xff] }
 0x6da   :  { %v1756_v25 = vpop.f32.mrb[12].mxu1 }
 0x6db   :  { %v1757_v27 = vadd.f32 %v1756_v25, %v1673_v23  ;;  %v1758_v28 = vpop.f32.mrb[13].mxu1  ;;  %v1944_v23 = vld [vmem:[#allocation11 + $0x718] sm:$0xff] }
 0x6dc   :  { %v1759_v29 = vadd.f32 %v1758_v28, %v1677_v24  ;;  %v3904_v24 = vpack.c.bf16 %v1939_v18, %v1937_v41  ;;  %v3906_v25 = vpack.c.bf16 %v1944_v23, %v1942_v20  ;;  %v1943_v28 = vld [vmem:[#allocation11 + $0x710] sm:$0xff]  ;;  %v1838_v23 = vld [vmem:[#allocation7 + $0x50] sm:$0xff] }
 0x6dd   :  { %v1832_v30 = vmax.f32 %v1757_v27, 0.0  ;;  %v1941_v27 = vld [vmem:[#allocation11 + $0x700] sm:$0xff]  ;;  %v1971_v41 = vld [vmem:[#allocation11 + $0x7f0] sm:$0xff] }
 0x6de   :  { %v1833_v33 = vmax.f32 %v1759_v29, 0.0  ;;  %v1946_v29 = vld [vmem:[#allocation11 + $0x728] sm:$0xff] }
 0x6df   :  { %v1840_v39 = vmul.f32 %v1836_v32, %v1832_v30  ;;  %v1948_v30 = vld [vmem:[#allocation11 + $0x738] sm:$0xff]  ;;  %v1947_v32 = vld [vmem:[#allocation11 + $0x730] sm:$0xff] }
 0x6e0   :  { %v1841_v37 = vmul.f32 %v1837_v17, %v1833_v33  ;;  %v3908_v17 = vpack.c.bf16 %v1943_v28, %v1941_v27  ;;  %v3910_v19 = vpack.c.bf16 %v1948_v30, %v1946_v29  ;;  %v1950_v33 = vld [vmem:[#allocation11 + $0x748] sm:$0xff]  ;;  %v3912_v36 = vpack.c.bf16 %v1947_v32, %v1945_v31  ;;  %v2994_v29 = vld [vmem:[%s5383_s7 + $0x160] sm:$0xff]  ;;  %v3013_v31 = vld [vmem:[%s5383_s7 + $0x1f8] sm:$0xff] }
 0x6e1   :  { %v3011_v27 = vld [vmem:[%s5383_s7 + $0x1e8] sm:$0xff] }
 0x6e2   :  { %2050 = vmatprep.mubr.f32.mxu1 %v1841_v37  ;;  %v3914_v37 = vpack.c.bf16 %v1952_v34, %v1950_v33  ;;  %v2995_v30 = vld [vmem:[%s5383_s7 + $0x168] sm:$0xff]  ;;  %v2996_v33 = vld [vmem:[%s5383_s7 + $0x170] sm:$0xff]  ;;  %v2997_v34 = vld [vmem:[%s5383_s7 + $0x178] sm:$0xff] }
 0x6e3   :  { %2051 = vmatmul.mubr.f32.vlgmr.msra.gmra.mrb[14].mxu1 %v1840_v39  ;;  %v1951_v39 = vld [vmem:[#allocation11 + $0x750] sm:$0xff] }
 0x6e4   :  { %3877 = vmatpush1.bf16.msra.mxu1 %v3876_v38  ;;  %v1949_v38 = vld [vmem:[#allocation11 + $0x740] sm:$0xff] }
 0x6e5   :  { %3879 = vmatprep.subr.bf16.mxu1 %v3878_v40  ;;  %v1954_v40 = vld [vmem:[#allocation11 + $0x768] sm:$0xff]  ;;  %v3916_v44 = vpack.c.bf16 %v1951_v39, %v1949_v38 }
 0x6e6   :  { %v3918_v45 = vpack.c.bf16 %v1956_v42, %v1954_v40 }
 0x6e8   :  { %3881 = vmatpush1.bf16.msra.mxu1 %v3880_v47  ;;  %v1955_v47 = vld [vmem:[#allocation11 + $0x770] sm:$0xff] }
 0x6e9   :  { %3883 = vmatprep.subr.bf16.mxu1 %v3882_v50  ;;  %v1958_v50 = vld [vmem:[#allocation11 + $0x788] sm:$0xff]  ;;  %v3920_v49 = vpack.c.bf16 %v1955_v47, %v1953_v46  ;;  %v2131_v47 = vld [vmem:[#allocation7 + $0x68] sm:$0xff] }
 0x6ea   :  { %v3922_v55 = vpack.c.bf16 %v1960_v48, %v1958_v50  ;;  %v2130_v50 = vld [vmem:[#allocation7 + $0x60] sm:$0xff] }
 0x6ec   :  { %3885 = vmatpush1.bf16.msra.mxu1 %v3884_v57  ;;  %v1957_v57 = vld [vmem:[#allocation11 + $0x780] sm:$0xff] }
 0x6ed   :  { %3887 = vmatprep.subr.bf16.mxu1 %v3886_v52  ;;  %v1959_v52 = vld [vmem:[#allocation11 + $0x790] sm:$0xff] }
 0x6f0   :  { %3889 = vmatpush1.bf16.msra.mxu1 %v3888_v60  ;;  %v3924_v60 = vpack.c.bf16 %v1959_v52, %v1957_v57  ;;  %v2256_v57 = vld [vmem:[#allocation14 + $0x90] sm:$0xff] }
 0x6f1   :  { %3891 = vmatprep.subr.bf16.mxu1 %v3890_v61 }
 0x6f4   :  { %3893 = vmatpush1.bf16.msra.mxu1 %v3892_v4 }
 0x6f5   :  { %3895 = vmatprep.subr.bf16.mxu1 %v3894_v5  ;;  %v1966_v5 = vld [vmem:[#allocation11 + $0x7c8] sm:$0xff] }
 0x6f6   :  { %v3930_v22 = vpack.c.bf16 %v1968_v6, %v1966_v5  ;;  %v2248_v6 = vld [vmem:[#allocation14 + $0x50] sm:$0xff] }
 0x6f8   :  { %3897 = vmatpush1.bf16.msra.mxu1 %v3896_v11  ;;  %v1965_v11 = vld [vmem:[#allocation11 + $0x7c0] sm:$0xff] }
 0x6f9   :  { %3899 = vmatprep.subr.bf16.mxu1 %v3898_v12  ;;  %v1967_v12 = vld [vmem:[#allocation11 + $0x7d0] sm:$0xff] }
 0x6fa   :  { %v3932_v14 = vpack.c.bf16 %v1967_v12, %v1965_v11 }
 0x6fc   :  { %3901 = vmatpush1.bf16.msra.mxu1 %v3900_v62  ;;  %v3934_v62 = vpack.c.bf16 %v1972_v13, %v1970_v26  ;;  %v2252_v26 = vld [vmem:[#allocation14 + $0x70] sm:$0xff]  ;;  %v2254_v13 = vld [vmem:[#allocation14 + $0x80] sm:$0xff] }
 0x6fd   :  { %3903 = vmatprep.subr.bf16.mxu1 %v3902_v15  ;;  %v1969_v15 = vld [vmem:[#allocation11 + $0x7e0] sm:$0xff] }
 0x6fe   :  { %v3936_v18 = vpack.c.bf16 %v1971_v41, %v1969_v15  ;;  %v3976_v15 = vpack.c.bf16 %v2254_v13, %v2252_v26  ;;  %v2498_v26 = vld [vmem:[#allocation13 + $0x668] sm:$0xff] }
 0x700   :  { %3905 = vmatpush1.bf16.msra.mxu1 %v3904_v24 }
 0x701   :  { %3907 = vmatprep.subr.bf16.mxu1 %v3906_v25  ;;  %v3010_v25 = vld [vmem:[%s5383_s7 + $0x1e0] sm:$0xff] }
 0x702   :  { %v3962_v28 = vpack.c.bf16 %v3011_v27, %v3010_v25 }
 0x704   :  { %3909 = vmatpush1.bf16.msra.mxu1 %v3908_v17  ;;  %v3964_v17 = vpack.c.bf16 %v2995_v30, %v2994_v29  ;;  %3963 = vmatprep.subr.bf16.mxu0 %v3962_v28  ;;  %v2429_v28 = vld [vmem:[#allocation13 + $0x440] sm:$0xff]  ;;  %v2438_v30 = vld [vmem:[#allocation13 + $0x488] sm:$0xff] }
 0x705   :  { %3911 = vmatprep.subr.bf16.mxu1 %v3910_v19  ;;  %v3012_v19 = vld [vmem:[%s5383_s7 + $0x1f0] sm:$0xff]  ;;  %s4455_s7 = smov 56   ;;  %v2433_v29 = vld [vmem:[#allocation13 + $0x460] sm:$0xff] }
 0x706   :  { %3965 = vmatpush3.bf16.msra.mxu0 %v3964_v17  ;;  %v3966_v32 = vpack.c.bf16 %v3013_v31, %v3012_v19  ;;  %v2442_v17 = vld [vmem:[#allocation13 + $0x4a8] sm:$0xff]  ;;  %v4207_v19 = vld [vmem:[#allocation2] sm:$0xff]  ;;  %v3984_v31 = vpack.c.bf16 %v2433_v29, %v2429_v28 }
 0x707   :  { %v2514_v28 = vld [vmem:[#allocation13 + $0x6e8] sm:$0xff] }
 0x708   :  { %3913 = vmatpush1.bf16.msra.mxu1 %v3912_v36  ;;  %v3968_v36 = vpack.c.bf16 %v2997_v34, %v2996_v33  ;;  %3967 = vmatprep.subr.bf16.mxu0 %v3966_v32  ;;  %v2437_v32 = vld [vmem:[#allocation13 + $0x480] sm:$0xff]  ;;  %v2446_v34 = vld [vmem:[#allocation13 + $0x4c8] sm:$0xff] }
 0x709   :  { %3915 = vmatprep.subr.bf16.mxu1 %v3914_v37  ;;  %v1974_v37 = vld [vmem:[#allocation16 + $0x20] ss:$8 sm:$0x3] }
 0x70a   :  { %3969 = vmatpush3.bf16.msra.mxu0 %v3968_v36  ;;  %v1979_v38 = vrot.slane %v1974_v37, %v4749_v51  ;;  %v1983_v39 = vrot.slane %v1974_v37, %v4754_v53  ;;  %v2441_v33 = vld [vmem:[#allocation13 + $0x4a0] sm:$0xff]  ;;  %v2450_v36 = vld [vmem:[#allocation13 + $0x4e8] sm:$0xff] }
 0x70b   :  { %v3988_v37 = vpack.c.bf16 %v2441_v33, %v2437_v32 }
 0x70c   :  { %3917 = vmatpush1.bf16.msra.mxu1 %v3916_v44 }
 0x70d   :  { %3919 = vmatprep.subr.bf16.mxu1 %v3918_v45 }
 0x710   :  { %v1827_v59 = vpop.f32.mrb[10].mxu0  ;;  %3921 = vmatpush1.bf16.msra.mxu1 %v3920_v49 }
 0x711   :  { %v1828_v61 = vadd.f32 %v1827_v59, %v1681_v54  ;;  %v1829_v63 = vpop.f32.mrb[11].mxu0  ;;  %3923 = vmatprep.subr.bf16.mxu1 %v3922_v55  ;;  %v2257_v55 = vld [vmem:[#allocation14 + $0x98] sm:$0xff] }
 0x712   :  { %v1830_v4 = vadd.f32 %v1829_v63, %v1685_v58  ;;  %2261 = vmatprep.subr.mxu0 %v2257_v55  ;;  %v2167_v58 = vld [vmem:[#allocation16 + $0x21] ss:$0 sm:$0xff]  ;;  %v2249_v63 = vld [vmem:[#allocation14 + $0x58] sm:$0xff] }
 0x713   :  { %v1834_v20 = vmax.f32 %v1828_v61, 0.0 }
 0x714   :  { %v1835_v9 = vmax.f32 %v1830_v4, 0.0  ;;  %3925 = vmatpush1.bf16.msra.mxu1 %v3924_v60  ;;  %v4206_v4 = vld [vmem:[#allocation5] sm:$0xff] }
 0x715   :  { %3927 = vmatprep.subr.bf16.mxu1 %v3926_v1  ;;  %v1842_v24 = vmul.f32 %v1838_v23, %v1834_v20  ;;  %v2251_v1 = vld [vmem:[#allocation14 + $0x68] sm:$0xff]  ;;  %v2425_v20 = vld [vmem:[#allocation13 + $0x420] sm:$0xff] }
 0x716   :  { %v1843_v16 = vmul.f32 %v1839_v8, %v1835_v9  ;;  %v3970_v2 = vpack.c.bf16 %v2251_v1, %v2249_v63  ;;  %v2250_v8 = vld [vmem:[#allocation14 + $0x60] sm:$0xff]  ;;  %v2253_v9 = vld [vmem:[#allocation14 + $0x78] sm:$0xff]  ;;  %v2430_v23 = vld [vmem:[#allocation13 + $0x448] sm:$0xff] }
 0x717   :  { %v3972_v11 = vpack.c.bf16 %v2250_v8, %v2248_v6  ;;  %v2478_v63 = vld [vmem:[#allocation13 + $0x5c8] sm:$0xff] }
 0x718   :  { %3929 = vmatpush1.bf16.msra.mxu1 %v3928_v10  ;;  %2121 = vmatprep.mubr.f32.mxu1 %v1843_v16  ;;  %v2255_v10 = vld [vmem:[#allocation14 + $0x88] sm:$0xff] }
 0x719   :  { %3931 = vmatprep.subr.bf16.mxu1 %v3930_v22  ;;  %v3974_v16 = vpack.c.bf16 %v2255_v10, %v2253_v9  ;;  %v2482_v1 = vld [vmem:[#allocation13 + $0x5e8] sm:$0xff] }
 0x71a   :  { %v2486_v6 = vld [vmem:[#allocation13 + $0x608] sm:$0xff] }
 0x71b   :  { %v2490_v8 = vld [vmem:[#allocation13 + $0x628] sm:$0xff] }
 0x71c   :  { %3933 = vmatpush1.bf16.msra.mxu1 %v3932_v14  ;;  %v2422_v14 = vld [vmem:[#allocation13 + $0x408] sm:$0xff]  ;;  %v4010_v10 = vpack.c.bf16 %v2490_v8, %v2486_v6  ;;  %v3035_v6 = vld [vmem:[%s5385_s9 + $0x298] sm:$0xff] }
 0x71d   :  { %3935 = vmatprep.subr.bf16.mxu1 %v3934_v62  ;;  %v2426_v62 = vld [vmem:[#allocation13 + $0x428] sm:$0xff] }
 0x71e   :  { %v3978_v41 = vpack.c.bf16 %v2426_v62, %v2422_v14  ;;  %v2493_v62 = vld [vmem:[#allocation13 + $0x640] sm:$0xff] }
 0x720   :  { %3937 = vmatpush1.bf16.msra.mxu1 %v3936_v18  ;;  %v2421_v18 = vld [vmem:[#allocation13 + $0x400] sm:$0xff] }
 0x721   :  { %v3980_v25 = vpack.c.bf16 %v2425_v20, %v2421_v18  ;;  %v2506_v18 = vld [vmem:[#allocation13 + $0x6a8] sm:$0xff] }
 0x723   :  { %2122 = vmatmul.mubr.f32.vlgmr.msra.gmra.mrb[14].mxu1 %v1842_v24  ;;  %v2434_v24 = vld [vmem:[#allocation13 + $0x468] sm:$0xff] }
 0x724   :  { %v3982_v27 = vpack.c.bf16 %v2434_v24, %v2430_v23  ;;  %v2501_v24 = vld [vmem:[#allocation13 + $0x680] sm:$0xff] }
 0x7f6   :  { %v2123_v40 = vpop.f32.mrb[14].mxu1 }
 0x7f7   :  { %v4174_v42 = vadd.f32 %v2123_v40, %v1979_v38  ;;  %v2125_v44 = vpop.f32.mrb[15].mxu1  ;;  %v3990_v38 = vpack.c.bf16 %v2450_v36, %v2446_v34  ;;  %v2449_v40 = vld [vmem:[#allocation13 + $0x4e0] sm:$0xff] }
 0x7f8   :  { %v4175_v45 = vadd.f32 %v2125_v44, %v1983_v39  ;;  %v2445_v39 = vld [vmem:[#allocation13 + $0x4c0] sm:$0xff]  ;;  %v2458_v44 = vld [vmem:[#allocation13 + $0x528] sm:$0xff] }
 0x7f9   :  { %v2128_v46 = vmax.f32 %v4174_v42, 0.0  ;;  %v2454_v42 = vld [vmem:[#allocation13 + $0x508] sm:$0xff]  ;;  %v2517_v34 = vld [vmem:[#allocation13 + $0x700] sm:$0xff] }
 0x7fa   :  { %v2129_v48 = vmax.f32 %v4175_v45, 0.0  ;;  %v3992_v45 = vpack.c.bf16 %v2449_v40, %v2445_v39  ;;  %v2521_v36 = vld [vmem:[#allocation13 + $0x720] sm:$0xff] }
 0x7fb   :  { %v2132_v54 = vmul.f32 %v2130_v50, %v2128_v46  ;;  %v3994_v46 = vpack.c.bf16 %v2458_v44, %v2454_v42  ;;  %v2457_v50 = vld [vmem:[#allocation13 + $0x520] sm:$0xff]  ;;  %v4028_v39 = vpack.c.bf16 %v2521_v36, %v2517_v34  ;;  %v3027_v34 = vld [vmem:[%s5385_s9 + $0x258] sm:$0xff] }
 0x7fc   :  { %v2133_v49 = vmul.f32 %v2131_v47, %v2129_v48  ;;  %v2453_v47 = vld [vmem:[#allocation13 + $0x500] sm:$0xff]  ;;  %v2462_v48 = vld [vmem:[#allocation13 + $0x548] sm:$0xff] }
 0x7fd   :  { %v2525_v42 = vld [vmem:[#allocation13 + $0x740] sm:$0xff] }
 0x7fe   :  { %2232 = vmatprep.mubr.f32.mxu0 %v2133_v49  ;;  %v2466_v49 = vld [vmem:[#allocation13 + $0x568] sm:$0xff]  ;;  %v2529_v44 = vld [vmem:[#allocation13 + $0x760] sm:$0xff] }
 0x7ff   :  { %2233 = vmatmul.mubr.f32.vlgmr.msra.gmra.mrb[12].mxu0 %v2132_v54  ;;  %v3996_v54 = vpack.c.bf16 %v2457_v50, %v2453_v47  ;;  %v3998_v55 = vpack.c.bf16 %v2466_v49, %v2462_v48  ;;  %v4032_v47 = vpack.c.bf16 %v2529_v44, %v2525_v42  ;;  %v2533_v48 = vld [vmem:[#allocation13 + $0x780] sm:$0xff] }
 0x800   :  { %2325 = vmatprep.mubr.f32.mxu0 %v4453_v0  ;;  %2262 = vmatpush1.msra.mxu0 %v2256_v57  ;;  %v2461_v57 = vld [vmem:[#allocation13 + $0x540] sm:$0xff] }
 0x801   :  { %3971 = vmatprep.subr.bf16.mxu0 %v3970_v2  ;;  %v2537_v49 = vld [vmem:[#allocation13 + $0x7a0] sm:$0xff] }
 0x802   :  { %v3044_v36 = vld [vmem:[%s5385_s9 + $0x2e0] sm:$0xff] }
 0x8d2   :  { %v3217_v52 = vpop.f32.mrb[12].mxu0 }
 0x8d3   :  { %v3218_v7 = vpop.f32.mrb[13].mxu0 }
 0x8d4   :  { %v3219_v43 = vadd.f32 %v3218_v7, %v3217_v52  ;;  %v2465_v52 = vld [vmem:[#allocation13 + $0x560] sm:$0xff]  ;;  %v2474_v7 = vld [vmem:[#allocation13 + $0x5a8] sm:$0xff] }
 0x8d6   :  { %v2235_v59 = vadd.f32 %v3219_v43, %v2167_v58  ;;  %v2470_v58 = vld [vmem:[#allocation13 + $0x588] sm:$0xff]  ;;  %v4000_v43 = vpack.c.bf16 %v2465_v52, %v2461_v57 }
 0x8d7   :  { %v2546_v57 = vld [vmem:[#allocation13 + $0x7e8] sm:$0xff] }
 0x8d8   :  { %v2238_v60 = vmul.f32 0.5, %v2235_v59  ;;  %2936 = vrot.lane.b32.xlu1 %v2235_v59, %s4455_s7 }
 0x8da   :  { %v2239_v61 = vmul.f32 1.442695, %v2238_v60  ;;  %v2469_v60 = vld [vmem:[#allocation13 + $0x580] sm:$0xff] }
 0x8dc   :  { %4203 = vpow2.f32 %v2239_v61  ;;  %v2473_v61 = vld [vmem:[#allocation13 + $0x5a0] sm:$0xff] }
 0x8dd   :  { %v4004_v2 = vpack.c.bf16 %v2473_v61, %v2469_v60  ;;  %v2428_v60 = vld [vmem:[#allocation13 + $0x438] sm:$0xff] }
 0x8e6   :  { %v4204_v3 = vpop.eup %4203 }
 0x8e7   :  { %v2241_v5 = vmul.f32 %v4206_v4, %v4204_v3  ;;  %v4006_v3 = vpack.c.bf16 %v2482_v1, %v2478_v63  ;;  %v2477_v4 = vld [vmem:[#allocation13 + $0x5c0] sm:$0xff]  ;;  %v3033_v1 = vld [vmem:[%s5385_s9 + $0x288] sm:$0xff] }
 0x8e8   :  { %v3032_v63 = vld [vmem:[%s5385_s9 + $0x280] sm:$0xff] }
 0x8e9   :  { %2243 = vrot.lane.b32.xlu0 %v2241_v5, %s4454_s4  ;;  %v2481_v5 = vld [vmem:[#allocation13 + $0x5e0] sm:$0xff] }
 0x8ea   :  { %v4008_v9 = vpack.c.bf16 %v2481_v5, %v2477_v4  ;;  %v3017_v4 = vld [vmem:[%s5385_s9 + $0x208] sm:$0xff]  ;;  %v3034_v5 = vld [vmem:[%s5385_s9 + $0x290] sm:$0xff] }
 0x95b   :  { %v2244_v22 = vpop.permute.xlu0 %2243 }
 0x95c   :  { %v5144_v12 = vadd.f32 %v2244_v22, %v2235_v59  ;;  %v4002_v59 = vpack.c.bf16 %v2474_v7, %v2470_v58  ;;  %v2485_v22 = vld [vmem:[#allocation13 + $0x600] sm:$0xff] }
 0x95d   :  { %v2541_v58 = vld [vmem:[#allocation13 + $0x7c0] sm:$0xff] }
 0x95e   :  { %3014 = vmatmul.mubr.msk.f32.vlgmr.msra.gmra.mrb[14].mxu0 %vm772_vm2, %v5144_v12  ;;  %v2545_v7 = vld [vmem:[#allocation13 + $0x7e0] sm:$0xff] }
 0x95f   :  { %3973 = vmatpush1.bf16.msra.mxu0 %v3972_v11  ;;  %2396 = vmatprep.mubr.f32.mxu0 %v4453_v0  ;;  %v3986_v0 = vpack.c.bf16 %v2442_v17, %v2438_v30  ;;  %v2489_v11 = vld [vmem:[#allocation13 + $0x620] sm:$0xff] }
 0x960   :  { %3975 = vmatprep.subr.bf16.mxu0 %v3974_v16  ;;  %v2494_v16 = vld [vmem:[#allocation13 + $0x648] sm:$0xff]  ;;  %v4012_v13 = vpack.c.bf16 %v2489_v11, %v2485_v22  ;;  %v2509_v17 = vld [vmem:[#allocation13 + $0x6c0] sm:$0xff]  ;;  %v3019_v22 = vld [vmem:[%s5385_s9 + $0x218] sm:$0xff] }
 0x961   :  { %v4014_v14 = vpack.c.bf16 %v2498_v26, %v2494_v16  ;;  %v3036_v11 = vld [vmem:[%s5385_s9 + $0x2a0] sm:$0xff]  ;;  %v3037_v16 = vld [vmem:[%s5385_s9 + $0x2a8] sm:$0xff] }
 0x963   :  { %3977 = vmatpush1.bf16.msra.mxu0 %v3976_v15  ;;  %v2497_v15 = vld [vmem:[#allocation13 + $0x660] sm:$0xff] }
 0x964   :  { %3979 = vmatprep.subr.bf16.mxu0 %v3978_v41  ;;  %v2502_v41 = vld [vmem:[#allocation13 + $0x688] sm:$0xff]  ;;  %v4016_v20 = vpack.c.bf16 %v2497_v15, %v2493_v62  ;;  %v3038_v15 = vld [vmem:[%s5385_s9 + $0x2b0] sm:$0xff] }
 0x965   :  { %v4018_v23 = vpack.c.bf16 %v2506_v18, %v2502_v41  ;;  %v3021_v62 = vld [vmem:[%s5385_s9 + $0x228] sm:$0xff]  ;;  %v3039_v41 = vld [vmem:[%s5385_s9 + $0x2b8] sm:$0xff] }
 0x966   :  { %3015 = vmatmul.mubr.msk.f32.vlgmr.msra.gmra.mrb[14].mxu0 %vm847_vm1, %v4207_v19  ;;  %v2513_v19 = vld [vmem:[#allocation13 + $0x6e0] sm:$0xff] }
 0x967   :  { %3981 = vmatpush1.bf16.msra.mxu0 %v3980_v25  ;;  %v2505_v25 = vld [vmem:[#allocation13 + $0x6a0] sm:$0xff]  ;;  %v4024_v32 = vpack.c.bf16 %v2513_v19, %v2509_v17  ;;  %v3025_v17 = vld [vmem:[%s5385_s9 + $0x248] sm:$0xff]  ;;  %v3042_v19 = vld [vmem:[%s5385_s9 + $0x2d0] sm:$0xff] }
 0x968   :  { %3983 = vmatprep.subr.bf16.mxu0 %v3982_v27  ;;  %v2510_v27 = vld [vmem:[#allocation13 + $0x6c8] sm:$0xff]  ;;  %v4020_v29 = vpack.c.bf16 %v2505_v25, %v2501_v24  ;;  %v3023_v24 = vld [vmem:[%s5385_s9 + $0x238] sm:$0xff]  ;;  %v3040_v25 = vld [vmem:[%s5385_s9 + $0x2c0] sm:$0xff] }
 0x969   :  { %v4022_v30 = vpack.c.bf16 %v2514_v28, %v2510_v27  ;;  %v3041_v27 = vld [vmem:[%s5385_s9 + $0x2c8] sm:$0xff] }
 0x96b   :  { %3985 = vmatpush1.bf16.msra.mxu0 %v3984_v31  ;;  %v2518_v31 = vld [vmem:[#allocation13 + $0x708] sm:$0xff] }
 0x96c   :  { %3987 = vmatprep.subr.bf16.mxu0 %v3986_v0  ;;  %v2522_v0 = vld [vmem:[#allocation13 + $0x728] sm:$0xff] }
 0x96d   :  { %v4026_v33 = vpack.c.bf16 %v2522_v0, %v2518_v31  ;;  %v3043_v31 = vld [vmem:[%s5385_s9 + $0x2d8] sm:$0xff] }
 0x96f   :  { %3989 = vmatpush1.bf16.msra.mxu0 %v3988_v37  ;;  %v2526_v37 = vld [vmem:[#allocation13 + $0x748] sm:$0xff] }
 0x970   :  { %3991 = vmatprep.subr.bf16.mxu0 %v3990_v38  ;;  %v2530_v38 = vld [vmem:[#allocation13 + $0x768] sm:$0xff] }
 0x971   :  { %v4030_v40 = vpack.c.bf16 %v2530_v38, %v2526_v37  ;;  %v3045_v37 = vld [vmem:[%s5385_s9 + $0x2e8] sm:$0xff] }
 0x973   :  { %3993 = vmatpush1.bf16.msra.mxu0 %v3992_v45  ;;  %v2534_v45 = vld [vmem:[#allocation13 + $0x788] sm:$0xff] }
 0x974   :  { %3995 = vmatprep.subr.bf16.mxu0 %v3994_v46  ;;  %v2538_v46 = vld [vmem:[#allocation13 + $0x7a8] sm:$0xff] }
 0x975   :  { %v4034_v50 = vpack.c.bf16 %v2538_v46, %v2534_v45 }
 0x977   :  { %3997 = vmatpush1.bf16.msra.mxu0 %v3996_v54  ;;  %v4036_v54 = vpack.c.bf16 %v2537_v49, %v2533_v48  ;;  %v2427_v48 = vld [vmem:[#allocation13 + $0x430] sm:$0xff] }
 0x978   :  { %3999 = vmatprep.subr.bf16.mxu0 %v3998_v55  ;;  %v2542_v55 = vld [vmem:[#allocation13 + $0x7c8] sm:$0xff] }
 0x979   :  { %v4038_v52 = vpack.c.bf16 %v2546_v57, %v2542_v55  ;;  %v2436_v55 = vld [vmem:[#allocation13 + $0x478] sm:$0xff] }
 0x97b   :  { %4001 = vmatpush1.bf16.msra.mxu0 %v4000_v43  ;;  %v4040_v43 = vpack.c.bf16 %v2545_v7, %v2541_v58 }
 0x97c   :  { %4003 = vmatprep.subr.bf16.mxu0 %v4002_v59  ;;  %v2424_v59 = vld [vmem:[#allocation13 + $0x418] sm:$0xff] }
 0x97d   :  { %v4042_v61 = vpack.c.bf16 %v2428_v60, %v2424_v59  ;;  %v2435_v59 = vld [vmem:[#allocation13 + $0x470] sm:$0xff]  ;;  %v2440_v60 = vld [vmem:[#allocation13 + $0x498] sm:$0xff] }
 0x97f   :  { %4005 = vmatpush1.bf16.msra.mxu0 %v4004_v2  ;;  %v3016_v2 = vld [vmem:[%s5385_s9 + $0x200] sm:$0xff] }
 0x980   :  { %4007 = vmatprep.subr.bf16.mxu0 %v4006_v3  ;;  %v4106_v3 = vpack.c.bf16 %v3033_v1, %v3032_v63  ;;  %v4108_v8 = vpack.c.bf16 %v3017_v4, %v3016_v2  ;;  %v2439_v2 = vld [vmem:[#allocation13 + $0x490] sm:$0xff]  ;;  %v2448_v4 = vld [vmem:[#allocation13 + $0x4d8] sm:$0xff] }
 0x982   :  { %4107 = vmatprep.subr.bf16.mxu1 %v4106_v3  ;;  %v2443_v3 = vld [vmem:[#allocation13 + $0x4b0] sm:$0xff] }
 0x983   :  { %4009 = vmatpush1.bf16.msra.mxu0 %v4008_v9  ;;  %v4110_v9 = vpack.c.bf16 %v3035_v6, %v3034_v5  ;;  %4109 = vmatpush3.bf16.msra.mxu1 %v4108_v8  ;;  %v2452_v5 = vld [vmem:[#allocation13 + $0x4f8] sm:$0xff]  ;;  %v4052_v6 = vpack.c.bf16 %v2443_v3, %v2439_v2 }
 0x984   :  { %4011 = vmatprep.subr.bf16.mxu0 %v4010_v10  ;;  %v3018_v10 = vld [vmem:[%s5385_s9 + $0x210] sm:$0xff]  ;;  %v4054_v8 = vpack.c.bf16 %v2452_v5, %v2448_v4  ;;  %v2520_v2 = vld [vmem:[#allocation13 + $0x718] sm:$0xff] }
 0x985   :  { %v4112_v26 = vpack.c.bf16 %v3019_v22, %v3018_v10  ;;  %4111 = vmatprep.subr.bf16.mxu1 %v4110_v9  ;;  %v2447_v9 = vld [vmem:[#allocation13 + $0x4d0] sm:$0xff]  ;;  %v2456_v22 = vld [vmem:[#allocation13 + $0x518] sm:$0xff] }
 0x986   :  { %v2451_v10 = vld [vmem:[#allocation13 + $0x4f0] sm:$0xff]  ;;  %v2524_v3 = vld [vmem:[#allocation13 + $0x738] sm:$0xff] }
 0x987   :  { %4013 = vmatpush1.bf16.msra.mxu0 %v4012_v13  ;;  %v4114_v13 = vpack.c.bf16 %v3037_v16, %v3036_v11  ;;  %4113 = vmatpush3.bf16.msra.mxu1 %v4112_v26  ;;  %v2460_v11 = vld [vmem:[#allocation13 + $0x538] sm:$0xff]  ;;  %v4056_v16 = vpack.c.bf16 %v2451_v10, %v2447_v9  ;;  %v4090_v5 = vpack.c.bf16 %v2524_v3, %v2520_v2  ;;  %v3070_v2 = vld [vmem:[%s5385_s9 + $0x3b0] sm:$0xff] }
 0x988   :  { %4015 = vmatprep.subr.bf16.mxu0 %v4014_v14  ;;  %v3020_v14 = vld [vmem:[%s5385_s9 + $0x220] sm:$0xff]  ;;  %v4058_v26 = vpack.c.bf16 %v2460_v11, %v2456_v22  ;;  %v2528_v9 = vld [vmem:[#allocation13 + $0x758] sm:$0xff] }
 0x989   :  { %v4116_v18 = vpack.c.bf16 %v3021_v62, %v3020_v14  ;;  %4115 = vmatprep.subr.bf16.mxu1 %v4114_v13  ;;  %v2455_v13 = vld [vmem:[#allocation13 + $0x510] sm:$0xff]  ;;  %v2464_v62 = vld [vmem:[#allocation13 + $0x558] sm:$0xff] }
 0x98a   :  { %v2459_v14 = vld [vmem:[#allocation13 + $0x530] sm:$0xff]  ;;  %v2532_v10 = vld [vmem:[#allocation13 + $0x778] sm:$0xff] }
 0x98b   :  { %4017 = vmatpush1.bf16.msra.mxu0 %v4016_v20  ;;  %v4118_v20 = vpack.c.bf16 %v3039_v41, %v3038_v15  ;;  %4117 = vmatpush3.bf16.msra.mxu1 %v4116_v18  ;;  %v2468_v15 = vld [vmem:[#allocation13 + $0x578] sm:$0xff]  ;;  %v4060_v41 = vpack.c.bf16 %v2459_v14, %v2455_v13  ;;  %v4094_v11 = vpack.c.bf16 %v2532_v10, %v2528_v9  ;;  %v3072_v9 = vld [vmem:[%s5385_s9 + $0x3c0] sm:$0xff]  ;;  %v3073_v10 = vld [vmem:[%s5385_s9 + $0x3c8] sm:$0xff] }
 0x98c   :  { %4019 = vmatprep.subr.bf16.mxu0 %v4018_v23  ;;  %v3022_v23 = vld [vmem:[%s5385_s9 + $0x230] sm:$0xff]  ;;  %v4062_v18 = vpack.c.bf16 %v2468_v15, %v2464_v62  ;;  %v2536_v13 = vld [vmem:[#allocation13 + $0x798] sm:$0xff] }
 0x98d   :  { %v4120_v28 = vpack.c.bf16 %v3023_v24, %v3022_v23  ;;  %4119 = vmatprep.subr.bf16.mxu1 %v4118_v20  ;;  %v2463_v20 = vld [vmem:[#allocation13 + $0x550] sm:$0xff]  ;;  %v2472_v24 = vld [vmem:[#allocation13 + $0x598] sm:$0xff] }
 0x98e   :  { %v2467_v23 = vld [vmem:[#allocation13 + $0x570] sm:$0xff]  ;;  %v2540_v14 = vld [vmem:[#allocation13 + $0x7b8] sm:$0xff] }
 0x98f   :  { %4021 = vmatpush1.bf16.msra.mxu0 %v4020_v29  ;;  %v4122_v29 = vpack.c.bf16 %v3041_v27, %v3040_v25  ;;  %4121 = vmatpush3.bf16.msra.mxu1 %v4120_v28  ;;  %v2476_v25 = vld [vmem:[#allocation13 + $0x5b8] sm:$0xff]  ;;  %v4064_v27 = vpack.c.bf16 %v2467_v23, %v2463_v20  ;;  %v4098_v15 = vpack.c.bf16 %v2540_v14, %v2536_v13  ;;  %v3074_v13 = vld [vmem:[%s5385_s9 + $0x3d0] sm:$0xff] }
 0x990   :  { %4023 = vmatprep.subr.bf16.mxu0 %v4022_v30  ;;  %v3024_v30 = vld [vmem:[%s5385_s9 + $0x240] sm:$0xff]  ;;  %v4066_v28 = vpack.c.bf16 %v2476_v25, %v2472_v24  ;;  %v2544_v20 = vld [vmem:[#allocation13 + $0x7d8] sm:$0xff] }
 0x991   :  { %v4124_v0 = vpack.c.bf16 %v3025_v17, %v3024_v30  ;;  %4123 = vmatprep.subr.bf16.mxu1 %v4122_v29  ;;  %v2471_v29 = vld [vmem:[#allocation13 + $0x590] sm:$0xff]  ;;  %v2480_v17 = vld [vmem:[#allocation13 + $0x5d8] sm:$0xff] }
 0x992   :  { %v2475_v30 = vld [vmem:[#allocation13 + $0x5b0] sm:$0xff]  ;;  %v2548_v23 = vld [vmem:[#allocation13 + $0x7f8] sm:$0xff] }
 0x993   :  { %4025 = vmatpush1.bf16.msra.mxu0 %v4024_v32  ;;  %v4126_v32 = vpack.c.bf16 %v3043_v31, %v3042_v19  ;;  %4125 = vmatpush3.bf16.msra.mxu1 %v4124_v0  ;;  %v2484_v19 = vld [vmem:[#allocation13 + $0x5f8] sm:$0xff]  ;;  %v4068_v31 = vpack.c.bf16 %v2475_v30, %v2471_v29  ;;  %v4102_v25 = vpack.c.bf16 %v2548_v23, %v2544_v20  ;;  %v3028_v30 = vld [vmem:[%s5385_s9 + $0x260] sm:$0xff]  ;;  %v3077_v23 = vld [vmem:[%s5385_s9 + $0x3e8] sm:$0xff] }
 0x994   :  { %4027 = vmatprep.subr.bf16.mxu0 %v4026_v33  ;;  %v3026_v33 = vld [vmem:[%s5385_s9 + $0x250] sm:$0xff]  ;;  %v4070_v0 = vpack.c.bf16 %v2484_v19, %v2480_v17  ;;  %v3029_v17 = vld [vmem:[%s5385_s9 + $0x268] sm:$0xff]  ;;  %v3071_v3 = vld [vmem:[%s5385_s9 + $0x3b8] sm:$0xff] }
 0x995   :  { %v4128_v38 = vpack.c.bf16 %v3027_v34, %v3026_v33  ;;  %4127 = vmatprep.subr.bf16.mxu1 %v4126_v32  ;;  %v2479_v32 = vld [vmem:[#allocation13 + $0x5d0] sm:$0xff]  ;;  %v2488_v34 = vld [vmem:[#allocation13 + $0x618] sm:$0xff]  ;;  %v4132_v19 = vpack.c.bf16 %v3029_v17, %v3028_v30  ;;  %v3076_v20 = vld [vmem:[%s5385_s9 + $0x3e0] sm:$0xff] }
 0x996   :  { %v2483_v33 = vld [vmem:[#allocation13 + $0x5f0] sm:$0xff]  ;;  %v3075_v14 = vld [vmem:[%s5385_s9 + $0x3d8] sm:$0xff] }
 0x997   :  { %4029 = vmatpush1.bf16.msra.mxu0 %v4028_v39  ;;  %v4130_v39 = vpack.c.bf16 %v3045_v37, %v3044_v36  ;;  %4129 = vmatpush3.bf16.msra.mxu1 %v4128_v38  ;;  %v2492_v36 = vld [vmem:[#allocation13 + $0x638] sm:$0xff]  ;;  %v4072_v37 = vpack.c.bf16 %v2483_v33, %v2479_v32 }
 0x998   :  { %4031 = vmatprep.subr.bf16.mxu0 %v4030_v40  ;;  %v2404_v40 = vld [vmem:[#allocation16 + $0x22] ss:$8 sm:$0x3]  ;;  %v4074_v38 = vpack.c.bf16 %v2492_v36, %v2488_v34  ;;  %v3031_v32 = vld [vmem:[%s5385_s9 + $0x278] sm:$0xff] }
 0x999   :  { %4131 = vmatprep.subr.bf16.mxu1 %v4130_v39  ;;  %v2409_v42 = vrot.slane %v2404_v40, %v4749_v51  ;;  %v2413_v44 = vrot.slane %v2404_v40, %v4754_v53  ;;  %v2487_v39 = vld [vmem:[#allocation13 + $0x610] sm:$0xff]  ;;  %v3064_v34 = vld [vmem:[%s5385_s9 + $0x380] sm:$0xff]  ;;  %v3065_v36 = vld [vmem:[%s5385_s9 + $0x388] sm:$0xff] }
 0x99a   :  { %v2491_v40 = vld [vmem:[#allocation13 + $0x630] sm:$0xff]  ;;  %v3079_v30 = vld [vmem:[%s5385_s9 + $0x3f8] sm:$0xff] }
 0x99b   :  { %4033 = vmatpush1.bf16.msra.mxu0 %v4032_v47  ;;  %4133 = vmatpush3.bf16.msra.mxu1 %v4132_v19 }
 0x99c   :  { %4035 = vmatprep.subr.bf16.mxu0 %v4034_v50  ;;  %v2423_v50 = vld [vmem:[#allocation13 + $0x410] sm:$0xff] }
 0x99f   :  { %4037 = vmatpush1.bf16.msra.mxu0 %v4036_v54  ;;  %v2432_v54 = vld [vmem:[#allocation13 + $0x458] sm:$0xff] }
 0x9a0   :  { %4039 = vmatprep.subr.bf16.mxu0 %v4038_v52  ;;  %v4044_v52 = vpack.c.bf16 %v2427_v48, %v2423_v50  ;;  %v4046_v7 = vpack.c.bf16 %v2436_v55, %v2432_v54  ;;  %v2495_v50 = vld [vmem:[#allocation13 + $0x650] sm:$0xff]  ;;  %v2508_v54 = vld [vmem:[#allocation13 + $0x6b8] sm:$0xff] }
 0x9a1   :  { %v2499_v48 = vld [vmem:[#allocation13 + $0x670] sm:$0xff] }
 0x9a2   :  { %v4080_v55 = vpack.c.bf16 %v2499_v48, %v2495_v50  ;;  %v3049_v50 = vld [vmem:[%s5385_s9 + $0x308] sm:$0xff] }
 0x9a3   :  { %4041 = vmatpush1.bf16.msra.mxu0 %v4040_v43  ;;  %v2431_v43 = vld [vmem:[#allocation13 + $0x450] sm:$0xff] }
 0x9a4   :  { %4043 = vmatprep.subr.bf16.mxu0 %v4042_v61  ;;  %v2444_v61 = vld [vmem:[#allocation13 + $0x4b8] sm:$0xff]  ;;  %v4048_v63 = vpack.c.bf16 %v2435_v59, %v2431_v43 }
 0x9a5   :  { %v4050_v1 = vpack.c.bf16 %v2444_v61, %v2440_v60  ;;  %v2512_v43 = vld [vmem:[#allocation13 + $0x6d8] sm:$0xff] }
 0x9a6   :  { %v2516_v59 = vld [vmem:[#allocation13 + $0x6f8] sm:$0xff] }
 0x9a7   :  { %v4086_v61 = vpack.c.bf16 %v2516_v59, %v2512_v43  ;;  %v3068_v43 = vld [vmem:[%s5385_s9 + $0x3a0] sm:$0xff]  ;;  %v3069_v59 = vld [vmem:[%s5385_s9 + $0x3a8] sm:$0xff] }
 0xa39   :  { %v2398_v45 = vpop.f32.mrb[14].mxu0 }
 0xa3a   :  { %v5230_v46 = vadd.f32 %v2409_v42, %v2398_v45  ;;  %v2400_v47 = vpop.f32.mrb[15].mxu0  ;;  %v2496_v42 = vld [vmem:[#allocation13 + $0x658] sm:$0xff]  ;;  %v4076_v45 = vpack.c.bf16 %v2491_v40, %v2487_v39 }
 0xa3b   :  { %v2417_v49 = vadd.f32 %v2413_v44, %v2400_v47  ;;  %v2500_v44 = vld [vmem:[#allocation13 + $0x678] sm:$0xff] }
 0xa3c   :  { %v2418_v58 = vmax.f32 %v5230_v46, 0.0  ;;  %v4078_v47 = vpack.c.bf16 %v2500_v44, %v2496_v42 }
 0xa3d   :  { %v2419_v57 = vmax.f32 %v2417_v49, 0.0  ;;  %v2504_v49 = vld [vmem:[#allocation13 + $0x698] sm:$0xff] }
 0xa3f   :  { %2636 = vmatprep.mubr.f32.mxu0 %v2419_v57 }
 0xa40   :  { %2637 = vmatmul.mubr.f32.vlgmr.msra.gmra.mrb[16].mxu0 %v2418_v58 }
 0xa41   :  { %4045 = vmatpush1.bf16.msra.mxu0 %v4044_v52  ;;  %2707 = vmatprep.mubr.f32.mxu0 %v2419_v57  ;;  %v4082_v57 = vpack.c.bf16 %v2508_v54, %v2504_v49  ;;  %v2503_v52 = vld [vmem:[#allocation13 + $0x690] sm:$0xff] }
 0xa42   :  { %4047 = vmatprep.subr.bf16.mxu0 %v4046_v7  ;;  %v2507_v7 = vld [vmem:[#allocation13 + $0x6b0] sm:$0xff] }
 0xa43   :  { %v4084_v60 = vpack.c.bf16 %v2507_v7, %v2503_v52  ;;  %v3066_v49 = vld [vmem:[%s5385_s9 + $0x390] sm:$0xff]  ;;  %v3051_v7 = vld [vmem:[%s5385_s9 + $0x318] sm:$0xff] }
 0xa44   :  { %v3050_v52 = vld [vmem:[%s5385_s9 + $0x310] sm:$0xff] }
 0xa45   :  { %4049 = vmatpush1.bf16.msra.mxu0 %v4048_v63  ;;  %v2511_v63 = vld [vmem:[#allocation13 + $0x6d0] sm:$0xff] }
 0xa46   :  { %4051 = vmatprep.subr.bf16.mxu0 %v4050_v1  ;;  %v2515_v1 = vld [vmem:[#allocation13 + $0x6f0] sm:$0xff] }
 0xa47   :  { %v4088_v4 = vpack.c.bf16 %v2515_v1, %v2511_v63  ;;  %v3052_v63 = vld [vmem:[%s5385_s9 + $0x320] sm:$0xff]  ;;  %v3053_v1 = vld [vmem:[%s5385_s9 + $0x328] sm:$0xff] }
 0xa49   :  { %4053 = vmatpush1.bf16.msra.mxu0 %v4052_v6  ;;  %v2519_v6 = vld [vmem:[#allocation13 + $0x710] sm:$0xff] }
 0xa4a   :  { %4055 = vmatprep.subr.bf16.mxu0 %v4054_v8  ;;  %v2523_v8 = vld [vmem:[#allocation13 + $0x730] sm:$0xff] }
 0xa4b   :  { %v4092_v22 = vpack.c.bf16 %v2523_v8, %v2519_v6  ;;  %v3054_v6 = vld [vmem:[%s5385_s9 + $0x330] sm:$0xff]  ;;  %v3055_v8 = vld [vmem:[%s5385_s9 + $0x338] sm:$0xff] }
 0xa4d   :  { %4057 = vmatpush1.bf16.msra.mxu0 %v4056_v16  ;;  %v2527_v16 = vld [vmem:[#allocation13 + $0x750] sm:$0xff] }
 0xa4e   :  { %4059 = vmatprep.subr.bf16.mxu0 %v4058_v26  ;;  %v2531_v26 = vld [vmem:[#allocation13 + $0x770] sm:$0xff] }
 0xa4f   :  { %v4096_v62 = vpack.c.bf16 %v2531_v26, %v2527_v16  ;;  %v3056_v16 = vld [vmem:[%s5385_s9 + $0x340] sm:$0xff]  ;;  %v3057_v26 = vld [vmem:[%s5385_s9 + $0x348] sm:$0xff] }
 0xa51   :  { %4061 = vmatpush1.bf16.msra.mxu0 %v4060_v41  ;;  %v2535_v41 = vld [vmem:[#allocation13 + $0x790] sm:$0xff] }
 0xa52   :  { %4063 = vmatprep.subr.bf16.mxu0 %v4062_v18  ;;  %v2539_v18 = vld [vmem:[#allocation13 + $0x7b0] sm:$0xff] }
 0xa53   :  { %v4100_v24 = vpack.c.bf16 %v2539_v18, %v2535_v41  ;;  %v3058_v41 = vld [vmem:[%s5385_s9 + $0x350] sm:$0xff]  ;;  %v3059_v18 = vld [vmem:[%s5385_s9 + $0x358] sm:$0xff] }
 0xa55   :  { %4065 = vmatpush1.bf16.msra.mxu0 %v4064_v27  ;;  %v2543_v27 = vld [vmem:[#allocation13 + $0x7d0] sm:$0xff] }
 0xa56   :  { %4067 = vmatprep.subr.bf16.mxu0 %v4066_v28  ;;  %v2547_v28 = vld [vmem:[#allocation13 + $0x7f0] sm:$0xff] }
 0xa57   :  { %v4104_v29 = vpack.c.bf16 %v2547_v28, %v2543_v27  ;;  %v3060_v27 = vld [vmem:[%s5385_s9 + $0x360] sm:$0xff]  ;;  %v3061_v28 = vld [vmem:[%s5385_s9 + $0x368] sm:$0xff] }
 0xa58   :  { %v4164_v17 = vpack.c.bf16 %v3061_v28, %v3060_v27 }
 0xa59   :  { %4069 = vmatpush1.bf16.msra.mxu0 %v4068_v31  ;;  %v3046_v31 = vld [vmem:[%s5385_s9 + $0x2f0] sm:$0xff] }
 0xa5a   :  { %4071 = vmatprep.subr.bf16.mxu0 %v4070_v0  ;;  %v3047_v0 = vld [vmem:[%s5385_s9 + $0x2f8] sm:$0xff] }
 0xa5b   :  { %v4134_v46 = vpack.c.bf16 %v3047_v0, %v3046_v31  ;;  %v3062_v31 = vld [vmem:[%s5385_s9 + $0x370] sm:$0xff]  ;;  %v3063_v0 = vld [vmem:[%s5385_s9 + $0x378] sm:$0xff] }
 0xa5d   :  { %4073 = vmatpush1.bf16.msra.mxu0 %v4072_v37  ;;  %4135 = vmatprep.subr.bf16.mxu1 %v4134_v46  ;;  %v4138_v37 = vpack.c.bf16 %v3065_v36, %v3064_v34  ;;  %v4168_v46 = vpack.c.bf16 %v3063_v0, %v3062_v31 }
 0xa5e   :  { %4075 = vmatprep.subr.bf16.mxu0 %v4074_v38  ;;  %v5261_v38 = vld [vmem:[#allocation16 + $0x23] ss:$8 sm:$0xf] }
 0xa5f   :  { %v2555_v39 = vrot.slane %v5261_v38, %v4749_v51  ;;  %v2559_v40 = vrot.slane %v5261_v38, %v4754_v53  ;;  %v3067_v51 = vld [vmem:[%s5385_s9 + $0x398] sm:$0xff] }
 0xa61   :  { %4077 = vmatpush1.bf16.msra.mxu0 %v4076_v45 }
 0xa62   :  { %4079 = vmatprep.subr.bf16.mxu0 %v4078_v47  ;;  %v3048_v47 = vld [vmem:[%s5385_s9 + $0x300] sm:$0xff] }
 0xa63   :  { %v4140_v54 = vpack.c.bf16 %v3049_v50, %v3048_v47  ;;  %v2783_v47 = vld [vmem:[#allocation16 + $0x24] ss:$0 sm:$0xff] }
 0xa65   :  { %4081 = vmatpush1.bf16.msra.mxu0 %v4080_v55 }
 0xa66   :  { %4083 = vmatprep.subr.bf16.mxu0 %v4082_v57  ;;  %v4142_v57 = vpack.c.bf16 %v3067_v51, %v3066_v49 }
 0xa69   :  { %4085 = vmatpush1.bf16.msra.mxu0 %v4084_v60  ;;  %v4144_v60 = vpack.c.bf16 %v3051_v7, %v3050_v52 }
 0xa6a   :  { %4087 = vmatprep.subr.bf16.mxu0 %v4086_v61  ;;  %v4146_v61 = vpack.c.bf16 %v3069_v59, %v3068_v43 }
 0xa6d   :  { %4089 = vmatpush1.bf16.msra.mxu0 %v4088_v4  ;;  %v4148_v4 = vpack.c.bf16 %v3053_v1, %v3052_v63 }
 0xa6e   :  { %4091 = vmatprep.subr.bf16.mxu0 %v4090_v5  ;;  %v4150_v5 = vpack.c.bf16 %v3071_v3, %v3070_v2 }
 0xa71   :  { %4093 = vmatpush1.bf16.msra.mxu0 %v4092_v22  ;;  %v4152_v22 = vpack.c.bf16 %v3055_v8, %v3054_v6 }
 0xa72   :  { %4095 = vmatprep.subr.bf16.mxu0 %v4094_v11  ;;  %v4154_v11 = vpack.c.bf16 %v3073_v10, %v3072_v9 }
 0xa75   :  { %4097 = vmatpush1.bf16.msra.mxu0 %v4096_v62  ;;  %v4156_v62 = vpack.c.bf16 %v3057_v26, %v3056_v16 }
 0xa76   :  { %4099 = vmatprep.subr.bf16.mxu0 %v4098_v15  ;;  %v4158_v15 = vpack.c.bf16 %v3075_v14, %v3074_v13 }
 0xa79   :  { %4101 = vmatpush1.bf16.msra.mxu0 %v4100_v24  ;;  %v4160_v24 = vpack.c.bf16 %v3059_v18, %v3058_v41 }
 0xa7a   :  { %4103 = vmatprep.subr.bf16.mxu0 %v4102_v25  ;;  %v4162_v25 = vpack.c.bf16 %v3077_v23, %v3076_v20 }
 0xa7d   :  { %4105 = vmatpush1.bf16.msra.mxu0 %v4104_v29  ;;  %v3078_v29 = vld [vmem:[%s5385_s9 + $0x3f0] sm:$0xff] }
 0xa7e   :  { %v4166_v19 = vpack.c.bf16 %v3079_v30, %v3078_v29 }
 0xa80   :  { %2708 = vmatmul.mubr.f32.vlgmr.msra.gmra.mrb[18].mxu0 %v2418_v58  ;;  %v3030_v58 = vld [vmem:[%s5385_s9 + $0x270] sm:$0xff]  ;;  %s4456_s9 = smov 40  }
 0xa81   :  { %v4136_v33 = vpack.c.bf16 %v3031_v32, %v3030_v58  ;;  %v2563_v58 = vrot.slane %v5261_v38, %v4768_v35  ;;  %v2567_v32 = vrot.slane %v5261_v38, %v4761_v56  ;;  %v2926_v56 = vpop.permute.xlu1 %2925 }
 0xa82   :  { %v2943_v38 = vsel %vm2942_vm3, %v5104_v21, %v2926_v56 }
 0xa83   :  { %4137 = vmatpush3.bf16.msra.mxu1 %v4136_v33 }
 0xa84   :  { %4139 = vmatprep.subr.bf16.mxu1 %v4138_v37 }
 0xb13   :  { %v2638_v42 = vpop.f32.mrb[16].mxu0 }
 0xb14   :  { %v2639_v44 = vadd.f32 %v2638_v42, %v2555_v39  ;;  %v2640_v45 = vpop.f32.mrb[17].mxu0 }
 0xb15   :  { %v2641_v48 = vadd.f32 %v2640_v45, %v2559_v40 }
 0xb16   :  { %v2714_v55 = vmax.f32 %v2639_v44, 0.0 }
 0xb17   :  { %v2715_v53 = vmax.f32 %v2641_v48, 0.0 }
 0xb19   :  { %2848 = vmatprep.mubr.f32.mxu1 %v2715_v53  ;;  %v2929_v53 = vpop.permute.xlu1 %2928 }
 0xb1a   :  { %2849 = vmatmul.mubr.f32.vlgmr.msra.gmra.mrb[16].mxu1 %v2714_v55 }
 0xb1b   :  { %4141 = vmatpush3.bf16.msra.mxu1 %v4140_v54  ;;  %v2945_v54 = vsel %vm2944_vm4, %v2943_v38, %v2926_v56 }
 0xb1c   :  { %4143 = vmatprep.subr.bf16.mxu1 %v4142_v57  ;;  %v2946_v57 = vsel %vm847_vm1, %v2945_v54, %v2929_v53 }
 0xb1d   :  { %v2937_v52 = vpop.permute.xlu1 %2936 }
 0xb1f   :  { %4145 = vmatpush3.bf16.msra.mxu1 %v4144_v60 }
 0xb20   :  { %4147 = vmatprep.subr.bf16.mxu1 %v4146_v61 }
 0xb23   :  { %4149 = vmatpush3.bf16.msra.mxu1 %v4148_v4 }
 0xb24   :  { %4151 = vmatprep.subr.bf16.mxu1 %v4150_v5 }
 0xb27   :  { %4153 = vmatpush3.bf16.msra.mxu1 %v4152_v22 }
 0xb28   :  { %4155 = vmatprep.subr.bf16.mxu1 %v4154_v11 }
 0xb2b   :  { %4157 = vmatpush3.bf16.msra.mxu1 %v4156_v62 }
 0xb2c   :  { %4159 = vmatprep.subr.bf16.mxu1 %v4158_v15 }
 0xb2f   :  { %4161 = vmatpush3.bf16.msra.mxu1 %v4160_v24 }
 0xb30   :  { %4163 = vmatprep.subr.bf16.mxu1 %v4162_v25 }
 0xb33   :  { %4165 = vmatpush3.bf16.msra.mxu1 %v4164_v17 }
 0xb34   :  { %4167 = vmatprep.subr.bf16.mxu1 %v4166_v19 }
 0xb37   :  { %4169 = vmatpush3.bf16.msra.mxu1 %v4168_v46 }
 0xb53   :  { %v2709_v33 = vpop.f32.mrb[18].mxu0 }
 0xb54   :  { %v2710_v34 = vadd.f32 %v2709_v33, %v2563_v58  ;;  %v2711_v36 = vpop.f32.mrb[19].mxu0 }
 0xb55   :  { %v2712_v37 = vadd.f32 %v2711_v36, %v2567_v32 }
 0xb56   :  { %v2716_v40 = vmax.f32 %v2710_v34, 0.0 }
 0xb57   :  { %v2717_v39 = vmax.f32 %v2712_v37, 0.0 }
 0xb59   :  { %2918 = vmatprep.mubr.f32.mxu1 %v2717_v39 }
 0xb5a   :  { %2919 = vmatmul.mubr.f32.vlgmr.msra.gmra.mrb[18].mxu1 %v2716_v40 }
 0xbed   :  { %v3252_v42 = vpop.f32.mrb[16].mxu1 }
 0xbee   :  { %v3253_v44 = vpop.f32.mrb[17].mxu1 }
 0xbef   :  { %v3254_v45 = vadd.f32 %v3253_v44, %v3252_v42 }
 0xbf1   :  { %v2851_v49 = vadd.f32 %v3254_v45, %v2783_v47 }
 0xc2d   :  { %v3287_v50 = vpop.f32.mrb[18].mxu1 }
 0xc2e   :  { %v3288_v48 = vpop.f32.mrb[19].mxu1 }
 0xc2f   :  { %v3289_v51 = vadd.f32 %v3288_v48, %v3287_v50 }
 0xc31   :  { %v2921_v35 = vadd.f32 %v3289_v51, %v2851_v49 }
 0xc33   :  { %2932 = vrot.lane.b32.xlu0 %v2921_v35, %s4456_s9 }
 0xc37   :  { %2939 = vrot.lane.b32.xlu0 %v5144_v12, %s4457_s22 }
 0xca5   :  { %v2933_v55 = vpop.permute.xlu0 %2932 }
 0xca6   :  { %v2948_v7 = vsel %vm2947_vm5, %v2946_v57, %v2933_v55 }
 0xca7   :  { %v2950_v43 = vsel %vm2949_vm6, %v2948_v7, %v2937_v52 }
 0xca8   :  { %v2952_v12 = vsel %vm2951_vm7, %v2950_v43, %v2937_v52 }
 0xca9   :  { %v2940_v59 = vpop.permute.xlu0 %2939 }
 0xcaa   :  { %v2954_v60 = vsel %vm2953_vm8, %v2952_v12, %v2940_v59 }
 0xcab   :  { %v2956_v21 = vsel %vm2955_vm9, %v2954_v60, 0.0 }
 0xcac   :  { %2957 = vst [vmem:[#allocation17] sm:$0xff] %v2956_v21 }
 0xcad   :  { %4417 = shalt.err (!%p4414_p6)
}
 0xcae   :  { %s4418_s25 = scalar_lea.hbm %s5387_s11, 128 }
 0xcaf   :  { %p4419_p7 = scmp.ne.s32.totalorder %s5387_s11, %s4418_s25  ;;  %p4422_p8 = scmp.lt.u32.totalorder %s4418_s25, %s5387_s11 }
 0xcb1   :  { %p4424_p9 = pnand %p4422_p8, %p4419_p7 }
 0xcb3   :  { %4427 = shalt.err (!%p4424_p9)
}
 0xcb4   :  { %2967 = dma.vmem_to_hbm [thread:$0]  %s2965_s1, 128, %s5387_s11, [#allocation4]  }
 0xcb5   :  { %4438 = dma.done.wait [#allocation4], 128  }
 0xcb6   :  { %4439 = vsyncadd [#allocation4], 4294967168 }
 0xcb7   :  { %2971 = vsyncpa [#allocation3], 1 }
 0xcb8   :  { %2972 = vsyncpa [#allocation6], 1 }
 0xcb9   :  { %2973 = vsyncpa [#allocation9], 1 }
 0xcba   :  { %2974 = vsyncpa [#allocation12], 1 }
 0xcbb   :  { %2975 = vsyncpa [#allocation15], 1 }
 0xcbc   :  { %2976 = vsyncpa [#allocation4], 1 }

</bundles_post_ra>
